<compile_context>
chip_gen: v7x
topology: tpu7x:2x2x1
jax: 0.10.0
libtpu: 0.0.40
codegen_flags: <defaults>
</compile_context>

<pallas_src>
import jax
import jax.numpy as jnp
from jax.experimental import pallas as pl
from jax.experimental.pallas import tpu as pltpu


# ------------------------------ fused kernel ------------------------------- #

def _csp_fused_kernel(x_ref, w12_ref, b12_ref, w1b_ref, b1b_ref,
                      w2b_ref, b2b_ref, w3a_ref, w3f_ref, b3_ref,
                      o_ref, ypad_ref):
    """Whole CSPLayer for one batch element, all intermediates in VMEM.

    x_ref : (1, H, W, Cin)  f32   input tile
    w12   : (Cin, 2h)       bf16  conv1|conv2 1x1 weights, channel-concatenated
    b12   : (1, 2h)         f32
    w1b   : (2h, h)         bf16  bottleneck conv1 weights (x_2 half zeroed)
    b1b   : (1, h)          f32
    w2b   : (9h, h)         bf16  bottleneck conv2 3x3 weights, im2col layout
    b2b   : (1, h)          f32
    w3a   : (h, Cout)       bf16  conv3 weights for the bottleneck branch
    w3f   : (2h, Cout)      bf16  full conv3 weights (residual + x_2 branch)
    b3    : (1, Cout)       f32
    o_ref : (1, H, W, Cout) f32
    ypad  : (H+2, W+2, h)   f32   VMEM scratch; zero border = conv padding
    """
    _, H, W, Cout = o_ref.shape
    Cin = x_ref.shape[-1]
    hid = w3a_ref.shape[0]
    M = H * W

    x2d = x_ref[0].reshape(M, Cin).astype(jnp.bfloat16)

    # conv1 & conv2 (both 1x1 on x) fused into one matmul: t = [x_1 | x_2].
    t = jnp.dot(x2d, w12_ref[...], preferred_element_type=jnp.float32)
    t = t + b12_ref[...]
    t = t * jax.nn.sigmoid(t)                       # SiLU (f32)
    t_bf = t.astype(jnp.bfloat16)

    # Bottleneck conv1 (1x1).  w1b has zeros on the x_2 rows, so this equals
    # x_1 @ W_bconv1 without any lane slicing of t.
    y = jnp.dot(t_bf, w1b_ref[...], preferred_element_type=jnp.float32)
    y = y + b1b_ref[...]
    y = y * jax.nn.sigmoid(y)                       # SiLU (f32)

    # Bottleneck conv2 (3x3, pad=1) as a single im2col matmul (K = 9*hid).
    # Pad y into a zero-initialised VMEM scratch (border acts as conv padding).
    ypad_ref[...] = jnp.zeros_like(ypad_ref)
    ypad_ref[1:H + 1, 1:W + 1, :] = y.reshape(H, W, hid)
    yp = ypad_ref[...]
    pmat = jnp.concatenate(
        [yp[dy:dy + H, dx:dx + W, :] for dy in range(3) for dx in range(3)],
        axis=-1).reshape(M, 9 * hid).astype(jnp.bfloat16)
    z = jnp.dot(pmat, w2b_ref[...], preferred_element_type=jnp.float32)
    z = z + b2b_ref[...]
    z = z * jax.nn.sigmoid(z)                       # SiLU (residual folded below)

    # conv3 on concat([z + x_1, x_2]) without materialising the concat:
    #   (z + x_1) @ W3a + x_2 @ W3b  ==  z @ W3a + t @ W3_full
    o = jnp.dot(z.astype(jnp.bfloat16), w3a_ref[...],
                preferred_element_type=jnp.float32)
    o = o + jnp.dot(t_bf, w3f_ref[...], preferred_element_type=jnp.float32)
    o = o + b3_ref[...]
    o = o * jax.nn.sigmoid(o)                       # SiLU
    o_ref[0] = o.reshape(H, W, Cout).astype(o_ref.dtype)


def csp_layer_pallas(x_nhwc, wp):
    N, H, W, Cin = x_nhwc.shape
    hid, Cout = wp["w3a"].shape

    def full(a):
        zeros = (0,) * a.ndim
        return pl.BlockSpec(a.shape, lambda n: zeros)

    return pl.pallas_call(
        _csp_fused_kernel,
        out_shape=jax.ShapeDtypeStruct((N, H, W, Cout), jnp.float32),
        grid=(N,),
        in_specs=[
            pl.BlockSpec((1, H, W, Cin), lambda n: (n, 0, 0, 0)),
            full(wp["w12"]), full(wp["b12"]),
            full(wp["w1b"]), full(wp["b1b"]),
            full(wp["w2b"]), full(wp["b2b"]),
            full(wp["w3a"]), full(wp["w3f"]), full(wp["b3"]),
        ],
        out_specs=pl.BlockSpec((1, H, W, Cout), lambda n: (n, 0, 0, 0)),
        scratch_shapes=[pltpu.VMEM((H + 2, W + 2, hid), jnp.float32)],
        compiler_params=pltpu.CompilerParams(
            dimension_semantics=("parallel",)),
    )(x_nhwc, wp["w12"], wp["b12"], wp["w1b"], wp["b1b"],
      wp["w2b"], wp["b2b"], wp["w3a"], wp["w3f"], wp["b3"])


# -------------------------- parameter construction ------------------------- #

def _fold_bn(w, gamma, beta, mean, var, eps=1e-5):
    scale = gamma / jnp.sqrt(var + eps)
    w_f = w * scale[:, None, None, None]
    b_f = beta - mean * scale
    return w_f, b_f


def make_baseconv_params(key, cin, cout, k):
    """Deterministic synthetic Conv2d + BatchNorm2d params, BN folded in."""
    kw, kg, kb, km, kv = jax.random.split(key, 5)
    w = jax.random.normal(kw, (cout, cin, k, k), jnp.float32) * 0.1
    gamma = jax.random.uniform(kg, (cout,), jnp.float32, 0.5, 1.5)
    beta = jax.random.normal(kb, (cout,), jnp.float32) * 0.1
    mean = jax.random.normal(km, (cout,), jnp.float32) * 0.1
    var = jax.random.uniform(kv, (cout,), jnp.float32, 0.5, 1.5)
    return _fold_bn(w, gamma, beta, mean, var)


def make_csp_params(key, in_channels, out_channels, expansion=0.5):
    hidden = int(out_channels * expansion)
    keys = jax.random.split(key, 5)
    return {
        "conv1":    make_baseconv_params(keys[0], in_channels, hidden, 1),
        "conv2":    make_baseconv_params(keys[1], in_channels, hidden, 1),
        "conv3":    make_baseconv_params(keys[2], 2 * hidden, out_channels, 1),
        # Bottleneck(hidden, hidden, shortcut=True, expansion=1.0)
        "m0_conv1": make_baseconv_params(keys[3], hidden, hidden, 1),
        "m0_conv2": make_baseconv_params(keys[4], hidden, hidden, 3),
    }


def prepare_fused_params(params):
    """Reshape / fuse folded-BN conv weights into the kernel's fused layout."""
    w1, b1 = params["conv1"]
    w2, b2 = params["conv2"]
    w3, b3 = params["conv3"]
    bw1, bb1 = params["m0_conv1"]
    bw2, bb2 = params["m0_conv2"]

    hid = w1.shape[0]
    bf = jnp.bfloat16

    w1_2d = w1[:, :, 0, 0].T                                   # (Cin, hid)
    w2_2d = w2[:, :, 0, 0].T                                   # (Cin, hid)
    w12 = jnp.concatenate([w1_2d, w2_2d], axis=1).astype(bf)   # (Cin, 2*hid)
    b12 = jnp.concatenate([b1, b2]).reshape(1, -1)

    bw1_2d = bw1[:, :, 0, 0].T                                 # (hid, hid)
    w1b = jnp.concatenate([bw1_2d, jnp.zeros_like(bw1_2d)],
                          axis=0).astype(bf)                   # (2*hid, hid)
    b1b = bb1.reshape(1, -1)

    # OIHW -> HWIO -> (9*hid, hid) im2col layout (row = (ky*3+kx)*Cin + cin)
    w2b = jnp.transpose(bw2, (2, 3, 1, 0)).reshape(9 * hid, hid).astype(bf)
    b2b = bb2.reshape(1, -1)

    w3_2d = w3[:, :, 0, 0].T                                   # (2*hid, Cout)
    w3a = w3_2d[:hid].astype(bf)                               # (hid, Cout)
    w3f = w3_2d.astype(bf)                                     # (2*hid, Cout)
    b3r = b3.reshape(1, -1)

    return dict(w12=w12, b12=b12, w1b=w1b, b1b=b1b, w2b=w2b, b2b=b2b,
                w3a=w3a, w3f=w3f, b3=b3r)


# ------------------------------ CSPLayer fwd -------------------------------- #

def csp_layer_forward(x_nchw, params):
    # NCHW (PyTorch) -> NHWC (kernel layout)
    x = jnp.transpose(x_nchw, (0, 2, 3, 1)).astype(jnp.float32)
    wp = prepare_fused_params(params)
    out = csp_layer_pallas(x, wp)
    return jnp.transpose(out, (0, 3, 1, 2))                    # back to NCHW


# ------------------------------ pure-JAX ref -------------------------------- #

def _ref_baseconv(x, w, b):
    y = jax.lax.conv_general_dilated(
        x, w, window_strides=(1, 1), padding="SAME",
        dimension_numbers=("NCHW", "OIHW", "NCHW"))
    return jax.nn.silu(y + b[None, :, None, None])


def ref_csp_layer(x, p):
    x1 = _ref_baseconv(x, *p["conv1"])
    x2 = _ref_baseconv(x, *p["conv2"])
    y = _ref_baseconv(x1, *p["m0_conv1"])
    y = _ref_baseconv(y, *p["m0_conv2"])
    x1 = y + x1
    xc = jnp.concatenate([x1, x2], axis=1)
    return _ref_baseconv(xc, *p["conv3"])


# ----------------------------------- main ----------------------------------- #

if __name__ == "__main__":
    N, C_IN, C_OUT, H, W = 2, 4, 4, 16, 16

    x = jax.random.normal(jax.random.PRNGKey(0), (N, C_IN, H, W), jnp.float32)
    params = make_csp_params(jax.random.PRNGKey(42), C_IN, C_OUT)

    out = csp_layer_forward(x, params)
    out = jax.block_until_ready(out)

    ref = jax.block_until_ready(ref_csp_layer(x, params))

    assert out.shape == (N, C_OUT, H, W), out.shape
    # bf16 MXU operands (f32 accumulation) -> loosened tolerance vs f32 ref.
    assert jnp.allclose(out, ref, rtol=2e-2, atol=2e-2), (
        float(jnp.max(jnp.abs(out - ref))))

    print("KERNEL_OK")
</pallas_src>

<mosaic_0001>
module attributes {stable_mosaic.version = 11 : i64} {
  func.func @_csp_fused_kernel(%arg0: i32, %arg1: memref<1x16x16x4xf32, #tpu.memory_space<vmem>>, %arg2: memref<4x4xbf16, #tpu.memory_space<vmem>>, %arg3: memref<1x4xf32, #tpu.memory_space<vmem>>, %arg4: memref<4x2xbf16, #tpu.memory_space<vmem>>, %arg5: memref<1x2xf32, #tpu.memory_space<vmem>>, %arg6: memref<18x2xbf16, #tpu.memory_space<vmem>>, %arg7: memref<1x2xf32, #tpu.memory_space<vmem>>, %arg8: memref<2x4xbf16, #tpu.memory_space<vmem>>, %arg9: memref<4x4xbf16, #tpu.memory_space<vmem>>, %arg10: memref<1x4xf32, #tpu.memory_space<vmem>>, %arg11: memref<1x16x16x4xf32, #tpu.memory_space<vmem>>, %arg12: memref<18x18x2xf32, #tpu.memory_space<vmem>>) attributes {dimension_semantics = [#tpu.dimension_semantics<parallel>], iteration_bounds = array<i64: 2>, scalar_prefetch = 0 : i64, scratch_operands = 1 : i64, tpu.core_type = #tpu.core_type<tc>, window_params = [{transform_indices = @transform_0, window_bounds = array<i64: 1, 16, 16, 4>}, {pipeline_mode = #tpu.pipeline_mode<synchronous>, transform_indices = @transform_1, window_bounds = array<i64: 4, 4>}, {pipeline_mode = #tpu.pipeline_mode<synchronous>, transform_indices = @transform_2, window_bounds = array<i64: 1, 4>}, {pipeline_mode = #tpu.pipeline_mode<synchronous>, transform_indices = @transform_3, window_bounds = array<i64: 4, 2>}, {pipeline_mode = #tpu.pipeline_mode<synchronous>, transform_indices = @transform_4, window_bounds = array<i64: 1, 2>}, {pipeline_mode = #tpu.pipeline_mode<synchronous>, transform_indices = @transform_5, window_bounds = array<i64: 18, 2>}, {pipeline_mode = #tpu.pipeline_mode<synchronous>, transform_indices = @transform_6, window_bounds = array<i64: 1, 2>}, {pipeline_mode = #tpu.pipeline_mode<synchronous>, transform_indices = @transform_7, window_bounds = array<i64: 2, 4>}, {pipeline_mode = #tpu.pipeline_mode<synchronous>, transform_indices = @transform_8, window_bounds = array<i64: 4, 4>}, {pipeline_mode = #tpu.pipeline_mode<synchronous>, transform_indices = @transform_9, window_bounds = array<i64: 1, 4>}, {transform_indices = @transform_10, window_bounds = array<i64: 1, 16, 16, 4>}]} {
    %c0 = arith.constant 0 : index
    %c0_0 = arith.constant 0 : index
    %c0_1 = arith.constant 0 : index
    %c0_2 = arith.constant 0 : index
    %0 = vector.load %arg1[%c0, %c0_0, %c0_1, %c0_2] : memref<1x16x16x4xf32, #tpu.memory_space<vmem>>, vector<1x16x16x4xf32>
    %1 = vector.shape_cast %0 : vector<1x16x16x4xf32> to vector<16x16x4xf32>
    %2 = vector.shape_cast %1 : vector<16x16x4xf32> to vector<256x4xf32>
    %3 = arith.truncf %2 : vector<256x4xf32> to vector<256x4xbf16>
    %c0_3 = arith.constant 0 : index
    %c0_4 = arith.constant 0 : index
    %4 = vector.load %arg2[%c0_3, %c0_4] : memref<4x4xbf16, #tpu.memory_space<vmem>>, vector<4x4xbf16>
    %cst = arith.constant dense<0.000000e+00> : vector<256x4xf32>
    %5 = tpu.matmul %3, %4, %cst {dimension_numbers = #tpu.dot_dimension_numbers<[1], [0], [0], [1], [0, 0, 1, 1], [], []>} : vector<256x4xbf16>, vector<4x4xbf16>, vector<256x4xf32> -> vector<256x4xf32>
    %c0_5 = arith.constant 0 : index
    %c0_6 = arith.constant 0 : index
    %6 = vector.load %arg3[%c0_5, %c0_6] : memref<1x4xf32, #tpu.memory_space<vmem>>, vector<1x4xf32>
    %7 = vector.broadcast %6 : vector<1x4xf32> to vector<256x4xf32>
    %8 = arith.addf %5, %7 : vector<256x4xf32>
    %9 = arith.negf %8 : vector<256x4xf32>
    %10 = math.exp %9 : vector<256x4xf32>
    %cst_7 = arith.constant 1.000000e+00 : f32
    %11 = vector.broadcast %cst_7 : f32 to vector<256x4xf32>
    %12 = arith.addf %11, %10 : vector<256x4xf32>
    %13 = arith.divf %11, %12 : vector<256x4xf32>
    %14 = arith.mulf %8, %13 : vector<256x4xf32>
    %15 = arith.truncf %14 : vector<256x4xf32> to vector<256x4xbf16>
    %c0_8 = arith.constant 0 : index
    %c0_9 = arith.constant 0 : index
    %16 = vector.load %arg4[%c0_8, %c0_9] : memref<4x2xbf16, #tpu.memory_space<vmem>>, vector<4x2xbf16>
    %cst_10 = arith.constant dense<0.000000e+00> : vector<256x2xf32>
    %17 = tpu.matmul %15, %16, %cst_10 {dimension_numbers = #tpu.dot_dimension_numbers<[1], [0], [0], [1], [0, 0, 1, 1], [], []>} : vector<256x4xbf16>, vector<4x2xbf16>, vector<256x2xf32> -> vector<256x2xf32>
    %c0_11 = arith.constant 0 : index
    %c0_12 = arith.constant 0 : index
    %18 = vector.load %arg5[%c0_11, %c0_12] : memref<1x2xf32, #tpu.memory_space<vmem>>, vector<1x2xf32>
    %19 = vector.broadcast %18 : vector<1x2xf32> to vector<256x2xf32>
    %20 = arith.addf %17, %19 : vector<256x2xf32>
    %21 = arith.negf %20 : vector<256x2xf32>
    %22 = math.exp %21 : vector<256x2xf32>
    %cst_13 = arith.constant 1.000000e+00 : f32
    %23 = vector.broadcast %cst_13 : f32 to vector<256x2xf32>
    %24 = arith.addf %23, %22 : vector<256x2xf32>
    %25 = arith.divf %23, %24 : vector<256x2xf32>
    %26 = arith.mulf %20, %25 : vector<256x2xf32>
    %cst_14 = arith.constant 0.000000e+00 : f32
    %27 = vector.broadcast %cst_14 : f32 to vector<18x18x2xf32>
    %c0_15 = arith.constant 0 : index
    %c0_16 = arith.constant 0 : index
    %c0_17 = arith.constant 0 : index
    %28 = vector.load %arg12[%c0_15, %c0_16, %c0_17] : memref<18x18x2xf32, #tpu.memory_space<vmem>>, vector<18x18x2xf32>
    tpu.vector_store %arg12[%c0_15, %c0_16, %c0_17], %27 {strides = array<i32>} : memref<18x18x2xf32, #tpu.memory_space<vmem>>, vector<18x18x2xf32>,
    %29 = vector.shape_cast %26 : vector<256x2xf32> to vector<16x16x2xf32>
    %c1 = arith.constant 1 : index
    %c1_18 = arith.constant 1 : index
    %c0_19 = arith.constant 0 : index
    %30 = vector.load %arg12[%c1, %c1_18, %c0_19] : memref<18x18x2xf32, #tpu.memory_space<vmem>>, vector<16x16x2xf32>
    tpu.vector_store %arg12[%c1, %c1_18, %c0_19], %29 {strides = array<i32>} : memref<18x18x2xf32, #tpu.memory_space<vmem>>, vector<16x16x2xf32>,
    %c0_20 = arith.constant 0 : index
    %c0_21 = arith.constant 0 : index
    %c0_22 = arith.constant 0 : index
    %31 = vector.load %arg12[%c0_20, %c0_21, %c0_22] : memref<18x18x2xf32, #tpu.memory_space<vmem>>, vector<18x18x2xf32>
    %32 = vector.extract_strided_slice %31 {offsets = [0, 0, 0], sizes = [16, 16, 2], strides = [1, 1, 1]} : vector<18x18x2xf32> to vector<16x16x2xf32>
    %33 = vector.extract_strided_slice %31 {offsets = [0, 1, 0], sizes = [16, 16, 2], strides = [1, 1, 1]} : vector<18x18x2xf32> to vector<16x16x2xf32>
    %34 = vector.extract_strided_slice %31 {offsets = [0, 2, 0], sizes = [16, 16, 2], strides = [1, 1, 1]} : vector<18x18x2xf32> to vector<16x16x2xf32>
    %35 = vector.extract_strided_slice %31 {offsets = [1, 0, 0], sizes = [16, 16, 2], strides = [1, 1, 1]} : vector<18x18x2xf32> to vector<16x16x2xf32>
    %36 = vector.extract_strided_slice %31 {offsets = [1, 1, 0], sizes = [16, 16, 2], strides = [1, 1, 1]} : vector<18x18x2xf32> to vector<16x16x2xf32>
    %37 = vector.extract_strided_slice %31 {offsets = [1, 2, 0], sizes = [16, 16, 2], strides = [1, 1, 1]} : vector<18x18x2xf32> to vector<16x16x2xf32>
    %38 = vector.extract_strided_slice %31 {offsets = [2, 0, 0], sizes = [16, 16, 2], strides = [1, 1, 1]} : vector<18x18x2xf32> to vector<16x16x2xf32>
    %39 = vector.extract_strided_slice %31 {offsets = [2, 1, 0], sizes = [16, 16, 2], strides = [1, 1, 1]} : vector<18x18x2xf32> to vector<16x16x2xf32>
    %40 = vector.extract_strided_slice %31 {offsets = [2, 2, 0], sizes = [16, 16, 2], strides = [1, 1, 1]} : vector<18x18x2xf32> to vector<16x16x2xf32>
    %41 = tpu.concatenate %32, %33, %34, %35, %36, %37, %38, %39, %40 in 2 : vector<16x16x2xf32>, vector<16x16x2xf32>, vector<16x16x2xf32>, vector<16x16x2xf32>, vector<16x16x2xf32>, vector<16x16x2xf32>, vector<16x16x2xf32>, vector<16x16x2xf32>, vector<16x16x2xf32> -> vector<16x16x18xf32>
    %42 = vector.shape_cast %41 : vector<16x16x18xf32> to vector<256x18xf32>
    %43 = arith.truncf %42 : vector<256x18xf32> to vector<256x18xbf16>
    %c0_23 = arith.constant 0 : index
    %c0_24 = arith.constant 0 : index
    %44 = vector.load %arg6[%c0_23, %c0_24] : memref<18x2xbf16, #tpu.memory_space<vmem>>, vector<18x2xbf16>
    %cst_25 = arith.constant dense<0.000000e+00> : vector<256x2xf32>
    %45 = tpu.matmul %43, %44, %cst_25 {dimension_numbers = #tpu.dot_dimension_numbers<[1], [0], [0], [1], [0, 0, 1, 1], [], []>} : vector<256x18xbf16>, vector<18x2xbf16>, vector<256x2xf32> -> vector<256x2xf32>
    %c0_26 = arith.constant 0 : index
    %c0_27 = arith.constant 0 : index
    %46 = vector.load %arg7[%c0_26, %c0_27] : memref<1x2xf32, #tpu.memory_space<vmem>>, vector<1x2xf32>
    %47 = vector.broadcast %46 : vector<1x2xf32> to vector<256x2xf32>
    %48 = arith.addf %45, %47 : vector<256x2xf32>
    %49 = arith.negf %48 : vector<256x2xf32>
    %50 = math.exp %49 : vector<256x2xf32>
    %cst_28 = arith.constant 1.000000e+00 : f32
    %51 = vector.broadcast %cst_28 : f32 to vector<256x2xf32>
    %52 = arith.addf %51, %50 : vector<256x2xf32>
    %53 = arith.divf %51, %52 : vector<256x2xf32>
    %54 = arith.mulf %48, %53 : vector<256x2xf32>
    %55 = arith.truncf %54 : vector<256x2xf32> to vector<256x2xbf16>
    %c0_29 = arith.constant 0 : index
    %c0_30 = arith.constant 0 : index
    %56 = vector.load %arg8[%c0_29, %c0_30] : memref<2x4xbf16, #tpu.memory_space<vmem>>, vector<2x4xbf16>
    %cst_31 = arith.constant dense<0.000000e+00> : vector<256x4xf32>
    %57 = tpu.matmul %55, %56, %cst_31 {dimension_numbers = #tpu.dot_dimension_numbers<[1], [0], [0], [1], [0, 0, 1, 1], [], []>} : vector<256x2xbf16>, vector<2x4xbf16>, vector<256x4xf32> -> vector<256x4xf32>
    %c0_32 = arith.constant 0 : index
    %c0_33 = arith.constant 0 : index
    %58 = vector.load %arg9[%c0_32, %c0_33] : memref<4x4xbf16, #tpu.memory_space<vmem>>, vector<4x4xbf16>
    %cst_34 = arith.constant dense<0.000000e+00> : vector<256x4xf32>
    %59 = tpu.matmul %15, %58, %cst_34 {dimension_numbers = #tpu.dot_dimension_numbers<[1], [0], [0], [1], [0, 0, 1, 1], [], []>} : vector<256x4xbf16>, vector<4x4xbf16>, vector<256x4xf32> -> vector<256x4xf32>
    %60 = arith.addf %57, %59 : vector<256x4xf32>
    %c0_35 = arith.constant 0 : index
    %c0_36 = arith.constant 0 : index
    %61 = vector.load %arg10[%c0_35, %c0_36] : memref<1x4xf32, #tpu.memory_space<vmem>>, vector<1x4xf32>
    %62 = vector.broadcast %61 : vector<1x4xf32> to vector<256x4xf32>
    %63 = arith.addf %60, %62 : vector<256x4xf32>
    %64 = arith.negf %63 : vector<256x4xf32>
    %65 = math.exp %64 : vector<256x4xf32>
    %cst_37 = arith.constant 1.000000e+00 : f32
    %66 = vector.broadcast %cst_37 : f32 to vector<256x4xf32>
    %67 = arith.addf %66, %65 : vector<256x4xf32>
    %68 = arith.divf %66, %67 : vector<256x4xf32>
    %69 = arith.mulf %63, %68 : vector<256x4xf32>
    %70 = vector.shape_cast %69 : vector<256x4xf32> to vector<16x16x4xf32>
    %c0_38 = arith.constant 0 : index
    %c0_39 = arith.constant 0 : index
    %c0_40 = arith.constant 0 : index
    %c0_41 = arith.constant 0 : index
    %71 = vector.load %arg11[%c0_38, %c0_39, %c0_40, %c0_41] : memref<1x16x16x4xf32, #tpu.memory_space<vmem>>, vector<1x16x16x4xf32>
    %72 = vector.shape_cast %71 : vector<1x16x16x4xf32> to vector<16x16x4xf32>
    %73 = vector.shape_cast %70 : vector<16x16x4xf32> to vector<1x16x16x4xf32>
    tpu.vector_store %arg11[%c0_38, %c0_39, %c0_40, %c0_41], %73 {strides = array<i32>} : memref<1x16x16x4xf32, #tpu.memory_space<vmem>>, vector<1x16x16x4xf32>,
    return
  }
  func.func @transform_0(%arg0: i32) -> (i32, i32, i32, i32) {
    %c0_i32 = arith.constant 0 : i32
    %c0_i32_0 = arith.constant 0 : i32
    %c0_i32_1 = arith.constant 0 : i32
    %c0_i32_2 = arith.constant 0 : i32
    return %arg0, %c0_i32, %c0_i32_0, %c0_i32_1 : i32, i32, i32, i32
  }
  func.func @transform_1(%arg0: i32) -> (i32, i32) {
    %c0_i32 = arith.constant 0 : i32
    %c0_i32_0 = arith.constant 0 : i32
    %c0_i32_1 = arith.constant 0 : i32
    return %c0_i32, %c0_i32_0 : i32, i32
  }
  func.func @transform_2(%arg0: i32) -> (i32, i32) {
    %c0_i32 = arith.constant 0 : i32
    %c0_i32_0 = arith.constant 0 : i32
    %c0_i32_1 = arith.constant 0 : i32
    return %c0_i32, %c0_i32_0 : i32, i32
  }
  func.func @transform_3(%arg0: i32) -> (i32, i32) {
    %c0_i32 = arith.constant 0 : i32
    %c0_i32_0 = arith.constant 0 : i32
    %c0_i32_1 = arith.constant 0 : i32
    return %c0_i32, %c0_i32_0 : i32, i32
  }
  func.func @transform_4(%arg0: i32) -> (i32, i32) {
    %c0_i32 = arith.constant 0 : i32
    %c0_i32_0 = arith.constant 0 : i32
    %c0_i32_1 = arith.constant 0 : i32
    return %c0_i32, %c0_i32_0 : i32, i32
  }
  func.func @transform_5(%arg0: i32) -> (i32, i32) {
    %c0_i32 = arith.constant 0 : i32
    %c0_i32_0 = arith.constant 0 : i32
    %c0_i32_1 = arith.constant 0 : i32
    return %c0_i32, %c0_i32_0 : i32, i32
  }
  func.func @transform_6(%arg0: i32) -> (i32, i32) {
    %c0_i32 = arith.constant 0 : i32
    %c0_i32_0 = arith.constant 0 : i32
    %c0_i32_1 = arith.constant 0 : i32
    return %c0_i32, %c0_i32_0 : i32, i32
  }
  func.func @transform_7(%arg0: i32) -> (i32, i32) {
    %c0_i32 = arith.constant 0 : i32
    %c0_i32_0 = arith.constant 0 : i32
    %c0_i32_1 = arith.constant 0 : i32
    return %c0_i32, %c0_i32_0 : i32, i32
  }
  func.func @transform_8(%arg0: i32) -> (i32, i32) {
    %c0_i32 = arith.constant 0 : i32
    %c0_i32_0 = arith.constant 0 : i32
    %c0_i32_1 = arith.constant 0 : i32
    return %c0_i32, %c0_i32_0 : i32, i32
  }
  func.func @transform_9(%arg0: i32) -> (i32, i32) {
    %c0_i32 = arith.constant 0 : i32
    %c0_i32_0 = arith.constant 0 : i32
    %c0_i32_1 = arith.constant 0 : i32
    return %c0_i32, %c0_i32_0 : i32, i32
  }
  func.func @transform_10(%arg0: i32) -> (i32, i32, i32, i32) {
    %c0_i32 = arith.constant 0 : i32
    %c0_i32_0 = arith.constant 0 : i32
    %c0_i32_1 = arith.constant 0 : i32
    %c0_i32_2 = arith.constant 0 : i32
    return %arg0, %c0_i32, %c0_i32_0, %c0_i32_1 : i32, i32, i32, i32
  }
}

</mosaic_0001>

<bundles_post_ra>
// kernel: tpu_custom_call.1
= control target key start
LH: loop header
LB: loop body
LE: loop exit
PB: predicated region body
PF: predicated region fallthrough
CT: control target
= control target key end

     0   :  { %s5741_s13 = smov 0   ;;  %s7572_s0 = inlined_call_operand.vmem [shape: f32[2,16,16,4], index: 0, kind: input, shape index: {}]   ;;  %s7573_s1 = inlined_call_operand.vmem [shape: bf16[4,4], index: 1, kind: input, shape index: {}]   ;;  %s7574_s2 = inlined_call_operand.vmem [shape: f32[1,4], index: 2, kind: input, shape index: {}]   ;;  %s7575_s3 = inlined_call_operand.vmem [shape: bf16[4,2], index: 3, kind: input, shape index: {}]   ;;  %s7576_s4 = inlined_call_operand.vmem [shape: f32[1,2], index: 4, kind: input, shape index: {}]   ;;  %s7577_s5 = inlined_call_operand.vmem [shape: bf16[18,2], index: 5, kind: input, shape index: {}]   ;;  %s7578_s6 = inlined_call_operand.vmem [shape: f32[1,2], index: 6, kind: input, shape index: {}]   ;;  %s7579_s7 = inlined_call_operand.vmem [shape: bf16[2,4], index: 7, kind: input, shape index: {}]   ;;  %s7580_s8 = inlined_call_operand.vmem [shape: bf16[4,4], index: 8, kind: input, shape index: {}]   ;;  %s7581_s9 = inlined_call_operand.vmem [shape: f32[1,4], index: 9, kind: input, shape index: {}]   ;;  %s7582_s10 = inlined_call_operand.vmem [shape: f32[2,16,16,4], index: 10, kind: output, shape index: {}]  }
   0x1 LB: > { %s3941_s14 = sadd.s32 4294967295, %s5675_s13   ;;  %p3945_p0 = scmp.ge.s32.totalorder %s5675_s13, 1  ;;  %s5675_s13 = sphi %s5741_s13, %s20_s13  }
   0x2   : > { %p312_p1 = scmp.lt.s32.totalorder %s5675_s13, 3 }
   0x4   : > { %p313_p2 = pnand %p3945_p0, %p312_p1 }
   0x5   : > { %v409_v0 = vld [vmem:[%s7573_s1] sm:$0x3] (!%p313_p2)  ;;  %vm466_vm0 = vcmask (!%p313_p2), 1041408   ;;  %p350_p3 = scmp.lt.s32.totalorder (!%p313_p2), %s3941_s14, 1  ;;  %vm417_vm1 = vcmask (!%p313_p2), 31744   ;;  %vm1315_vm2 = vcmask (!%p313_p2), 15360  }
   0x6   : > { %316 = sbr.rel (%p313_p2) target bundleno = 1390 (0x56e), region = 60  ;;  %4460 = vmatprep.subr.msk.bf16.mxu0 (!%p313_p2), %vm466_vm0, %v409_v0  ;;  %v468_v1 = vsel (!%p313_p2), %vm466_vm0, %v409_v0, 0  ;;  %v871_v2 = vld [vmem:[%s7575_s3] sm:$0x3] (!%p313_p2)  ;;  %vm1318_vm3 = vcmask (!%p313_p2), 9216   ;;  %s5678_s27 = smov (!%p313_p2), 12  }
   0x7   : > { %4255 = vmatpush3.bf16.msra.mxu0 (!%p313_p2), %v468_v1  ;;  %v928_v3 = vsel (!%p313_p2), %vm466_vm0, %v871_v2, 0  ;;  %4462 = vmatprep.subr.msk.bf16.mxu1 (!%p313_p2), %vm466_vm0, %v871_v2  ;;  %v5821_v52 = vld [vmem:[%s7580_s8] sm:$0x3] (!%p313_p2)  ;;  %vm1683_vm4 = vcmask (!%p313_p2), 1045504   ;;  %vm1506_vm5 = vcmask (!%p313_p2), 1046528   ;;  %s5679_s28 = smov (!%p313_p2), 4  }
   0x8   : > { %4461 = vmatprep.subr.msk.bf16.mxu0 (!%p313_p2), %vm466_vm0, %v871_v2  ;;  %4427 = vmatpush3.bf16.msra.mxu1 (!%p313_p2), %v928_v3  ;;  %v5828_v53 = vld [vmem:[%s7574_s2] ss:$0 sm:$0xff] (!%p313_p2)  ;;  %s5680_s29 = smov (!%p313_p2), 2   ;;  %s5681_s12 = smov (!%p313_p2), 6   ;;  %vm2808_vm6 = vcmask (!%p313_p2), 1040384   ;;  %vm2526_vm7 = vcmask (!%p313_p2), 48128  }
   0x9   : > { %4464 = vmatprep.subr.msk.bf16.mxu1 (!%p313_p2), %vm466_vm0, %v5821_v52  ;;  %s5682_s15 = smov (!%p313_p2), 8   ;;  %s5683_s16 = smov (!%p313_p2), 10   ;;  %vm2559_vm8 = vcmask (!%p313_p2), 64512   ;;  %vm2592_vm9 = vcmask (!%p313_p2), 80896   ;;  %vm2625_vm10 = vcmask (!%p313_p2), 97280   ;;  %vm2658_vm11 = vcmask (!%p313_p2), 113664  }
   0xa   : > { %s5684_s17 = smov (!%p313_p2), 14   ;;  %s5685_s18 = smov (!%p313_p2), 16   ;;  %vm2691_vm12 = vcmask (!%p313_p2), 130048   ;;  %vm2759_vm13 = vcmask (!%p313_p2), 146432  }
   0xd   : > { %s7584_s14 = smov (!%p350_p3, %s3941_s14), 1 }
   0xe   : > { %s4166_s19 = sshll.u32 %s7584_s14, 8 }
   0xf   : > { %s5768_s22 = scalar_lea.vmem %s7572_s0, %s4166_s19 }
  0x10   : > { %v361_v4 = vld [vmem:[%s5768_s22] sm:$0xff]  ;;  %v362_v5 = vld [vmem:[%s5768_s22 + $0x8] sm:$0xff]  ;;  %v363_v6 = vld [vmem:[%s5768_s22 + $0x10] sm:$0xff] }
  0x11   : > { %v393_v7 = vpack.c.bf16 %v362_v5, %v361_v4  ;;  %v364_v8 = vld [vmem:[%s5768_s22 + $0x18] sm:$0xff]  ;;  %v365_v9 = vld [vmem:[%s5768_s22 + $0x20] sm:$0xff]  ;;  %v366_v10 = vld [vmem:[%s5768_s22 + $0x28] sm:$0xff] }
  0x12   : > { %v394_v11 = vpack.c.bf16 %v364_v8, %v363_v6  ;;  %v395_v12 = vpack.c.bf16 %v366_v10, %v365_v9  ;;  %v367_v13 = vld [vmem:[%s5768_s22 + $0x30] sm:$0xff]  ;;  %v368_v14 = vld [vmem:[%s5768_s22 + $0x38] sm:$0xff]  ;;  %v369_v15 = vld [vmem:[%s5768_s22 + $0x40] sm:$0xff] }
  0x13   : > { %4256 = vmatprep.mubr.msk.bf16.mxu0 %vm417_vm1, %v393_v7  ;;  %v370_v16 = vld [vmem:[%s5768_s22 + $0x48] sm:$0xff]  ;;  %v396_v17 = vpack.c.bf16 %v368_v14, %v367_v13  ;;  %v371_v19 = vld [vmem:[%s5768_s22 + $0x50] sm:$0xff]  ;;  %v372_v20 = vld [vmem:[%s5768_s22 + $0x58] sm:$0xff] }
  0x14   : > { %4257 = vmatmul.mubr.msk.bf16.vlgmr.msra.gmra.mrb[0].mxu0 %vm417_vm1, %v394_v11  ;;  %v397_v18 = vpack.c.bf16 %v370_v16, %v369_v15  ;;  %v373_v21 = vld [vmem:[%s5768_s22 + $0x60] sm:$0xff]  ;;  %v374_v22 = vld [vmem:[%s5768_s22 + $0x68] sm:$0xff]  ;;  %v398_v23 = vpack.c.bf16 %v372_v20, %v371_v19  ;;  %v375_v25 = vld [vmem:[%s5768_s22 + $0x70] sm:$0xff] }
  0x15   : > { %4260 = vmatprep.mubr.msk.bf16.mxu0 %vm417_vm1, %v395_v12  ;;  %4289 = vmatpush3.bf16.msra.mxu0 %v928_v3  ;;  %v399_v24 = vpack.c.bf16 %v374_v22, %v373_v21  ;;  %v376_v26 = vld [vmem:[%s5768_s22 + $0x78] sm:$0xff]  ;;  %v377_v27 = vld [vmem:[%s5768_s22 + $0x80] sm:$0xff]  ;;  %v378_v28 = vld [vmem:[%s5768_s22 + $0x88] sm:$0xff] }
  0x16   : > { %v400_v29 = vpack.c.bf16 %v376_v26, %v375_v25  ;;  %v401_v30 = vpack.c.bf16 %v378_v28, %v377_v27  ;;  %v379_v31 = vld [vmem:[%s5768_s22 + $0x90] sm:$0xff]  ;;  %v380_v32 = vld [vmem:[%s5768_s22 + $0x98] sm:$0xff]  ;;  %v381_v33 = vld [vmem:[%s5768_s22 + $0xa0] sm:$0xff] }
  0x17   : > { %v382_v34 = vld [vmem:[%s5768_s22 + $0xa8] sm:$0xff]  ;;  %v402_v35 = vpack.c.bf16 %v380_v32, %v379_v31  ;;  %v383_v37 = vld [vmem:[%s5768_s22 + $0xb0] sm:$0xff]  ;;  %v384_v38 = vld [vmem:[%s5768_s22 + $0xb8] sm:$0xff] }
  0x18   : > { %v403_v36 = vpack.c.bf16 %v382_v34, %v381_v33  ;;  %v385_v39 = vld [vmem:[%s5768_s22 + $0xc0] sm:$0xff]  ;;  %v386_v40 = vld [vmem:[%s5768_s22 + $0xc8] sm:$0xff]  ;;  %v404_v41 = vpack.c.bf16 %v384_v38, %v383_v37  ;;  %v387_v43 = vld [vmem:[%s5768_s22 + $0xd0] sm:$0xff] }
  0x19   : > { %v405_v42 = vpack.c.bf16 %v386_v40, %v385_v39  ;;  %v388_v44 = vld [vmem:[%s5768_s22 + $0xd8] sm:$0xff]  ;;  %v389_v45 = vld [vmem:[%s5768_s22 + $0xe0] sm:$0xff]  ;;  %v390_v46 = vld [vmem:[%s5768_s22 + $0xe8] sm:$0xff] }
  0x1a   : > { %v406_v47 = vpack.c.bf16 %v388_v44, %v387_v43  ;;  %v407_v48 = vpack.c.bf16 %v390_v46, %v389_v45  ;;  %v391_v49 = vld [vmem:[%s5768_s22 + $0xf0] sm:$0xff]  ;;  %v392_v50 = vld [vmem:[%s5768_s22 + $0xf8] sm:$0xff] }
  0x1b   : > { %v408_v51 = vpack.c.bf16 %v392_v50, %v391_v49 }
  0x1c   : > { %4261 = vmatmul.mubr.msk.bf16.gmra.mrb[4].mxu0 %vm417_vm1, %v396_v17 }
  0x1d   : > { %4264 = vmatprep.mubr.msk.bf16.mxu0 %vm417_vm1, %v397_v18 }
  0x24   : > { %4265 = vmatmul.mubr.msk.bf16.gmra.mrb[8].mxu0 %vm417_vm1, %v398_v23 }
  0x25   : > { %4268 = vmatprep.mubr.msk.bf16.mxu0 %vm417_vm1, %v399_v24 }
  0x2c   : > { %4269 = vmatmul.mubr.msk.bf16.gmra.mrb[12].mxu0 %vm417_vm1, %v400_v29 }
  0x2d   : > { %4272 = vmatprep.mubr.msk.bf16.mxu0 %vm417_vm1, %v401_v30 }
  0x34   : > { %4273 = vmatmul.mubr.msk.bf16.gmra.mrb[16].mxu0 %vm417_vm1, %v402_v35 }
  0x35   : > { %4276 = vmatprep.mubr.msk.bf16.mxu0 %vm417_vm1, %v403_v36 }
  0x3c   : > { %4277 = vmatmul.mubr.msk.bf16.gmra.mrb[20].mxu0 %vm417_vm1, %v404_v41 }
  0x3d   : > { %4280 = vmatprep.mubr.msk.bf16.mxu0 %vm417_vm1, %v405_v42 }
  0x44   : > { %4281 = vmatmul.mubr.msk.bf16.gmra.mrb[24].mxu0 %vm417_vm1, %v406_v47 }
  0x45   : > { %4284 = vmatprep.mubr.msk.bf16.mxu0 %vm417_vm1, %v407_v48 }
  0x4c   : > { %4285 = vmatmul.mubr.msk.bf16.gmra.mrb[28].mxu0 %vm417_vm1, %v408_v51 }
  0xe7   : > { %v4258_v54 = vpop.f32.mrb[0].mxu0 }
  0xe8   : > { %v5831_v55 = vadd.f32 %v4258_v54, %v5828_v53  ;;  %v504_v56 = vpop.f32.mrb[1].mxu0 }
  0xe9   : > { %v5834_v57 = vadd.f32 %v5828_v53, %v504_v56  ;;  %v4259_v58 = vpop.f32.mrb[2].mxu0 }
  0xea   : > { %v3969_v59 = vmul.f32 -1.442695, %v5831_v55  ;;  %v5838_v60 = vadd.f32 %v4259_v58, %v5828_v53  ;;  %v507_v61 = vpop.f32.mrb[3].mxu0 }
  0xeb   : > { %v3967_v62 = vmul.f32 -1.442695, %v5834_v57  ;;  %v5842_v63 = vadd.f32 %v5828_v53, %v507_v61 }
  0xec   : > { %5125 = vpow2.f32 %v3969_v59  ;;  %v3970_v0 = vmul.f32 -1.442695, %v5838_v60 }
  0xed   : > { %5127 = vpow2.f32 %v3967_v62  ;;  %v3968_v1 = vmul.f32 -1.442695, %v5842_v63 }
  0xee   : > { %5129 = vpow2.f32 %v3970_v0 }
  0xef   : > { %5131 = vpow2.f32 %v3968_v1  ;;  %v4262_v2 = vpop.f32.mrb[4].mxu0 }
  0xf0   : > { %v5847_v3 = vadd.f32 %v4262_v2, %v5828_v53  ;;  %v520_v4 = vpop.f32.mrb[5].mxu0 }
  0xf1   : > { %v5850_v5 = vadd.f32 %v5828_v53, %v520_v4  ;;  %v4263_v6 = vpop.f32.mrb[6].mxu0 }
  0xf2   : > { %v3973_v7 = vmul.f32 -1.442695, %v5847_v3  ;;  %v5854_v8 = vadd.f32 %v4263_v6, %v5828_v53  ;;  %v523_v9 = vpop.f32.mrb[7].mxu0 }
  0xf3   : > { %v3971_v10 = vmul.f32 -1.442695, %v5850_v5  ;;  %v5858_v11 = vadd.f32 %v5828_v53, %v523_v9 }
  0xf4   : > { %5133 = vpow2.f32 %v3973_v7  ;;  %v3974_v12 = vmul.f32 -1.442695, %v5854_v8 }
  0xf5   : > { %5135 = vpow2.f32 %v3971_v10  ;;  %v3972_v13 = vmul.f32 -1.442695, %v5858_v11 }
  0xf6   : > { %v5126_v14 = vpop.eup %5125  ;;  %5137 = vpow2.f32 %v3974_v12 }
  0xf7   : > { %v5128_v15 = vpop.eup %5127  ;;  %v729_v16 = vadd.f32 1.0, %v5126_v14  ;;  %5139 = vpow2.f32 %v3972_v13  ;;  %v4266_v17 = vpop.f32.mrb[8].mxu0 }
  0xf8   : > { %v5130_v18 = vpop.eup %5129  ;;  %v727_v19 = vadd.f32 1.0, %v5128_v15  ;;  %v5863_v20 = vadd.f32 %v4266_v17, %v5828_v53  ;;  %v536_v21 = vpop.f32.mrb[9].mxu0 }
  0xf9   : > { %v5132_v22 = vpop.eup %5131  ;;  %5141 = vrcp.f32 %v729_v16  ;;  %v730_v23 = vadd.f32 1.0, %v5130_v18  ;;  %v5866_v24 = vadd.f32 %v5828_v53, %v536_v21  ;;  %v4267_v25 = vpop.f32.mrb[10].mxu0 }
  0xfa   : > { %5143 = vrcp.f32 %v727_v19  ;;  %v728_v26 = vadd.f32 1.0, %v5132_v22  ;;  %v3977_v27 = vmul.f32 -1.442695, %v5863_v20  ;;  %v5870_v28 = vadd.f32 %v4267_v25, %v5828_v53  ;;  %v539_v29 = vpop.f32.mrb[11].mxu0 }
  0xfb   : > { %5145 = vrcp.f32 %v730_v23  ;;  %v3975_v30 = vmul.f32 -1.442695, %v5866_v24  ;;  %v5874_v31 = vadd.f32 %v5828_v53, %v539_v29 }
  0xfc   : > { %5147 = vrcp.f32 %v728_v26  ;;  %v3978_v32 = vmul.f32 -1.442695, %v5870_v28 }
  0xfd   : > { %5149 = vpow2.f32 %v3977_v27  ;;  %v3976_v33 = vmul.f32 -1.442695, %v5874_v31 }
  0xfe   : > { %v5134_v34 = vpop.eup %5133  ;;  %5151 = vpow2.f32 %v3975_v30 }
  0xff   : > { %v5136_v35 = vpop.eup %5135  ;;  %v733_v36 = vadd.f32 1.0, %v5134_v34  ;;  %5153 = vpow2.f32 %v3978_v32  ;;  %v4270_v37 = vpop.f32.mrb[12].mxu0 }
 0x100   : > { %v5138_v38 = vpop.eup %5137  ;;  %v731_v39 = vadd.f32 1.0, %v5136_v35  ;;  %5155 = vpow2.f32 %v3976_v33  ;;  %v5879_v40 = vadd.f32 %v4270_v37, %v5828_v53  ;;  %v552_v41 = vpop.f32.mrb[13].mxu0 }
 0x101   : > { %v5140_v42 = vpop.eup %5139  ;;  %5157 = vrcp.f32 %v733_v36  ;;  %v734_v43 = vadd.f32 1.0, %v5138_v38  ;;  %v5882_v44 = vadd.f32 %v5828_v53, %v552_v41  ;;  %v4271_v45 = vpop.f32.mrb[14].mxu0 }
 0x102   : > { %5159 = vrcp.f32 %v731_v39  ;;  %v732_v46 = vadd.f32 1.0, %v5140_v42  ;;  %v3981_v47 = vmul.f32 -1.442695, %v5879_v40  ;;  %v5886_v48 = vadd.f32 %v4271_v45, %v5828_v53  ;;  %v555_v49 = vpop.f32.mrb[15].mxu0 }
 0x103   : > { %v5142_v50 = vpop.eup %5141  ;;  %5161 = vrcp.f32 %v734_v43  ;;  %v3979_v51 = vmul.f32 -1.442695, %v5882_v44  ;;  %v5890_v54 = vadd.f32 %v5828_v53, %v555_v49 }
 0x104   : > { %v5144_v56 = vpop.eup %5143  ;;  %5163 = vrcp.f32 %v732_v46  ;;  %v3982_v58 = vmul.f32 -1.442695, %v5886_v48  ;;  %v825_v0 = vmul.f32 %v5142_v50, %v5831_v55 }
 0x105   : > { %v5146_v59 = vpop.eup %5145  ;;  %5165 = vpow2.f32 %v3981_v47  ;;  %v3980_v61 = vmul.f32 -1.442695, %v5890_v54  ;;  %v823_v4 = vmul.f32 %v5144_v56, %v5834_v57 }
 0x106   : > { %v5148_v62 = vpop.eup %5147  ;;  %v826_v1 = vmul.f32 %v5146_v59, %v5838_v60  ;;  %5167 = vpow2.f32 %v3979_v51 }
 0x107   : > { %v5150_v2 = vpop.eup %5149  ;;  %v824_v6 = vmul.f32 %v5148_v62, %v5842_v63  ;;  %5169 = vpow2.f32 %v3982_v58  ;;  %v4274_v7 = vpop.f32.mrb[16].mxu0 }
 0x108   : > { %v5152_v9 = vpop.eup %5151  ;;  %v5898_v10 = vpack.c.bf16 %v826_v1, %v825_v0  ;;  %v737_v12 = vadd.f32 1.0, %v5150_v2  ;;  %5171 = vpow2.f32 %v3980_v61  ;;  %v5901_v13 = vadd.f32 %v4274_v7, %v5828_v53  ;;  %v568_v14 = vpop.f32.mrb[17].mxu0 }
 0x109   : > { %v5154_v55 = vpop.eup %5153  ;;  %v5903_v15 = vpack.c.bf16 %v824_v6, %v823_v4  ;;  %v735_v60 = vadd.f32 1.0, %v5152_v9  ;;  %v5906_v16 = vadd.f32 %v5828_v53, %v568_v14  ;;  %v4275_v57 = vpop.f32.mrb[18].mxu0 }
 0x10a   : > { %v5156_v63 = vpop.eup %5155  ;;  %5173 = vrcp.f32 %v737_v12  ;;  %v738_v17 = vadd.f32 1.0, %v5154_v55  ;;  %v3985_v18 = vmul.f32 -1.442695, %v5901_v13  ;;  %v5910_v19 = vadd.f32 %v4275_v57, %v5828_v53  ;;  %v571_v21 = vpop.f32.mrb[19].mxu0 }
 0x10b   : > { %v5158_v22 = vpop.eup %5157  ;;  %5175 = vrcp.f32 %v735_v60  ;;  %v736_v23 = vadd.f32 1.0, %v5156_v63  ;;  %v3983_v25 = vmul.f32 -1.442695, %v5906_v16  ;;  %v5914_v26 = vadd.f32 %v5828_v53, %v571_v21  ;;  %4290 = vmatprep.mubr.msk.bf16.mxu0 %vm417_vm1, %v5903_v15 }
 0x10c   : > { %v5160_v27 = vpop.eup %5159  ;;  %5177 = vrcp.f32 %v738_v17  ;;  %v3986_v29 = vmul.f32 -1.442695, %v5910_v19  ;;  %4291 = vmatmul.mubr.msk.bf16.vlgmr.msra.gmra.mrb[32].mxu0 %vm417_vm1, %v5898_v10  ;;  %v829_v34 = vmul.f32 %v5158_v22, %v5847_v3 }
 0x10d   : > { %v5162_v30 = vpop.eup %5161  ;;  %5179 = vrcp.f32 %v736_v23  ;;  %v3984_v32 = vmul.f32 -1.442695, %v5914_v26  ;;  %v827_v37 = vmul.f32 %v5160_v27, %v5850_v5 }
 0x10e   : > { %v5164_v33 = vpop.eup %5163  ;;  %v830_v35 = vmul.f32 %v5162_v30, %v5854_v8  ;;  %5181 = vpow2.f32 %v3985_v18 }
 0x10f   : > { %v5166_v36 = vpop.eup %5165  ;;  %v828_v38 = vmul.f32 %v5164_v33, %v5858_v11  ;;  %5183 = vpow2.f32 %v3983_v25  ;;  %v4278_v39 = vpop.f32.mrb[20].mxu0 }
 0x110   : > { %v5168_v41 = vpop.eup %5167  ;;  %v5926_v42 = vpack.c.bf16 %v830_v35, %v829_v34  ;;  %v741_v43 = vadd.f32 1.0, %v5166_v36  ;;  %5185 = vpow2.f32 %v3986_v29  ;;  %v5929_v45 = vadd.f32 %v4278_v39, %v5828_v53  ;;  %v584_v46 = vpop.f32.mrb[21].mxu0 }
 0x111   : > { %v5170_v3 = vpop.eup %5169  ;;  %v5931_v47 = vpack.c.bf16 %v828_v38, %v827_v37  ;;  %v739_v8 = vadd.f32 1.0, %v5168_v41  ;;  %5187 = vpow2.f32 %v3984_v32  ;;  %v5934_v5 = vadd.f32 %v5828_v53, %v584_v46  ;;  %v4279_v11 = vpop.f32.mrb[22].mxu0 }
 0x112   : > { %v5172_v49 = vpop.eup %5171  ;;  %5189 = vrcp.f32 %v741_v43  ;;  %v742_v50 = vadd.f32 1.0, %v5170_v3  ;;  %v3989_v51 = vmul.f32 -1.442695, %v5929_v45  ;;  %v5938_v56 = vadd.f32 %v4279_v11, %v5828_v53  ;;  %v587_v58 = vpop.f32.mrb[23].mxu0 }
 0x113   : > { %5191 = vrcp.f32 %v739_v8  ;;  %v740_v59 = vadd.f32 1.0, %v5172_v49  ;;  %v3987_v61 = vmul.f32 -1.442695, %v5934_v5  ;;  %v5942_v62 = vadd.f32 %v5828_v53, %v587_v58  ;;  %4294 = vmatprep.mubr.msk.bf16.mxu0 %vm417_vm1, %v5931_v47 }
 0x114   : > { %v5174_v0 = vpop.eup %5173  ;;  %5193 = vrcp.f32 %v742_v50  ;;  %v3990_v1 = vmul.f32 -1.442695, %v5938_v56  ;;  %4295 = vmatmul.mubr.msk.bf16.gmra.mrb[36].mxu0 %vm417_vm1, %v5926_v42 }
 0x115   : > { %v5176_v2 = vpop.eup %5175  ;;  %v833_v4 = vmul.f32 %v5174_v0, %v5863_v20  ;;  %5195 = vrcp.f32 %v740_v59  ;;  %v3988_v6 = vmul.f32 -1.442695, %v5942_v62 }
 0x116   : > { %v5178_v7 = vpop.eup %5177  ;;  %v831_v9 = vmul.f32 %v5176_v2, %v5866_v24  ;;  %5197 = vpow2.f32 %v3989_v51 }
 0x117   : > { %v5180_v12 = vpop.eup %5179  ;;  %v834_v14 = vmul.f32 %v5178_v7, %v5870_v28  ;;  %5199 = vpow2.f32 %v3987_v61  ;;  %v4282_v55 = vpop.f32.mrb[24].mxu0 }
 0x118   : > { %v5182_v60 = vpop.eup %5181  ;;  %v832_v57 = vmul.f32 %v5180_v12, %v5874_v31  ;;  %5201 = vpow2.f32 %v3990_v1  ;;  %v5955_v63 = vadd.f32 %v4282_v55, %v5828_v53  ;;  %v600_v20 = vpop.f32.mrb[25].mxu0 }
 0x119   : > { %v5184_v17 = vpop.eup %5183  ;;  %v5957_v18 = vpack.c.bf16 %v834_v14, %v833_v4  ;;  %v745_v21 = vadd.f32 1.0, %v5182_v60  ;;  %5203 = vpow2.f32 %v3988_v6  ;;  %v5960_v24 = vadd.f32 %v5828_v53, %v600_v20  ;;  %v4283_v22 = vpop.f32.mrb[26].mxu0 }
 0x11a   : > { %v5186_v28 = vpop.eup %5185  ;;  %v5962_v23 = vpack.c.bf16 %v832_v57, %v831_v9  ;;  %v743_v25 = vadd.f32 1.0, %v5184_v17  ;;  %v5965_v31 = vadd.f32 %v4283_v22, %v5828_v53  ;;  %v603_v27 = vpop.f32.mrb[27].mxu0  ;;  %v3993_v32 = vmul.f32 -1.442695, %v5955_v63 }
 0x11b   : > { %v5188_v29 = vpop.eup %5187  ;;  %5205 = vrcp.f32 %v745_v21  ;;  %v746_v30 = vadd.f32 1.0, %v5186_v28  ;;  %v5969_v33 = vadd.f32 %v5828_v53, %v603_v27  ;;  %v3991_v36 = vmul.f32 -1.442695, %v5960_v24 }
 0x11c   : > { %v5190_v34 = vpop.eup %5189  ;;  %5207 = vrcp.f32 %v743_v25  ;;  %v744_v35 = vadd.f32 1.0, %v5188_v29  ;;  %4298 = vmatprep.mubr.msk.bf16.mxu0 %vm417_vm1, %v5962_v23  ;;  %v3994_v39 = vmul.f32 -1.442695, %v5965_v31 }
 0x11d   : > { %v5192_v37 = vpop.eup %5191  ;;  %v837_v38 = vmul.f32 %v5190_v34, %v5879_v40  ;;  %5209 = vrcp.f32 %v746_v30  ;;  %4299 = vmatmul.mubr.msk.bf16.gmra.mrb[40].mxu0 %vm417_vm1, %v5957_v18  ;;  %v3992_v46 = vmul.f32 -1.442695, %v5969_v33 }
 0x11e   : > { %v5194_v41 = vpop.eup %5193  ;;  %v835_v43 = vmul.f32 %v5192_v37, %v5882_v44  ;;  %5211 = vrcp.f32 %v744_v35 }
 0x11f   : > { %v5196_v3 = vpop.eup %5195  ;;  %v838_v8 = vmul.f32 %v5194_v41, %v5886_v48  ;;  %5213 = vpow2.f32 %v3993_v32  ;;  %v4286_v11 = vpop.f32.mrb[28].mxu0 }
 0x120   : > { %v5198_v49 = vpop.eup %5197  ;;  %v836_v40 = vmul.f32 %v5196_v3, %v5890_v54  ;;  %5215 = vpow2.f32 %v3991_v36  ;;  %v5983_v50 = vadd.f32 %v4286_v11, %v5828_v53  ;;  %v616_v51 = vpop.f32.mrb[29].mxu0 }
 0x121   : > { %v5200_v58 = vpop.eup %5199  ;;  %v5985_v59 = vpack.c.bf16 %v838_v8, %v837_v38  ;;  %v749_v44 = vadd.f32 1.0, %v5198_v49  ;;  %5217 = vpow2.f32 %v3994_v39  ;;  %v5988_v61 = vadd.f32 %v5828_v53, %v616_v51  ;;  %v4287_v0 = vpop.f32.mrb[30].mxu0 }
 0x122   : > { %v5202_v48 = vpop.eup %5201  ;;  %v5990_v1 = vpack.c.bf16 %v836_v40, %v835_v43  ;;  %v747_v2 = vadd.f32 1.0, %v5200_v58  ;;  %5219 = vpow2.f32 %v3992_v46  ;;  %v619_v54 = vpop.f32.mrb[31].mxu0  ;;  %v3997_v7 = vmul.f32 -1.442695, %v5983_v50 }
 0x123   : > { %v5204_v4 = vpop.eup %5203  ;;  %5221 = vrcp.f32 %v749_v44  ;;  %v750_v6 = vadd.f32 1.0, %v5202_v48  ;;  %v5994_v9 = vadd.f32 %v4287_v0, %v5828_v53  ;;  %v3995_v14 = vmul.f32 -1.442695, %v5988_v61 }
 0x124   : > { %5223 = vrcp.f32 %v747_v2  ;;  %v748_v12 = vadd.f32 1.0, %v5204_v4  ;;  %v5998_v55 = vadd.f32 %v5828_v53, %v619_v54  ;;  %4302 = vmatprep.mubr.msk.bf16.mxu0 %vm417_vm1, %v5990_v1 }
 0x125   : > { %v5206_v60 = vpop.eup %5205  ;;  %5225 = vrcp.f32 %v750_v6  ;;  %v3998_v57 = vmul.f32 -1.442695, %v5994_v9  ;;  %4303 = vmatmul.mubr.msk.bf16.gmra.mrb[44].mxu0 %vm417_vm1, %v5985_v59 }
 0x126   : > { %v5208_v20 = vpop.eup %5207  ;;  %v841_v17 = vmul.f32 %v5206_v60, %v5901_v13  ;;  %5227 = vrcp.f32 %v748_v12  ;;  %v3996_v21 = vmul.f32 -1.442695, %v5998_v55 }
 0x127   : > { %v5210_v22 = vpop.eup %5209  ;;  %v839_v53 = vmul.f32 %v5208_v20, %v5906_v16  ;;  %5229 = vpow2.f32 %v3997_v7 }
 0x128   : > { %v5212_v28 = vpop.eup %5211  ;;  %v842_v25 = vmul.f32 %v5210_v22, %v5910_v19  ;;  %5231 = vpow2.f32 %v3995_v14  ;;  %v3216_v19 = vsel %vm466_vm0, %v5821_v52, 0 }
 0x129   : > { %v5214_v27 = vpop.eup %5213  ;;  %v840_v29 = vmul.f32 %v5212_v28, %v5914_v26  ;;  %5233 = vpow2.f32 %v3998_v57 }
 0x12a   : > { %v5216_v30 = vpop.eup %5215  ;;  %v6010_v32 = vpack.c.bf16 %v842_v25, %v841_v17  ;;  %v753_v34 = vadd.f32 1.0, %v5214_v27  ;;  %5235 = vpow2.f32 %v3996_v21 }
 0x12b   : > { %v5218_v13 = vpop.eup %5217  ;;  %v751_v35 = vadd.f32 1.0, %v5216_v30  ;;  %v6012_v36 = vpack.c.bf16 %v840_v29, %v839_v53 }
 0x12c   : > { %v5220_v37 = vpop.eup %5219  ;;  %5237 = vrcp.f32 %v753_v34  ;;  %v754_v16 = vadd.f32 1.0, %v5218_v13  ;;  %v6140_v13 = vld [vmem:[%s7576_s4] ss:$0 sm:$0xff] }
 0x12d   : > { %v5222_v38 = vpop.eup %5221  ;;  %5239 = vrcp.f32 %v751_v35  ;;  %v752_v39 = vadd.f32 1.0, %v5220_v37  ;;  %4306 = vmatprep.mubr.msk.bf16.mxu1 %vm417_vm1, %v6012_v36 }
 0x12e   : > { %v5224_v26 = vpop.eup %5223  ;;  %v845_v41 = vmul.f32 %v5222_v38, %v5929_v45  ;;  %5241 = vrcp.f32 %v754_v16  ;;  %4307 = vmatmul.mubr.msk.bf16.vlgmr.msra.gmra.mrb[0].mxu1 %vm417_vm1, %v6010_v32 }
 0x12f   : > { %v5226_v43 = vpop.eup %5225  ;;  %v843_v46 = vmul.f32 %v5224_v26, %v5934_v5  ;;  %5243 = vrcp.f32 %v752_v39  ;;  %4359 = vmatpush3.bf16.msra.mxu1 %v3216_v19 }
 0x130   : > { %v5228_v3 = vpop.eup %5227  ;;  %v846_v52 = vmul.f32 %v5226_v43, %v5938_v56 }
 0x131   : > { %v5230_v8 = vpop.eup %5229  ;;  %v844_v11 = vmul.f32 %v5228_v3, %v5942_v62 }
 0x132   : > { %v5232_v49 = vpop.eup %5231  ;;  %v866_v40 = vpack.c.bf16 %v846_v52, %v845_v41  ;;  %v757_v51 = vadd.f32 1.0, %v5230_v8 }
 0x133   : > { %v5234_v58 = vpop.eup %5233  ;;  %v865_v45 = vpack.c.bf16 %v844_v11, %v843_v46  ;;  %v755_v44 = vadd.f32 1.0, %v5232_v49 }
 0x134   : > { %v5236_v0 = vpop.eup %5235  ;;  %5245 = vrcp.f32 %v757_v51  ;;  %v758_v48 = vadd.f32 1.0, %v5234_v58 }
 0x135   : > { %5247 = vrcp.f32 %v755_v44  ;;  %v756_v2 = vadd.f32 1.0, %v5236_v0  ;;  %4310 = vmatprep.mubr.msk.bf16.mxu1 %vm417_vm1, %v865_v45 }
 0x136   : > { %v5238_v5 = vpop.eup %5237  ;;  %5249 = vrcp.f32 %v758_v48  ;;  %4311 = vmatmul.mubr.msk.bf16.gmra.mrb[4].mxu1 %vm417_vm1, %v866_v40 }
 0x137   : > { %v5240_v56 = vpop.eup %5239  ;;  %v849_v62 = vmul.f32 %v5238_v5, %v5955_v63  ;;  %5251 = vrcp.f32 %v756_v2 }
 0x138   : > { %v5242_v54 = vpop.eup %5241  ;;  %v847_v4 = vmul.f32 %v5240_v56, %v5960_v24 }
 0x139   : > { %v5244_v6 = vpop.eup %5243  ;;  %v850_v7 = vmul.f32 %v5242_v54, %v5965_v31 }
 0x13a   : > { %v848_v12 = vmul.f32 %v5244_v6, %v5969_v33 }
 0x13b   : > { %v6030_v14 = vpack.c.bf16 %v850_v7, %v849_v62 }
 0x13c   : > { %v867_v60 = vpack.c.bf16 %v848_v12, %v847_v4 }
 0x13e   : > { %v5246_v57 = vpop.eup %5245  ;;  %4314 = vmatprep.mubr.msk.bf16.mxu1 %vm417_vm1, %v867_v60 }
 0x13f   : > { %v5248_v20 = vpop.eup %5247  ;;  %v853_v17 = vmul.f32 %v5246_v57, %v5983_v50  ;;  %4315 = vmatmul.mubr.msk.bf16.gmra.mrb[8].mxu1 %vm417_vm1, %v6030_v14 }
 0x140   : > { %v5250_v63 = vpop.eup %5249  ;;  %v851_v24 = vmul.f32 %v5248_v20, %v5988_v61 }
 0x141   : > { %v5252_v21 = vpop.eup %5251  ;;  %v854_v31 = vmul.f32 %v5250_v63, %v5994_v9 }
 0x142   : > { %v852_v33 = vmul.f32 %v5252_v21, %v5998_v55 }
 0x143   : > { %v6039_v22 = vpack.c.bf16 %v854_v31, %v853_v17 }
 0x144   : > { %v6041_v53 = vpack.c.bf16 %v852_v33, %v851_v24 }
 0x146   : > { %4318 = vmatprep.mubr.msk.bf16.mxu1 %vm417_vm1, %v6041_v53 }
 0x147   : > { %4319 = vmatmul.mubr.msk.bf16.gmra.mrb[12].mxu1 %vm417_vm1, %v6039_v22 }
 0x148   : > { %4360 = vmatprep.mubr.msk.bf16.mxu1 %vm417_vm1, %v5903_v15 }
 0x14f   : > { %4361 = vmatmul.mubr.msk.bf16.vlgmr.msra.gmra.mrb[16].mxu1 %vm417_vm1, %v5898_v10  ;;  %v5677_v10 = vmov 0.0  }
 0x150   : > { %4364 = vmatprep.mubr.msk.bf16.mxu1 %vm417_vm1, %v5931_v47  ;;  %1323 = vst.msk [vmem:[#allocation2 + $0x30] sm:$0xff] %vm1315_vm2, %v5677_v10  ;;  %1324 = vst.msk [vmem:[#allocation2 + $0x38] sm:$0xff] %vm1315_vm2, %v5677_v10 }
 0x151   : > { %1316 = vst.msk [vmem:[#allocation2] sm:$0xff] %vm1315_vm2, %v5677_v10  ;;  %1317 = vst.msk [vmem:[#allocation2 + $0x8] sm:$0xff] %vm1315_vm2, %v5677_v10 }
 0x152   : > { %1320 = vst.msk [vmem:[#allocation2 + $0x18] sm:$0xff] %vm1315_vm2, %v5677_v10  ;;  %1321 = vst.msk [vmem:[#allocation2 + $0x20] sm:$0xff] %vm1315_vm2, %v5677_v10 }
 0x153   : > { %1326 = vst.msk [vmem:[#allocation2 + $0x48] sm:$0xff] %vm1315_vm2, %v5677_v10  ;;  %1327 = vst.msk [vmem:[#allocation2 + $0x50] sm:$0xff] %vm1315_vm2, %v5677_v10 }
 0x154   : > { %1329 = vst.msk [vmem:[#allocation2 + $0x60] sm:$0xff] %vm1315_vm2, %v5677_v10  ;;  %1330 = vst.msk [vmem:[#allocation2 + $0x68] sm:$0xff] %vm1315_vm2, %v5677_v10 }
 0x155   : > { %1332 = vst.msk [vmem:[#allocation2 + $0x78] sm:$0xff] %vm1315_vm2, %v5677_v10  ;;  %1333 = vst.msk [vmem:[#allocation2 + $0x80] sm:$0xff] %vm1315_vm2, %v5677_v10 }
 0x156   : > { %1335 = vst.msk [vmem:[#allocation2 + $0x90] sm:$0xff] %vm1315_vm2, %v5677_v10  ;;  %1336 = vst.msk [vmem:[#allocation2 + $0x98] sm:$0xff] %vm1315_vm2, %v5677_v10 }
 0x157   : > { %4365 = vmatmul.mubr.msk.bf16.gmra.mrb[20].mxu1 %vm417_vm1, %v5926_v42  ;;  %1338 = vst.msk [vmem:[#allocation2 + $0xa8] sm:$0xff] %vm1315_vm2, %v5677_v10  ;;  %1339 = vst.msk [vmem:[#allocation2 + $0xb0] sm:$0xff] %vm1315_vm2, %v5677_v10 }
 0x158   : > { %4368 = vmatprep.mubr.msk.bf16.mxu1 %vm417_vm1, %v5962_v23  ;;  %1341 = vst.msk [vmem:[#allocation2 + $0xc0] sm:$0xff] %vm1315_vm2, %v5677_v10  ;;  %1342 = vst.msk [vmem:[#allocation2 + $0xc8] sm:$0xff] %vm1315_vm2, %v5677_v10  ;;  %v1405_v23 = vld [vmem:[#allocation2 + $0x8] sm:$0xff] }
 0x159   : > { %1344 = vst.msk [vmem:[#allocation2 + $0xd8] sm:$0xff] %vm1315_vm2, %v5677_v10  ;;  %1345 = vst.msk [vmem:[#allocation2 + $0xe0] sm:$0xff] %vm1315_vm2, %v5677_v10  ;;  %v1685_v61 = vrot.slane %v1405_v23, 2  ;;  %v1508_v55 = vrot.slane %v1405_v23, 1 }
 0x15a   : > { %1347 = vst.msk [vmem:[#allocation2 + $0xf0] sm:$0xff] %vm1315_vm2, %v5677_v10  ;;  %1348 = vst.msk [vmem:[#allocation2 + $0xf8] sm:$0xff] %vm1315_vm2, %v5677_v10 }
 0x15b   : > { %1350 = vst.msk [vmem:[#allocation2 + $0x108] sm:$0xff] %vm1315_vm2, %v5677_v10  ;;  %1351 = vst.msk [vmem:[#allocation2 + $0x110] sm:$0xff] %vm1315_vm2, %v5677_v10 }
 0x15c   : > { %1353 = vst.msk [vmem:[#allocation2 + $0x120] sm:$0xff] %vm1315_vm2, %v5677_v10  ;;  %1354 = vst.msk [vmem:[#allocation2 + $0x128] sm:$0xff] %vm1315_vm2, %v5677_v10 }
 0x15d   : > { %1356 = vst.msk [vmem:[#allocation2 + $0x138] sm:$0xff] %vm1315_vm2, %v5677_v10  ;;  %1357 = vst.msk [vmem:[#allocation2 + $0x140] sm:$0xff] %vm1315_vm2, %v5677_v10 }
 0x15e   : > { %1359 = vst.msk [vmem:[#allocation2 + $0x150] sm:$0xff] %vm1315_vm2, %v5677_v10  ;;  %1360 = vst.msk [vmem:[#allocation2 + $0x158] sm:$0xff] %vm1315_vm2, %v5677_v10 }
 0x15f   : > { %4369 = vmatmul.mubr.msk.bf16.gmra.mrb[24].mxu1 %vm417_vm1, %v5957_v18  ;;  %1362 = vst.msk [vmem:[#allocation2 + $0x168] sm:$0xff] %vm1315_vm2, %v5677_v10  ;;  %1363 = vst.msk [vmem:[#allocation2 + $0x170] sm:$0xff] %vm1315_vm2, %v5677_v10  ;;  %v1404_v18 = vld [vmem:[#allocation2] sm:$0xff] }
 0x160   : > { %4372 = vmatprep.mubr.msk.bf16.mxu1 %vm417_vm1, %v5990_v1  ;;  %1365 = vst.msk [vmem:[#allocation2 + $0x180] sm:$0xff] %vm1315_vm2, %v5677_v10  ;;  %1366 = vst.msk [vmem:[#allocation2 + $0x188] sm:$0xff] %vm1315_vm2, %v5677_v10  ;;  %v1507_v9 = vrot.slane %v1404_v18, 1 }
 0x161   : > { %1368 = vst.msk [vmem:[#allocation2 + $0x198] sm:$0xff] %vm1315_vm2, %v5677_v10  ;;  %1369 = vst.msk [vmem:[#allocation2 + $0x1a0] sm:$0xff] %vm1315_vm2, %v5677_v10 }
 0x162   : > { %1325 = vst.msk [vmem:[#allocation2 + $0x40] sm:$0x3] %vm1318_vm3, %v5677_v10  ;;  %1319 = vst.msk [vmem:[#allocation2 + $0x10] sm:$0x3] %vm1318_vm3, %v5677_v10  ;;  %v1509_v30 = vsel %vm1506_vm5, %v1507_v9, %v1508_v55 }
 0x163   : > { %1322 = vst.msk [vmem:[#allocation2 + $0x28] sm:$0x3] %vm1318_vm3, %v5677_v10  ;;  %1328 = vst.msk [vmem:[#allocation2 + $0x58] sm:$0x3] %vm1318_vm3, %v5677_v10 }
 0x164   : > { %1331 = vst.msk [vmem:[#allocation2 + $0x70] sm:$0x3] %vm1318_vm3, %v5677_v10  ;;  %1334 = vst.msk [vmem:[#allocation2 + $0x88] sm:$0x3] %vm1318_vm3, %v5677_v10 }
 0x165   : > { %1337 = vst.msk [vmem:[#allocation2 + $0xa0] sm:$0x3] %vm1318_vm3, %v5677_v10  ;;  %1340 = vst.msk [vmem:[#allocation2 + $0xb8] sm:$0x3] %vm1318_vm3, %v5677_v10 }
 0x166   : > { %1343 = vst.msk [vmem:[#allocation2 + $0xd0] sm:$0x3] %vm1318_vm3, %v5677_v10  ;;  %1346 = vst.msk [vmem:[#allocation2 + $0xe8] sm:$0x3] %vm1318_vm3, %v5677_v10 }
 0x167   : > { %4373 = vmatmul.mubr.msk.bf16.gmra.mrb[28].mxu1 %vm417_vm1, %v5985_v59  ;;  %1349 = vst.msk [vmem:[#allocation2 + $0x100] sm:$0x3] %vm1318_vm3, %v5677_v10  ;;  %1352 = vst.msk [vmem:[#allocation2 + $0x118] sm:$0x3] %vm1318_vm3, %v5677_v10  ;;  %v1684_v59 = vrot.slane %v1404_v18, 2 }
 0x168   : > { %4376 = vmatprep.mubr.msk.bf16.mxu1 %vm417_vm1, %v6012_v36  ;;  %1355 = vst.msk [vmem:[#allocation2 + $0x130] sm:$0x3] %vm1318_vm3, %v5677_v10  ;;  %1358 = vst.msk [vmem:[#allocation2 + $0x148] sm:$0x3] %vm1318_vm3, %v5677_v10  ;;  %v1455_v15 = vld [vmem:[#allocation2 + $0x198] sm:$0xff]  ;;  %v1456_v42 = vld [vmem:[#allocation2 + $0x1a0] sm:$0xff] }
 0x169   : > { %1361 = vst.msk [vmem:[#allocation2 + $0x160] sm:$0x3] %vm1318_vm3, %v5677_v10  ;;  %1364 = vst.msk [vmem:[#allocation2 + $0x178] sm:$0x3] %vm1318_vm3, %v5677_v10  ;;  %v4483_v47 = vpack.i.bf16 %v1456_v42, %v1455_v15  ;;  %v1406_v50 = vld [vmem:[#allocation2 + $0x10] sm:$0x3]  ;;  %v1686_v25 = vsel %vm1683_vm4, %v1684_v59, %v1685_v61 }
 0x16a   : > { %1367 = vst.msk [vmem:[#allocation2 + $0x190] sm:$0x3] %vm1318_vm3, %v5677_v10  ;;  %1370 = vst.msk [vmem:[#allocation2 + $0x1a8] sm:$0x3] %vm1318_vm3, %v5677_v10  ;;  %v1687_v1 = vrot.slane %v1406_v50, 2  ;;  %v1510_v28 = vrot.slane %v1406_v50, 1 }
 0x16b   : > { %4484 = vrot.lane.b32.xlu1 %v4483_v47, %s5678_s27 }
 0x16c   : > { %v1688_v27 = vsel %vm1683_vm4, %v1685_v61, %v1687_v1 }
 0x16d   : > { %v4493_v29 = vpack.i.bf16 %v1688_v27, %v1686_v25 }
 0x16f   : > { %4377 = vmatmul.mubr.msk.bf16.gmra.mrb[32].mxu1 %vm417_vm1, %v6010_v32  ;;  %v1511_v32 = vsel %vm1506_vm5, %v1508_v55, %v1510_v28  ;;  %4494 = vrot.lane.b32.xlu1 %v4493_v29, %s5679_s28 }
 0x170   : > { %4380 = vmatprep.mubr.msk.bf16.mxu1 %vm417_vm1, %v865_v45  ;;  %v4488_v34 = vpack.i.bf16 %v1511_v32, %v1509_v30 }
 0x172   : > { %4489 = vrot.lane.b32.xlu0 %v4488_v34, %s5680_s29 }
 0x177   : > { %4381 = vmatmul.mubr.msk.bf16.gmra.mrb[36].mxu1 %vm417_vm1, %v866_v40 }
 0x178   : > { %4384 = vmatprep.mubr.msk.bf16.mxu1 %vm417_vm1, %v867_v60 }
 0x17f   : > { %4385 = vmatmul.mubr.msk.bf16.gmra.mrb[40].mxu1 %vm417_vm1, %v6030_v14 }
 0x180   : > { %4388 = vmatprep.mubr.msk.bf16.mxu1 %vm417_vm1, %v6041_v53 }
 0x187   : > { %4389 = vmatmul.mubr.msk.bf16.gmra.mrb[44].mxu1 %vm417_vm1, %v6039_v22 }
 0x1df   : > { %v4292_v35 = vpop.f32.mrb[32].mxu0 }
 0x1e0   : > { %v6143_v36 = vadd.f32 %v4292_v35, %v6140_v13  ;;  %v964_v37 = vpop.f32.mrb[33].mxu0 }
 0x1e1   : > { %v6146_v16 = vadd.f32 %v6140_v13, %v964_v37  ;;  %v4293_v19 = vpop.f32.mrb[34].mxu0 }
 0x1e2   : > { %v4018_v38 = vmul.f32 -1.442695, %v6143_v36  ;;  %v6150_v39 = vadd.f32 %v4293_v19, %v6140_v13  ;;  %v967_v26 = vpop.f32.mrb[35].mxu0 }
 0x1e3   : > { %v4016_v41 = vmul.f32 -1.442695, %v6146_v16  ;;  %v6154_v43 = vadd.f32 %v6140_v13, %v967_v26 }
 0x1e4   : > { %5253 = vpow2.f32 %v4018_v38  ;;  %v4019_v46 = vmul.f32 -1.442695, %v6150_v39 }
 0x1e5   : > { %5255 = vpow2.f32 %v4016_v41  ;;  %v4017_v3 = vmul.f32 -1.442695, %v6154_v43 }
 0x1e6   : > { %5257 = vpow2.f32 %v4019_v46 }
 0x1e7   : > { %5259 = vpow2.f32 %v4017_v3  ;;  %v4296_v52 = vpop.f32.mrb[36].mxu0 }
 0x1e8   : > { %v6159_v8 = vadd.f32 %v4296_v52, %v6140_v13  ;;  %v980_v11 = vpop.f32.mrb[37].mxu0 }
 0x1e9   : > { %v6162_v49 = vadd.f32 %v6140_v13, %v980_v11  ;;  %v4297_v40 = vpop.f32.mrb[38].mxu0 }
 0x1ea   : > { %v4022_v51 = vmul.f32 -1.442695, %v6159_v8  ;;  %v6166_v58 = vadd.f32 %v4297_v40, %v6140_v13  ;;  %v983_v45 = vpop.f32.mrb[39].mxu0 }
 0x1eb   : > { %v4020_v44 = vmul.f32 -1.442695, %v6162_v49  ;;  %v6170_v0 = vadd.f32 %v6140_v13, %v983_v45 }
 0x1ec   : > { %5261 = vpow2.f32 %v4022_v51  ;;  %v4023_v48 = vmul.f32 -1.442695, %v6166_v58 }
 0x1ed   : > { %5263 = vpow2.f32 %v4020_v44  ;;  %v4021_v2 = vmul.f32 -1.442695, %v6170_v0 }
 0x1ee   : > { %v5254_v5 = vpop.eup %5253  ;;  %5265 = vpow2.f32 %v4023_v48 }
 0x1ef   : > { %v5256_v56 = vpop.eup %5255  ;;  %v1189_v62 = vadd.f32 1.0, %v5254_v5  ;;  %5267 = vpow2.f32 %v4021_v2 }
 0x1f0   : > { %v5258_v54 = vpop.eup %5257  ;;  %v1187_v4 = vadd.f32 1.0, %v5256_v56  ;;  %v4300_v6 = vpop.f32.mrb[40].mxu0 }
 0x1f1   : > { %v5260_v7 = vpop.eup %5259  ;;  %5269 = vrcp.f32 %v1189_v62  ;;  %v1190_v12 = vadd.f32 1.0, %v5258_v54  ;;  %v6175_v14 = vadd.f32 %v4300_v6, %v6140_v13  ;;  %v996_v60 = vpop.f32.mrb[41].mxu0 }
 0x1f2   : > { %5271 = vrcp.f32 %v1187_v4  ;;  %v1188_v57 = vadd.f32 1.0, %v5260_v7  ;;  %v6178_v20 = vadd.f32 %v6140_v13, %v996_v60  ;;  %v4301_v17 = vpop.f32.mrb[42].mxu0 }
 0x1f3   : > { %5273 = vrcp.f32 %v1190_v12  ;;  %v4026_v63 = vmul.f32 -1.442695, %v6175_v14  ;;  %v6182_v24 = vadd.f32 %v4301_v17, %v6140_v13  ;;  %v999_v21 = vpop.f32.mrb[43].mxu0 }
 0x1f4   : > { %5275 = vrcp.f32 %v1188_v57  ;;  %v4024_v31 = vmul.f32 -1.442695, %v6178_v20  ;;  %v6186_v33 = vadd.f32 %v6140_v13, %v999_v21 }
 0x1f5   : > { %5277 = vpow2.f32 %v4026_v63  ;;  %v4027_v22 = vmul.f32 -1.442695, %v6182_v24 }
 0x1f6   : > { %v5262_v53 = vpop.eup %5261  ;;  %5279 = vpow2.f32 %v4024_v31  ;;  %v4025_v10 = vmul.f32 -1.442695, %v6186_v33 }
 0x1f7   : > { %v5264_v15 = vpop.eup %5263  ;;  %v1193_v42 = vadd.f32 1.0, %v5262_v53  ;;  %5281 = vpow2.f32 %v4027_v22 }
 0x1f8   : > { %v5266_v47 = vpop.eup %5265  ;;  %v1191_v18 = vadd.f32 1.0, %v5264_v15  ;;  %5283 = vpow2.f32 %v4025_v10  ;;  %v4304_v23 = vpop.f32.mrb[44].mxu0 }
 0x1f9   : > { %v5268_v50 = vpop.eup %5267  ;;  %5285 = vrcp.f32 %v1193_v42  ;;  %v1194_v59 = vadd.f32 1.0, %v5266_v47  ;;  %v6191_v61 = vadd.f32 %v4304_v23, %v6140_v13  ;;  %v1012_v1 = vpop.f32.mrb[45].mxu0 }
 0x1fa   : > { %5287 = vrcp.f32 %v1191_v18  ;;  %v1192_v9 = vadd.f32 1.0, %v5268_v50  ;;  %v6194_v55 = vadd.f32 %v6140_v13, %v1012_v1  ;;  %v4305_v28 = vpop.f32.mrb[46].mxu0 }
 0x1fb   : > { %v5270_v25 = vpop.eup %5269  ;;  %5289 = vrcp.f32 %v1194_v59  ;;  %v4030_v27 = vmul.f32 -1.442695, %v6191_v61  ;;  %v6198_v29 = vadd.f32 %v4305_v28, %v6140_v13  ;;  %v1015_v30 = vpop.f32.mrb[47].mxu0 }
 0x1fc   : > { %v5272_v32 = vpop.eup %5271  ;;  %v1285_v34 = vmul.f32 %v5270_v25, %v6143_v36  ;;  %5291 = vrcp.f32 %v1192_v9  ;;  %v4028_v35 = vmul.f32 -1.442695, %v6194_v55  ;;  %v6203_v37 = vadd.f32 %v6140_v13, %v1015_v30 }
 0x1fd   : > { %v5274_v19 = vpop.eup %5273  ;;  %v1283_v38 = vmul.f32 %v5272_v32, %v6146_v16  ;;  %5293 = vpow2.f32 %v4030_v27  ;;  %v4031_v26 = vmul.f32 -1.442695, %v6198_v29 }
 0x1fe   : > { %v5276_v41 = vpop.eup %5275  ;;  %1374 = vst.msk [vmem:[#allocation2 + $0x31] sm:$0xff] %vm1315_vm2, %v1285_v34  ;;  %v1286_v46 = vmul.f32 %v5274_v19, %v6150_v39  ;;  %5295 = vpow2.f32 %v4028_v35  ;;  %v4029_v36 = vmul.f32 -1.442695, %v6203_v37 }
 0x1ff   : > { %v5278_v3 = vpop.eup %5277  ;;  %1372 = vst.msk [vmem:[#allocation2 + $0x19] sm:$0xff] %vm1315_vm2, %v1283_v38  ;;  %v1284_v52 = vmul.f32 %v5276_v41, %v6154_v43  ;;  %5297 = vpow2.f32 %v4031_v26 }
 0x200   : > { %v5280_v11 = vpop.eup %5279  ;;  %1375 = vst.msk [vmem:[#allocation2 + $0x39] sm:$0xff] %vm1315_vm2, %v1286_v46  ;;  %v1197_v16 = vadd.f32 1.0, %v5278_v3  ;;  %5299 = vpow2.f32 %v4029_v36 }
 0x201   : > { %v5282_v40 = vpop.eup %5281  ;;  %1373 = vst.msk [vmem:[#allocation2 + $0x21] sm:$0xff] %vm1315_vm2, %v1284_v52  ;;  %v1195_v51 = vadd.f32 1.0, %v5280_v11  ;;  %v4308_v45 = vpop.f32.mrb[0].mxu1 }
 0x202   : > { %v5284_v39 = vpop.eup %5283  ;;  %5301 = vrcp.f32 %v1197_v16  ;;  %v1198_v44 = vadd.f32 1.0, %v5282_v40  ;;  %v6215_v48 = vadd.f32 %v4308_v45, %v6140_v13  ;;  %v1028_v2 = vpop.f32.mrb[1].mxu1 }
 0x203   : > { %v5286_v5 = vpop.eup %5285  ;;  %5303 = vrcp.f32 %v1195_v51  ;;  %v1196_v43 = vadd.f32 1.0, %v5284_v39  ;;  %v6218_v56 = vadd.f32 %v6140_v13, %v1028_v2  ;;  %v4309_v62 = vpop.f32.mrb[2].mxu1 }
 0x204   : > { %v5288_v54 = vpop.eup %5287  ;;  %v1289_v4 = vmul.f32 %v5286_v5, %v6159_v8  ;;  %5305 = vrcp.f32 %v1198_v44  ;;  %v4034_v6 = vmul.f32 -1.442695, %v6215_v48  ;;  %v6222_v7 = vpop.f32.mrb[3].mxu1  ;;  %v6249_v46 = vadd.f32 %v4309_v62, %v6140_v13 }
 0x205   : > { %v5290_v12 = vpop.eup %5289  ;;  %v1287_v60 = vmul.f32 %v5288_v54, %v6162_v49  ;;  %5307 = vrcp.f32 %v1196_v43  ;;  %v1410_v57 = vld [vmem:[#allocation2 + $0x30] sm:$0xff]  ;;  %v4032_v17 = vmul.f32 -1.442695, %v6218_v56 }
 0x206   : > { %v5292_v63 = vpop.eup %5291  ;;  %1378 = vst.msk [vmem:[#allocation2 + $0x61] sm:$0xff] %vm1315_vm2, %v1289_v4  ;;  %v1290_v21 = vmul.f32 %v5290_v12, %v6166_v58  ;;  %5309 = vpow2.f32 %v4034_v6  ;;  %v1517_v10 = vrot.slane %v1410_v57, 1  ;;  %v6242_v34 = vld [vmem:[#allocation2 + $0x18] sm:$0xff]  ;;  %v1694_v35 = vrot.slane %v1410_v57, 2 }
 0x207   : > { %v5294_v31 = vpop.eup %5293  ;;  %1376 = vst.msk [vmem:[#allocation2 + $0x49] sm:$0xff] %vm1315_vm2, %v1287_v60  ;;  %v1288_v8 = vmul.f32 %v5292_v63, %v6170_v0  ;;  %v1411_v22 = vld [vmem:[#allocation2 + $0x38] sm:$0xff]  ;;  %v1412_v53 = vld [vmem:[#allocation2 + $0x40] sm:$0x3]  ;;  %5311 = vpow2.f32 %v4032_v17  ;;  %v4035_v43 = vmul.f32 -1.442695, %v6249_v46 }
 0x208   : > { %v5296_v49 = vpop.eup %5295  ;;  %1379 = vst.msk [vmem:[#allocation2 + $0x69] sm:$0xff] %vm1315_vm2, %v1290_v21  ;;  %v1201_v15 = vadd.f32 1.0, %v5294_v31  ;;  %v4503_v42 = vpack.i.bf16 %v1411_v22, %v1410_v57  ;;  %v1518_v47 = vrot.slane %v1411_v22, 1  ;;  %v1520_v23 = vrot.slane %v1412_v53, 1  ;;  %v6232_v50 = vld [vmem:[#allocation2 + $0x20] sm:$0xff] }
 0x209   : > { %v5298_v18 = vpop.eup %5297  ;;  %1377 = vst.msk [vmem:[#allocation2 + $0x51] sm:$0xff] %vm1315_vm2, %v1288_v8  ;;  %v1199_v58 = vadd.f32 1.0, %v5296_v49  ;;  %v1695_v59 = vrot.slane %v1411_v22, 2  ;;  %v6234_v1 = vpop.f32.mrb[4].mxu1  ;;  %v1697_v25 = vrot.slane %v1412_v53, 2  ;;  %v4508_v41 = vpack.i.bf16 %v6232_v50, %v6242_v34 }
 0x20a   : > { %v5300_v0 = vpop.eup %5299  ;;  %5313 = vrcp.f32 %v1201_v15  ;;  %v1202_v9 = vadd.f32 1.0, %v5298_v18  ;;  %4504 = vrot.lane.b32.xlu0 %v4503_v42, %s5678_s27  ;;  %4499 = vrot.lane.b32.xlu1 %v4503_v42, %s5681_s12  ;;  %v1519_v28 = vsel %vm1506_vm5, %v1517_v10, %v1518_v47  ;;  %v6239_v27 = vpop.f32.mrb[5].mxu1  ;;  %v1521_v32 = vsel %vm1506_vm5, %v1518_v47, %v1520_v23  ;;  %v1409_v45 = vld [vmem:[#allocation2 + $0x28] sm:$0x3] }
 0x20b   : > { %5315 = vrcp.f32 %v1199_v58  ;;  %v1200_v30 = vadd.f32 1.0, %v5300_v0  ;;  %v6244_v19 = vpop.f32.mrb[6].mxu1  ;;  %v4513_v26 = vpack.i.bf16 %v1521_v32, %v1519_v28  ;;  %v1696_v11 = vsel %vm1683_vm4, %v1694_v35, %v1695_v59 }
 0x20c   : > { %v5302_v38 = vpop.eup %5301  ;;  %5317 = vrcp.f32 %v1202_v9  ;;  %v6251_v36 = vpop.f32.mrb[7].mxu1  ;;  %v1698_v16 = vsel %vm1683_vm4, %v1695_v59, %v1697_v25  ;;  %v1690_v54 = vrot.slane %v6232_v50, 2  ;;  %v1692_v4 = vrot.slane %v1409_v45, 2 }
 0x20d   : > { %v5304_v3 = vpop.eup %5303  ;;  %v1293_v52 = vmul.f32 %v5302_v38, %v6175_v14  ;;  %5319 = vrcp.f32 %v1200_v30  ;;  %v6263_v14 = vadd.f32 %v6140_v13, %v6222_v7  ;;  %v4518_v5 = vpack.i.bf16 %v1698_v16, %v1696_v11 }
 0x20e   : > { %v5306_v40 = vpop.eup %5305  ;;  %v1291_v51 = vmul.f32 %v5304_v3, %v6178_v20  ;;  %4514 = vrot.lane.b32.xlu1 %v4513_v26, %s5682_s15  ;;  %4509 = vrot.lane.b32.xlu0 %v4508_v41, %s5681_s12  ;;  %5321 = vpow2.f32 %v4035_v43  ;;  %v1689_v7 = vrot.slane %v6242_v34, 2  ;;  %v1513_v17 = vrot.slane %v6232_v50, 1  ;;  %v6313_v41 = vld [vmem:[#allocation2 + $0x48] sm:$0xff] }
 0x20f   : > { %v5308_v39 = vpop.eup %5307  ;;  %1382 = vst.msk [vmem:[#allocation2 + $0x91] sm:$0xff] %vm1315_vm2, %v1293_v52  ;;  %v1294_v44 = vmul.f32 %v5306_v40, %v6182_v24  ;;  %v4033_v12 = vmul.f32 -1.442695, %v6263_v14  ;;  %v1515_v63 = vrot.slane %v1409_v45, 1  ;;  %v1693_v53 = vsel %vm1683_vm4, %v1690_v54, %v1692_v4  ;;  %v1417_v23 = vld [vmem:[#allocation2 + $0x68] sm:$0xff] }
 0x210   : > { %v5310_v2 = vpop.eup %5309  ;;  %1380 = vst.msk [vmem:[#allocation2 + $0x79] sm:$0xff] %vm1315_vm2, %v1291_v51  ;;  %v1292_v20 = vmul.f32 %v5308_v39, %v6186_v33  ;;  %v1691_v22 = vsel %vm1683_vm4, %v1689_v7, %v1690_v54  ;;  %v1512_v47 = vrot.slane %v6242_v34, 1  ;;  %v1418_v59 = vld [vmem:[#allocation2 + $0x70] sm:$0x3]  ;;  %v6309_v34 = vadd.f32 %v6234_v1, %v6140_v13  ;;  %v1415_v7 = vld [vmem:[#allocation2 + $0x58] sm:$0x3] }
 0x211   : > { %v5312_v62 = vpop.eup %5311  ;;  %1383 = vst.msk [vmem:[#allocation2 + $0x99] sm:$0xff] %vm1315_vm2, %v1294_v44  ;;  %v1205_v6 = vadd.f32 1.0, %v5310_v2  ;;  %v4548_v58 = vpack.i.bf16 %v1693_v53, %v1691_v22  ;;  %v1516_v50 = vsel %vm1506_vm5, %v1513_v17, %v1515_v63  ;;  %v6303_v9 = vld [vmem:[#allocation2 + $0x50] sm:$0xff]  ;;  %v1530_v52 = vrot.slane %v1418_v59, 1 }
 0x212   : > { %1381 = vst.msk [vmem:[#allocation2 + $0x81] sm:$0xff] %vm1315_vm2, %v1292_v20  ;;  %4519 = vrot.lane.b32.xlu1 %v4518_v5, %s5683_s16  ;;  %4524 = vrot.lane.b32.xlu0 %v4513_v26, %s5684_s17  ;;  %v1203_v24 = vadd.f32 1.0, %v5312_v62  ;;  %v6273_v33 = vpop.f32.mrb[8].mxu1  ;;  %v6317_v11 = vadd.f32 %v6140_v13, %v6239_v27  ;;  %v4573_v1 = vpack.i.bf16 %v6303_v9, %v6313_v41  ;;  %v4038_v45 = vmul.f32 -1.442695, %v6309_v34 }
 0x213   : > { %5323 = vrcp.f32 %v1205_v6  ;;  %v6277_v60 = vpop.f32.mrb[9].mxu1  ;;  %v6333_v20 = vadd.f32 %v6244_v19, %v6140_v13  ;;  %v1705_v43 = vrot.slane %v1417_v23, 2  ;;  %v1707_v62 = vrot.slane %v1418_v59, 2 }
 0x214   : > { %v5314_v57 = vpop.eup %5313  ;;  %5325 = vrcp.f32 %v1203_v24  ;;  %v6280_v21 = vpop.f32.mrb[10].mxu1  ;;  %v4036_v2 = vmul.f32 -1.442695, %v6317_v11  ;;  %v1525_v63 = vrot.slane %v1415_v7, 1  ;;  %v1522_v53 = vrot.slane %v6313_v41, 1 }
 0x215   : > { %v5316_v31 = vpop.eup %5315  ;;  %v1297_v8 = vmul.f32 %v5314_v57, %v6191_v61  ;;  %5327 = vpow2.f32 %v4033_v12  ;;  %v6285_v10 = vpop.f32.mrb[11].mxu1  ;;  %v4039_v54 = vmul.f32 -1.442695, %v6333_v20  ;;  %v1708_v24 = vsel %vm1683_vm4, %v1705_v43, %v1707_v62 }
 0x216   : > { %v5318_v49 = vpop.eup %5317  ;;  %v1295_v15 = vmul.f32 %v5316_v31, %v6194_v55  ;;  %4534 = vrot.lane.b32.xlu1 %v4513_v26, %s5680_s29  ;;  %4529 = vrot.lane.b32.xlu0 %v4518_v5, %s5685_s18  ;;  %v1514_v55 = vsel %vm1506_vm5, %v1512_v47, %v1513_v17  ;;  %v1523_v57 = vrot.slane %v6303_v9, 1  ;;  %v6354_v31 = vadd.f32 %v6273_v33, %v6140_v13 }
 0x217   : > { %v5320_v42 = vpop.eup %5319  ;;  %1386 = vst.msk [vmem:[#allocation2 + $0xc1] sm:$0xff] %vm1315_vm2, %v1297_v8  ;;  %v1298_v61 = vmul.f32 %v5318_v49, %v6198_v29  ;;  %v1416_v29 = vld [vmem:[#allocation2 + $0x60] sm:$0xff]  ;;  %v4543_v32 = vpack.i.bf16 %v1516_v50, %v1514_v55 }
 0x218   : > { %1384 = vst.msk [vmem:[#allocation2 + $0xa9] sm:$0xff] %vm1315_vm2, %v1295_v15  ;;  %v1296_v18 = vmul.f32 %v5320_v42, %v6203_v37  ;;  %v1528_v37 = vrot.slane %v1417_v23, 1  ;;  %v5322_v25 = vpop.eup %5321  ;;  %v4563_v30 = vpack.i.bf16 %v1417_v23, %v1416_v29  ;;  %v1527_v3 = vrot.slane %v1416_v29, 1 }
 0x219   : > { %1387 = vst.msk [vmem:[#allocation2 + $0xc9] sm:$0xff] %vm1315_vm2, %v1298_v61  ;;  %v1206_v26 = vadd.f32 1.0, %v5322_v25  ;;  %v1704_v4 = vrot.slane %v1416_v29, 2  ;;  %v4042_v42 = vmul.f32 -1.442695, %v6354_v31  ;;  %v1524_v33 = vsel %vm1506_vm5, %v1522_v53, %v1523_v57 }
 0x21a   : > { %1385 = vst.msk [vmem:[#allocation2 + $0xb1] sm:$0xff] %vm1315_vm2, %v1296_v18  ;;  %4539 = vrot.lane.b32.xlu0 %v4518_v5, %s5679_s28  ;;  %4549 = vrot.lane.b32.xlu1 %v4548_v58, %s5679_s28  ;;  %v6301_v0 = vpop.f32.mrb[12].mxu1  ;;  %v1529_v27 = vsel %vm1506_vm5, %v1527_v3, %v1528_v37  ;;  %v6337_v5 = vadd.f32 %v6140_v13, %v6251_v36 }
 0x21b   : > { %v6305_v28 = vpop.f32.mrb[13].mxu1  ;;  %5329 = vrcp.f32 %v1206_v26  ;;  %v1706_v36 = vsel %vm1683_vm4, %v1704_v4, %v1705_v43  ;;  %v6372_v23 = vadd.f32 %v6280_v21, %v6140_v13 }
 0x21c   : > { %v6311_v35 = vpop.f32.mrb[14].mxu1  ;;  %5331 = vpow2.f32 %v4038_v45  ;;  %v4037_v19 = vmul.f32 -1.442695, %v6337_v5  ;;  %v6349_v12 = vpack.i.bf16 %v1708_v24, %v1706_v36  ;;  %v6407_v45 = vadd.f32 %v6140_v13, %v6305_v28  ;;  %v6427_v24 = vld [vmem:[#allocation2 + $0x80] sm:$0xff] }
 0x21d   : > { %v5324_v38 = vpop.eup %5323  ;;  %v6319_v16 = vpop.f32.mrb[15].mxu1  ;;  %5333 = vpow2.f32 %v4036_v2  ;;  %v4043_v21 = vmul.f32 -1.442695, %v6372_v23  ;;  %v1424_v2 = vld [vmem:[#allocation2 + $0xa0] sm:$0x3] }
 0x21e   : > { %v5326_v40 = vpop.eup %5325  ;;  %v1301_v51 = vmul.f32 %v5324_v38, %v6215_v48  ;;  %4564 = vrot.lane.b32.xlu1 %v4563_v30, %s5681_s12  ;;  %4544 = vrot.lane.b32.xlu0 %v4543_v32, %s5680_s29  ;;  %v1699_v38 = vrot.slane %v6313_v41, 2  ;;  %v1423_v41 = vld [vmem:[#allocation2 + $0x98] sm:$0xff]  ;;  %v6424_v4 = vadd.f32 %v6140_v13, %v6319_v16 }
 0x21f   : > { %v5328_v39 = vpop.eup %5327  ;;  %v1299_v44 = vmul.f32 %v5326_v40, %v6218_v56  ;;  %v1531_v56 = vsel %vm1506_vm5, %v1528_v37, %v1530_v52  ;;  %v6434_v16 = vld [vmem:[#allocation2 + $0x78] sm:$0xff] }
 0x220   : > { %1390 = vst.msk [vmem:[#allocation2 + $0xf1] sm:$0xff] %vm1315_vm2, %v1301_v51  ;;  %v1204_v48 = vadd.f32 1.0, %v5328_v39  ;;  %v4583_v6 = vpack.i.bf16 %v1531_v56, %v1529_v27 }
 0x221   : > { %1388 = vst.msk [vmem:[#allocation2 + $0xd9] sm:$0xff] %vm1315_vm2, %v1299_v44 }
 0x222   : > { %5335 = vrcp.f32 %v1204_v48  ;;  %4574 = vrot.lane.b32.xlu1 %v4573_v1, %s5678_s27  ;;  %4554 = vrot.lane.b32.xlu0 %v4543_v32, %s5682_s15  ;;  %v1702_v32 = vrot.slane %v1415_v7, 2  ;;  %v1538_v7 = vrot.slane %v1423_v41, 1 }
 0x223   : > { %5337 = vpow2.f32 %v4039_v54 }
 0x224   : > { %5339 = vpow2.f32 %v4037_v19  ;;  %v6420_v19 = vadd.f32 %v6311_v35, %v6140_v13 }
 0x225   : > { %v5330_v17 = vpop.eup %5329 }
 0x226   : > { %4584 = vrot.lane.b32.xlu1 %v4583_v6, %s5682_s15  ;;  %4559 = vrot.lane.b32.xlu0 %v4548_v58, %s5683_s16  ;;  %v5332_v8 = vpop.eup %5331  ;;  %v1302_v22 = vmul.f32 %v5330_v17, %v6249_v46  ;;  %v6366_v46 = vadd.f32 %v6140_v13, %v6277_v60  ;;  %v1526_v58 = vsel %vm1506_vm5, %v1523_v57, %v1525_v63  ;;  %v4045_v17 = vmul.f32 -1.442695, %v6424_v4 }
 0x227   : > { %v5334_v49 = vpop.eup %5333  ;;  %v1209_v15 = vadd.f32 1.0, %v5332_v8  ;;  %v6379_v60 = vadd.f32 %v6140_v13, %v6285_v10  ;;  %v6383_v59 = vpack.i.bf16 %v1526_v58, %v1524_v33  ;;  %v1700_v10 = vrot.slane %v6303_v9, 2 }
 0x228   : > { %1391 = vst.msk [vmem:[#allocation2 + $0xf9] sm:$0xff] %vm1315_vm2, %v1302_v22  ;;  %v1207_v47 = vadd.f32 1.0, %v5334_v49  ;;  %v4040_v50 = vmul.f32 -1.442695, %v6366_v46  ;;  %v4653_v63 = vpack.i.bf16 %v6427_v24, %v6434_v16  ;;  %v1715_v8 = vrot.slane %v1423_v41, 2 }
 0x229   : > { %5341 = vrcp.f32 %v1209_v15  ;;  %v4041_v25 = vmul.f32 -1.442695, %v6379_v60  ;;  %v1701_v26 = vsel %vm1683_vm4, %v1699_v38, %v1700_v10  ;;  %v1703_v3 = vsel %vm1683_vm4, %v1700_v10, %v1702_v32 }
 0x22a   : > { %4589 = vrot.lane.b32.xlu1 %v6349_v12, %s5683_s16  ;;  %4569 = vrot.lane.b32.xlu0 %v4563_v30, %s5678_s27  ;;  %5343 = vrcp.f32 %v1207_v47  ;;  %v5123_v30 = vld [vmem:[%s7577_s5] sm:$0xff]   ;;  %v4628_v40 = vpack.i.bf16 %v1703_v3, %v1701_v26  ;;  %v1717_v49 = vrot.slane %v1424_v2, 2  ;;  %v1532_v32 = vrot.slane %v6434_v16, 1 }
 0x22b   : > { %5345 = vpow2.f32 %v4042_v42  ;;  %4322 = vmatprep.subr.bf16.mxu0 %v5123_v30 }
 0x22c   : > { %v5336_v61 = vpop.eup %5335  ;;  %5347 = vpow2.f32 %v4040_v50  ;;  %4323 = vmatpush3.bf16.msra.mxu0 %v5123_v30  ;;  %v1718_v33 = vsel %vm1683_vm4, %v1715_v8, %v1717_v49 }
 0x22d   : > { %v1300_v18 = vmul.f32 %v5336_v61, %v6263_v14  ;;  %v5338_v55 = vpop.eup %5337 }
 0x22e   : > { %4604 = vrot.lane.b32.xlu1 %v4583_v6, %s5680_s29  ;;  %4579 = vrot.lane.b32.xlu0 %v4573_v1, %s5681_s12  ;;  %v5340_v14 = vpop.eup %5339  ;;  %v1210_v29 = vadd.f32 1.0, %v5338_v55  ;;  %v6403_v1 = vadd.f32 %v6301_v0, %v6140_v13  ;;  %v4047_v13 = vmul.f32 -1.442695, %v6420_v19 }
 0x22f   : > { %1389 = vst.msk [vmem:[#allocation2 + $0xe1] sm:$0xff] %vm1315_vm2, %v1300_v18  ;;  %v1208_v37 = vadd.f32 1.0, %v5340_v14  ;;  %v1421_v18 = vld [vmem:[#allocation2 + $0x88] sm:$0x3] }
 0x230   : > { %5349 = vrcp.f32 %v1210_v29  ;;  %v4046_v0 = vmul.f32 -1.442695, %v6403_v1 }
 0x231   : > { %5351 = vrcp.f32 %v1208_v37  ;;  %v1535_v37 = vrot.slane %v1421_v18, 1 }
 0x232   : > { %4614 = vrot.lane.b32.xlu1 %v6383_v59, %s5684_s17  ;;  %4594 = vrot.lane.b32.xlu0 %v4583_v6, %s5684_s17  ;;  %5353 = vpow2.f32 %v4043_v21 }
 0x233   : > { %5355 = vpow2.f32 %v4041_v25  ;;  %v5342_v9 = vpop.eup %5341 }
 0x234   : > { %v5344_v52 = vpop.eup %5343  ;;  %v1305_v51 = vmul.f32 %v5342_v9, %v6309_v34  ;;  %v1422_v34 = vld [vmem:[#allocation2 + $0x90] sm:$0xff] }
 0x235   : > { %v5346_v39 = vpop.eup %5345  ;;  %v1303_v44 = vmul.f32 %v5344_v52, %v6317_v11  ;;  %v4643_v28 = vpack.i.bf16 %v1423_v41, %v1422_v34  ;;  %v4044_v11 = vmul.f32 -1.442695, %v6407_v45  ;;  %v1714_v15 = vrot.slane %v1422_v34, 2 }
 0x236   : > { %4624 = vrot.lane.b32.xlu1 %v6383_v59, %s5680_s29  ;;  %4599 = vrot.lane.b32.xlu0 %v6349_v12, %s5685_s18  ;;  %v5348_v27 = vpop.eup %5347  ;;  %1394 = vst.msk [vmem:[#allocation2 + $0x121] sm:$0xff] %vm1315_vm2, %v1305_v51  ;;  %v1213_v48 = vadd.f32 1.0, %v5346_v39  ;;  %v1710_v41 = vrot.slane %v6427_v24, 2  ;;  %v1712_v39 = vrot.slane %v1421_v18, 2 }
 0x237   : > { %1392 = vst.msk [vmem:[#allocation2 + $0x109] sm:$0xff] %vm1315_vm2, %v1303_v44  ;;  %v1211_v43 = vadd.f32 1.0, %v5348_v27  ;;  %v1716_v61 = vsel %vm1683_vm4, %v1714_v15, %v1715_v8  ;;  %v1709_v44 = vrot.slane %v6434_v16, 2 }
 0x238   : > { %5357 = vrcp.f32 %v1213_v48  ;;  %v4668_v14 = vpack.i.bf16 %v1718_v33, %v1716_v61  ;;  %v1713_v48 = vsel %vm1683_vm4, %v1710_v41, %v1712_v39 }
 0x239   : > { %5359 = vrcp.f32 %v1211_v43 }
 0x23a   : > { %4629 = vrot.lane.b32.xlu1 %v4628_v40, %s5679_s28  ;;  %4609 = vrot.lane.b32.xlu0 %v6349_v12, %s5679_s28  ;;  %v5350_v56 = vpop.eup %5349  ;;  %v1540_v12 = vrot.slane %v1424_v2, 1  ;;  %5361 = vpow2.f32 %v4046_v0  ;;  %v1711_v2 = vsel %vm1683_vm4, %v1709_v44, %v1710_v41  ;;  %v1457_v41 = vld [vmem:[#allocation2 + $0x1a8] sm:$0x3] }
 0x23b   : > { %v5352_v62 = vpop.eup %5351  ;;  %v1306_v54 = vmul.f32 %v5350_v56, %v6333_v20  ;;  %v1537_v20 = vrot.slane %v1422_v34, 1  ;;  %5363 = vpow2.f32 %v4044_v11  ;;  %v4708_v43 = vpack.i.bf16 %v1713_v48, %v1711_v2 }
 0x23c   : > { %v5354_v6 = vpop.eup %5353  ;;  %v1304_v36 = vmul.f32 %v5352_v62, %v6337_v5  ;;  %v1541_v53 = vsel %vm1506_vm5, %v1538_v7, %v1540_v12  ;;  %v1428_v62 = vld [vmem:[#allocation2 + $0xc0] sm:$0xff]  ;;  %v1426_v12 = vld [vmem:[#allocation2 + $0xb0] sm:$0xff]  ;;  %v2263_v2 = vrot.slane %v1457_v41, 1 }
 0x23d   : > { %v5356_v57 = vpop.eup %5355  ;;  %1395 = vst.msk [vmem:[#allocation2 + $0x129] sm:$0xff] %vm1315_vm2, %v1306_v54  ;;  %v1214_v35 = vadd.f32 1.0, %v5354_v6  ;;  %v1539_v22 = vsel %vm1506_vm5, %v1537_v20, %v1538_v7  ;;  %v1429_v54 = vld [vmem:[#allocation2 + $0xc8] sm:$0xff]  ;;  %v1724_v20 = vrot.slane %v1428_v62, 2 }
 0x23e   : > { %4644 = vrot.lane.b32.xlu1 %v4643_v28, %s5681_s12  ;;  %4619 = vrot.lane.b32.xlu0 %v4628_v40, %s5685_s18  ;;  %1393 = vst.msk [vmem:[#allocation2 + $0x111] sm:$0xff] %vm1315_vm2, %v1304_v36  ;;  %v1212_v5 = vadd.f32 1.0, %v5356_v57  ;;  %v4663_v42 = vpack.i.bf16 %v1541_v53, %v1539_v22  ;;  %v1430_v36 = vld [vmem:[#allocation2 + $0xd0] sm:$0x3]  ;;  %v4723_v7 = vpack.i.bf16 %v1429_v54, %v1428_v62  ;;  %v1547_v57 = vrot.slane %v1428_v62, 1 }
 0x23f   : > { %5365 = vrcp.f32 %v1214_v35  ;;  %v1548_v35 = vrot.slane %v1429_v54, 1  ;;  %v1427_v53 = vld [vmem:[#allocation2 + $0xb8] sm:$0x3] }
 0x240   : > { %5367 = vrcp.f32 %v1212_v5  ;;  %v1725_v5 = vrot.slane %v1429_v54, 2  ;;  %v1545_v61 = vrot.slane %v1427_v53, 1 }
 0x241   : > { %5369 = vpow2.f32 %v4047_v13  ;;  %v1550_v13 = vrot.slane %v1430_v36, 1 }
 0x242   : > { %4654 = vrot.lane.b32.xlu1 %v4653_v63, %s5678_s27  ;;  %4634 = vrot.lane.b32.xlu0 %v6383_v59, %s5682_s15  ;;  %5371 = vpow2.f32 %v4045_v17  ;;  %v5358_v47 = vpop.eup %5357  ;;  %v1533_v59 = vrot.slane %v6427_v24, 1  ;;  %v1727_v17 = vrot.slane %v1430_v36, 2  ;;  %v1726_v8 = vsel %vm1683_vm4, %v1724_v20, %v1725_v5  ;;  %v1433_v20 = vld [vmem:[#allocation2 + $0xe8] sm:$0x3] }
 0x243   : > { %v5360_v58 = vpop.eup %5359  ;;  %v1309_v55 = vmul.f32 %v5358_v47, %v6354_v31 }
 0x244   : > { %v5362_v50 = vpop.eup %5361  ;;  %v1307_v29 = vmul.f32 %v5360_v58, %v6366_v46  ;;  %v1534_v9 = vsel %vm1506_vm5, %v1532_v32, %v1533_v59  ;;  %v1536_v52 = vsel %vm1506_vm5, %v1533_v59, %v1535_v37  ;;  %v1728_v22 = vsel %vm1683_vm4, %v1725_v5, %v1727_v17  ;;  %v6503_v58 = vpop.permute.xlu1 %4484 }
 0x245   : > { %v5364_v21 = vpop.eup %5363  ;;  %1398 = vst.msk [vmem:[#allocation2 + $0x151] sm:$0xff] %vm1315_vm2, %v1309_v55  ;;  %v1217_v25 = vadd.f32 1.0, %v5362_v50  ;;  %v4693_v51 = vpack.i.bf16 %v1536_v52, %v1534_v9  ;;  %v4748_v49 = vpack.i.bf16 %v1728_v22, %v1726_v8  ;;  %v1720_v50 = vrot.slane %v1426_v12, 2  ;;  %v6513_v37 = vpop.permute.xlu0 %4489  ;;  %v1436_v9 = vld [vmem:[#allocation2 + $0x100] sm:$0x3] }
 0x246   : > { %4664 = vrot.lane.b32.xlu1 %v4663_v42, %s5682_s15  ;;  %4639 = vrot.lane.b32.xlu0 %v4628_v40, %s5683_s16  ;;  %1396 = vst.msk [vmem:[#allocation2 + $0x139] sm:$0xff] %vm1315_vm2, %v1307_v29  ;;  %v1215_v10 = vadd.f32 1.0, %v5364_v21  ;;  %v1555_v8 = vrot.slane %v1433_v20, 1 }
 0x247   : > { %5373 = vrcp.f32 %v1217_v25  ;;  %v5637_v25 = vld [vmem:[#allocation2 + $0x1a0] sm:$0xff] }
 0x248   : > { %5375 = vrcp.f32 %v1215_v10  ;;  %v6511_v59 = vpop.permute.xlu1 %4494  ;;  %v5638_v10 = vld [vmem:[#allocation2 + $0x198] sm:$0xff] }
 0x249   : > { %v5366_v30 = vpop.eup %5365 }
 0x24a   : > { %4669 = vrot.lane.b32.xlu1 %v4668_v14, %s5683_s16  ;;  %4649 = vrot.lane.b32.xlu0 %v4643_v28, %s5678_s27  ;;  %v5368_v31 = vpop.eup %5367  ;;  %v1310_v46 = vmul.f32 %v5366_v30, %v6372_v23  ;;  %v2261_v30 = vrot.slane %v5637_v25, 1 }
 0x24b   : > { %v5370_v38 = vpop.eup %5369  ;;  %v1308_v26 = vmul.f32 %v5368_v31, %v6379_v60  ;;  %v5124_v60 = vld [vmem:[%s7577_s5 + $0x8] ss:$0 sps:$4 sm:$0x11]   ;;  %v2260_v31 = vrot.slane %v5638_v10, 1 }
 0x24c   : > { %v5372_v3 = vpop.eup %5371  ;;  %1399 = vst.msk [vmem:[#allocation2 + $0x159] sm:$0xff] %vm1315_vm2, %v1310_v46  ;;  %v1218_v40 = vadd.f32 1.0, %v5370_v38  ;;  %4463 = vmatprep.subr.msk.bf16.mxu0 %vm2808_vm6, %v5124_v60  ;;  %v2810_v27 = vsel %vm2808_vm6, %v5124_v60, 0  ;;  %v1434_v46 = vld [vmem:[#allocation2 + $0xf0] sm:$0xff]  ;;  %v1435_v38 = vld [vmem:[#allocation2 + $0xf8] sm:$0xff]  ;;  %v6540_v62 = vsel %vm1506_vm5, %v2261_v30, %v2263_v2 }
 0x24d   : > { %1397 = vst.msk [vmem:[#allocation2 + $0x141] sm:$0xff] %vm1315_vm2, %v1308_v26  ;;  %v1216_v23 = vadd.f32 1.0, %v5372_v3  ;;  %4325 = vmatpush3.bf16.msra.mxu0 %v2810_v27  ;;  %v2362_v26 = vrot.slane %v5637_v25, 2  ;;  %v2361_v3 = vrot.slane %v5638_v10, 2  ;;  %v6521_v60 = vld [vmem:[#allocation2 + $0xd8] sm:$0xff]  ;;  %v6526_v39 = vsel %vm1506_vm5, %v2260_v31, %v2261_v30  ;;  %v5640_v30 = vld [vmem:[#allocation2] sm:$0xff] }
 0x24e   : > { %4684 = vrot.lane.b32.xlu1 %v4663_v42, %s5680_s29  ;;  %4659 = vrot.lane.b32.xlu0 %v4653_v63, %s5681_s12  ;;  %5377 = vrcp.f32 %v1218_v40  ;;  %v1557_v44 = vrot.slane %v1434_v46, 1  ;;  %v1558_v27 = vrot.slane %v1435_v38, 1  ;;  %v1552_v17 = vrot.slane %v6521_v60, 1 }
 0x24f   : > { %5379 = vrcp.f32 %v1216_v23  ;;  %v4803_v23 = vpack.i.bf16 %v1435_v38, %v1434_v46  ;;  %v6531_v48 = vsel %vm1683_vm4, %v2361_v3, %v2362_v26  ;;  %v6600_v3 = vld [vmem:[#allocation2 + $0x120] sm:$0xff] }
 0x251   : > { %v5374_v34 = vpop.eup %5373 }
 0x252   : > { %4694 = vrot.lane.b32.xlu1 %v4693_v51, %s5684_s17  ;;  %4674 = vrot.lane.b32.xlu0 %v4663_v42, %s5684_s17  ;;  %v5376_v0 = vpop.eup %5375  ;;  %v1313_v56 = vmul.f32 %v5374_v34, %v6403_v1  ;;  %v1543_v42 = vrot.slane %v1426_v12, 1  ;;  %v1560_v34 = vrot.slane %v1436_v9, 1 }
 0x253   : > { %v1311_v28 = vmul.f32 %v5376_v0, %v6407_v45  ;;  %v1425_v45 = vld [vmem:[#allocation2 + $0xa8] sm:$0xff]  ;;  %v2364_v0 = vrot.slane %v1457_v41, 2 }
 0x254   : > { %1402 = vst.msk [vmem:[#allocation2 + $0x181] sm:$0xff] %vm1315_vm2, %v1313_v56  ;;  %v4733_v16 = vpack.i.bf16 %v1426_v12, %v1425_v45  ;;  %v1542_v15 = vrot.slane %v1425_v45, 1  ;;  %v1546_v47 = vsel %vm1506_vm5, %v1543_v42, %v1545_v61  ;;  %v1719_v55 = vrot.slane %v1425_v45, 2 }
 0x255   : > { %1400 = vst.msk [vmem:[#allocation2 + $0x169] sm:$0xff] %vm1315_vm2, %v1311_v28  ;;  %v6543_v54 = vsel %vm1683_vm4, %v2362_v26, %v2364_v0  ;;  %v1561_v36 = vsel %vm1506_vm5, %v1558_v27, %v1560_v34  ;;  %v4491_v61 = vunpack.i.l.bf16 %v6513_v37 }
 0x256   : > { %4704 = vrot.lane.b32.xlu1 %v4693_v51, %s5680_s29  ;;  %4679 = vrot.lane.b32.xlu0 %v4668_v14, %s5685_s18  ;;  %v1544_v33 = vsel %vm1506_vm5, %v1542_v15, %v1543_v42  ;;  %v1721_v29 = vsel %vm1683_vm4, %v1719_v55, %v1720_v50  ;;  %v5118_v45 = vpack.i.bf16 %v6543_v54, %v6531_v48  ;;  %v4492_v42 = vunpack.i.h.bf16 %v6513_v37  ;;  %v5639_v37 = vld [vmem:[#allocation2 + $0x8] sm:$0xff] }
 0x257   : > { %v4773_v18 = vpack.i.bf16 %v1546_v47, %v1544_v33  ;;  %v1729_v55 = vrot.slane %v6521_v60, 2  ;;  %v2462_v10 = vsel %vm1315_vm2, %v5640_v30, %v4491_v61  ;;  %v6639_v61 = vld [vmem:[#allocation2 + $0x108] sm:$0xff] }
 0x258   : > { %v5378_v11 = vpop.eup %5377  ;;  %v2463_v25 = vsel %vm1315_vm2, %v5639_v37, %v4492_v42 }
 0x259   : > { %v5380_v6 = vpop.eup %5379  ;;  %v1314_v24 = vmul.f32 %v5378_v11, %v6420_v19  ;;  %v1549_v19 = vsel %vm1506_vm5, %v1547_v57, %v1548_v35  ;;  %v1734_v11 = vrot.slane %v1434_v46, 2 }
 0x25a   : > { %4709 = vrot.lane.b32.xlu1 %v4708_v43, %s5679_s28  ;;  %4689 = vrot.lane.b32.xlu0 %v4668_v14, %s5679_s28  ;;  %v1312_v1 = vmul.f32 %v5380_v6, %v6424_v4  ;;  %v1551_v4 = vsel %vm1506_vm5, %v1548_v35, %v1550_v13  ;;  %v1722_v14 = vrot.slane %v1427_v53, 2  ;;  %v1559_v6 = vsel %vm1506_vm5, %v1557_v44, %v1558_v27 }
 0x25b   : > { %1403 = vst.msk [vmem:[#allocation2 + $0x189] sm:$0xff] %vm1315_vm2, %v1314_v24  ;;  %v4743_v63 = vpack.i.bf16 %v1551_v4, %v1549_v19  ;;  %v1735_v24 = vrot.slane %v1435_v38, 2  ;;  %v4823_v35 = vpack.i.bf16 %v1561_v36, %v1559_v6 }
 0x25c   : > { %1401 = vst.msk [vmem:[#allocation2 + $0x171] sm:$0xff] %vm1315_vm2, %v1312_v1  ;;  %v1723_v21 = vsel %vm1683_vm4, %v1720_v50, %v1722_v14  ;;  %v1737_v1 = vrot.slane %v1436_v9, 2  ;;  %v1732_v14 = vrot.slane %v1433_v20, 2  ;;  %v6602_v9 = vld [vmem:[#allocation2 + $0x128] sm:$0xff]  ;;  %v1567_v20 = vrot.slane %v6600_v3, 1 }
 0x25d   : > { %v4788_v32 = vpack.i.bf16 %v1723_v21, %v1721_v29  ;;  %v1736_v13 = vsel %vm1683_vm4, %v1734_v11, %v1735_v24  ;;  %v4497_v29 = vunpack.i.h.bf16 %v6511_v59  ;;  %v4496_v21 = vunpack.i.l.bf16 %v6511_v59 }
 0x25e   : > { %4724 = vrot.lane.b32.xlu1 %v4723_v7, %s5681_s12  ;;  %4699 = vrot.lane.b32.xlu0 %v4708_v43, %s5685_s18  ;;  %v6615_v2 = vpack.i.bf16 %v6602_v9, %v6600_v3 }
 0x262   : > { %4734 = vrot.lane.b32.xlu1 %v4733_v16, %s5678_s27  ;;  %4714 = vrot.lane.b32.xlu0 %v4693_v51, %s5682_s15  ;;  %v6523_v51 = vld [vmem:[#allocation2 + $0xe0] sm:$0xff] }
 0x263   : > { %v4813_v56 = vpack.i.bf16 %v6523_v51, %v6521_v60  ;;  %v1730_v50 = vrot.slane %v6523_v51, 2  ;;  %v2495_v60 = vsel %vm417_vm1, %v2463_v25, %v4497_v29 }
 0x265   : > { %v1731_v59 = vsel %vm1683_vm4, %v1729_v55, %v1730_v50  ;;  %v1733_v26 = vsel %vm1683_vm4, %v1730_v50, %v1732_v14  ;;  %v6641_v55 = vld [vmem:[#allocation2 + $0x110] sm:$0xff]  ;;  %v1568_v50 = vrot.slane %v6602_v9, 1 }
 0x266   : > { %4744 = vrot.lane.b32.xlu1 %v4743_v63, %s5682_s15  ;;  %4719 = vrot.lane.b32.xlu0 %v4708_v43, %s5683_s16  ;;  %v6611_v34 = vpack.i.bf16 %v1733_v26, %v1731_v59  ;;  %v1745_v26 = vrot.slane %v6602_v9, 2 }
 0x26a   : > { %4749 = vrot.lane.b32.xlu1 %v4748_v49, %s5683_s16  ;;  %4729 = vrot.lane.b32.xlu0 %v4723_v7, %s5678_s27  ;;  %v5098_v7 = vpack.i.bf16 %v6540_v62, %v6526_v39 }
 0x26e   : > { %4764 = vrot.lane.b32.xlu1 %v4743_v63, %s5680_s29  ;;  %4739 = vrot.lane.b32.xlu0 %v4733_v16, %s5681_s12  ;;  %v1738_v16 = vsel %vm1683_vm4, %v1735_v24, %v1737_v1 }
 0x26f   : > { %v4828_v5 = vpack.i.bf16 %v1738_v16, %v1736_v13 }
 0x272   : > { %4774 = vrot.lane.b32.xlu1 %v4773_v18, %s5684_s17  ;;  %4754 = vrot.lane.b32.xlu0 %v4743_v63, %s5684_s17  ;;  %v1553_v63 = vrot.slane %v6523_v51, 1 }
 0x274   : > { %v1556_v15 = vsel %vm1506_vm5, %v1553_v63, %v1555_v8 }
 0x276   : > { %4784 = vrot.lane.b32.xlu1 %v4773_v18, %s5680_s29  ;;  %4759 = vrot.lane.b32.xlu0 %v4748_v49, %s5685_s18 }
 0x27a   : > { %4789 = vrot.lane.b32.xlu1 %v4788_v32, %s5679_s28  ;;  %4769 = vrot.lane.b32.xlu0 %v4748_v49, %s5679_s28  ;;  %v1554_v49 = vsel %vm1506_vm5, %v1552_v17, %v1553_v63 }
 0x27c   : > { %v6517_v52 = vpop.permute.xlu0 %4504  ;;  %v6519_v40 = vpop.permute.xlu1 %4499 }
 0x27d   : > { %v4507_v6 = vunpack.i.h.bf16 %v6517_v52  ;;  %v4506_v36 = vunpack.i.l.bf16 %v6517_v52 }
 0x27e   : > { %4804 = vrot.lane.b32.xlu1 %v4803_v23, %s5681_s12  ;;  %4779 = vrot.lane.b32.xlu0 %v4788_v32, %s5685_s18 }
 0x280   : > { %v6535_v28 = vpop.permute.xlu1 %4514  ;;  %v6537_v43 = vpop.permute.xlu0 %4509 }
 0x281   : > { %v4512_v46 = vunpack.i.h.bf16 %v6537_v43  ;;  %v4511_v38 = vunpack.i.l.bf16 %v6537_v43 }
 0x282   : > { %4814 = vrot.lane.b32.xlu1 %v4813_v56, %s5678_s27  ;;  %4794 = vrot.lane.b32.xlu0 %v4773_v18, %s5682_s15  ;;  %v6583_v18 = vpack.i.bf16 %v1556_v15, %v1554_v49 }
 0x283   : > { %v2528_v0 = vsel %vm2526_vm7, %v2495_v60, %v4512_v46  ;;  %v1744_v46 = vrot.slane %v6600_v3, 2  ;;  %v5641_v60 = vld [vmem:[#allocation2 + $0x20] sm:$0xff] }
 0x284   : > { %v6553_v12 = vpop.permute.xlu1 %4519  ;;  %v6555_v57 = vpop.permute.xlu0 %4524 }
 0x285   : > { %v4527_v17 = vunpack.i.h.bf16 %v6555_v57  ;;  %v4526_v52 = vunpack.i.l.bf16 %v6555_v57 }
 0x286   : > { %4824 = vrot.lane.b32.xlu1 %v4823_v35, %s5682_s15  ;;  %4799 = vrot.lane.b32.xlu0 %v4788_v32, %s5683_s16 }
 0x288   : > { %v6561_v19 = vpop.permute.xlu1 %4534  ;;  %v6563_v4 = vpop.permute.xlu0 %4529 }
 0x289   : > { %v4531_v42 = vunpack.i.l.bf16 %v6563_v4 }
 0x28a   : > { %4829 = vrot.lane.b32.xlu1 %v4828_v5, %s5683_s16  ;;  %4809 = vrot.lane.b32.xlu0 %v4803_v23, %s5678_s27  ;;  %v2494_v23 = vsel %vm417_vm1, %v2462_v10, %v4496_v21 }
 0x28c   : > { %v6569_v22 = vpop.permute.xlu0 %4539  ;;  %v6571_v53 = vpop.permute.xlu1 %4549 }
 0x28d   : > { %v4551_v3 = vunpack.i.l.bf16 %v6571_v53 }
 0x28e   : > { %4844 = vrot.lane.b32.xlu1 %v4823_v35, %s5680_s29  ;;  %4819 = vrot.lane.b32.xlu0 %v4813_v56, %s5681_s12  ;;  %v2527_v56 = vsel %vm2526_vm7, %v2494_v23, %v4511_v38  ;;  %v1569_v38 = vsel %vm1506_vm5, %v1567_v20, %v1568_v50 }
 0x290   : > { %v6579_v33 = vpop.permute.xlu1 %4564  ;;  %v6581_v47 = vpop.permute.xlu0 %4544 }
 0x291   : > { %v4547_v57 = vunpack.i.h.bf16 %v6581_v47  ;;  %v4546_v29 = vunpack.i.l.bf16 %v6581_v47 }
 0x292   : > { %4854 = vrot.lane.b32.xlu1 %v6583_v18, %s5684_s17  ;;  %4834 = vrot.lane.b32.xlu0 %v4823_v35, %s5684_s17  ;;  %v1442_v35 = vld [vmem:[#allocation2 + $0x130] sm:$0x3] }
 0x293   : > { %v1570_v14 = vrot.slane %v1442_v35, 1  ;;  %v1747_v23 = vrot.slane %v1442_v35, 2  ;;  %v4501_v35 = vunpack.i.l.bf16 %v6519_v40 }
 0x294   : > { %v6594_v31 = vpop.permute.xlu1 %4574  ;;  %v4555_v32 = vpop.permute.xlu0 %4554 }
 0x295   : > { %v4557_v51 = vunpack.i.h.bf16 %v4555_v32  ;;  %v4556_v41 = vunpack.i.l.bf16 %v4555_v32  ;;  %v4893_v32 = vpack.i.bf16 %v6641_v55, %v6639_v61  ;;  %v1571_v59 = vsel %vm1506_vm5, %v1568_v50, %v1570_v14 }
 0x296   : > { %4864 = vrot.lane.b32.xlu1 %v6583_v18, %s5680_s29  ;;  %4839 = vrot.lane.b32.xlu0 %v4828_v5, %s5685_s18  ;;  %v4522_v50 = vunpack.i.h.bf16 %v6553_v12  ;;  %v4521_v14 = vunpack.i.l.bf16 %v6553_v12 }
 0x297   : > { %v2561_v24 = vsel %vm2559_vm8, %v2528_v0, %v4557_v51  ;;  %v2560_v1 = vsel %vm2559_vm8, %v2527_v56, %v4556_v41  ;;  %v2465_v51 = vsel %vm1315_vm2, %v5641_v60, %v4547_v57  ;;  %v5642_v41 = vld [vmem:[#allocation2 + $0x18] sm:$0xff]  ;;  %v4552_v0 = vunpack.i.h.bf16 %v6571_v53 }
 0x298   : > { %v6609_v44 = vpop.permute.xlu1 %4584  ;;  %v4560_v27 = vpop.permute.xlu0 %4559  ;;  %v1439_v53 = vld [vmem:[#allocation2 + $0x118] sm:$0x3] }
 0x299   : > { %v4562_v43 = vunpack.i.h.bf16 %v4560_v27  ;;  %v4561_v11 = vunpack.i.l.bf16 %v4560_v27  ;;  %v2464_v27 = vsel %vm1315_vm2, %v5642_v41, %v4546_v29  ;;  %v4577_v29 = vunpack.i.h.bf16 %v6594_v31 }
 0x29a   : > { %4869 = vrot.lane.b32.xlu1 %v6611_v34, %s5679_s28  ;;  %4849 = vrot.lane.b32.xlu0 %v4828_v5, %s5679_s28  ;;  %v4532_v5 = vunpack.i.h.bf16 %v6563_v4 }
 0x29b   : > { %v2593_v13 = vsel %vm2592_vm9, %v2560_v1, %v4561_v11  ;;  %v2594_v16 = vsel %vm2592_vm9, %v2561_v24, %v4562_v43  ;;  %v4903_v43 = vpack.i.bf16 %v1571_v59, %v1569_v38  ;;  %v2497_v11 = vsel %vm417_vm1, %v2465_v51, %v4552_v0 }
 0x29c   : > { %v2626_v63 = vsel %vm2625_vm10, %v2593_v13, %v4506_v36  ;;  %v2627_v8 = vsel %vm2625_vm10, %v2594_v16, %v4507_v6  ;;  %v6633_v49 = vpop.permute.xlu1 %4589  ;;  %v6635_v15 = vpop.permute.xlu0 %4569  ;;  %v2496_v6 = vsel %vm417_vm1, %v2464_v27, %v4551_v3  ;;  %v1746_v36 = vsel %vm1683_vm4, %v1744_v46, %v1745_v26 }
 0x29d   : > { %v2659_v21 = vsel %vm2658_vm11, %v2626_v63, %v4526_v52  ;;  %v2660_v4 = vsel %vm2658_vm11, %v2627_v8, %v4527_v17  ;;  %v1748_v24 = vsel %vm1683_vm4, %v1745_v26, %v1747_v23  ;;  %v4502_v1 = vunpack.i.h.bf16 %v6519_v40 }
 0x29e   : > { %4884 = vrot.lane.b32.xlu1 %v6615_v2, %s5681_s12  ;;  %4859 = vrot.lane.b32.xlu0 %v6611_v34, %s5685_s18  ;;  %v2692_v37 = vsel %vm2691_vm12, %v2659_v21, %v4531_v42  ;;  %v2693_v25 = vsel %vm2691_vm12, %v2660_v4, %v4532_v5  ;;  %v2529_v13 = vsel %vm2526_vm7, %v2496_v6, %v4501_v35  ;;  %v1562_v52 = vrot.slane %v6639_v61, 1 }
 0x29f   : > { %v2724_v47 = vpack.c.bf16 %v2693_v25, %v2692_v37  ;;  %v6689_v17 = vpack.i.bf16 %v1748_v24, %v1746_v36  ;;  %v4517_v40 = vunpack.i.h.bf16 %v6535_v28  ;;  %v4516_v63 = vunpack.i.l.bf16 %v6535_v28 }
 0x2a0   : > { %v6654_v30 = vpop.permute.xlu1 %4604  ;;  %v6656_v10 = vpop.permute.xlu0 %4579  ;;  %v1563_v8 = vrot.slane %v6641_v55, 1  ;;  %v1565_v5 = vrot.slane %v1439_v53, 1  ;;  %v4576_v21 = vunpack.i.l.bf16 %v6594_v31  ;;  %v1739_v31 = vrot.slane %v6639_v61, 2 }
 0x2a1   : > { %4326 = vmatprep.mubr.msk.bf16.mxu0 %vm2759_vm13, %v2724_v47  ;;  %v1740_v26 = vrot.slane %v6641_v55, 2  ;;  %v1742_v23 = vrot.slane %v1439_v53, 2  ;;  %v4537_v3 = vunpack.i.h.bf16 %v6561_v19  ;;  %v4536_v61 = vunpack.i.l.bf16 %v6561_v19 }
 0x2a2   : > { %4894 = vrot.lane.b32.xlu1 %v4893_v32, %s5678_s27  ;;  %4874 = vrot.lane.b32.xlu0 %v6583_v18, %s5682_s15  ;;  %v2530_v18 = vsel %vm2526_vm7, %v2497_v11, %v4502_v1  ;;  %v1564_v4 = vsel %vm1506_vm5, %v1562_v52, %v1563_v8  ;;  %v1566_v37 = vsel %vm1506_vm5, %v1563_v8, %v1565_v5  ;;  %v4542_v11 = vunpack.i.h.bf16 %v6569_v22  ;;  %v6742_v52 = vld [vmem:[#allocation2 + $0x158] sm:$0xff]  ;;  %v5644_v8 = vld [vmem:[#allocation2 + $0x30] sm:$0xff] }
 0x2a3   : > { %v2563_v42 = vsel %vm2559_vm8, %v2530_v18, %v4517_v40  ;;  %v6717_v59 = vpack.i.bf16 %v1566_v37, %v1564_v4  ;;  %v4541_v6 = vunpack.i.l.bf16 %v6569_v22  ;;  %v4582_v35 = vunpack.i.h.bf16 %v6656_v10  ;;  %v5643_v22 = vld [vmem:[#allocation2 + $0x38] sm:$0xff] }
 0x2a4   : > { %v4615_v56 = vpop.permute.xlu1 %4614  ;;  %v6672_v9 = vpop.permute.xlu0 %4594  ;;  %v4581_v53 = vunpack.i.l.bf16 %v6656_v10  ;;  %v1741_v19 = vsel %vm1683_vm4, %v1739_v31, %v1740_v26  ;;  %v1743_v18 = vsel %vm1683_vm4, %v1740_v26, %v1742_v23  ;;  %v2466_v10 = vsel %vm1315_vm2, %v5644_v8, %v4536_v61  ;;  %v1448_v31 = vld [vmem:[#allocation2 + $0x160] sm:$0x3] }
 0x2a5   : > { %v4617_v47 = vunpack.i.h.bf16 %v4615_v56  ;;  %v4616_v46 = vunpack.i.l.bf16 %v4615_v56  ;;  %v6784_v61 = vld [vmem:[#allocation2 + $0x140] sm:$0xff] }
 0x2a6   : > { %4904 = vrot.lane.b32.xlu1 %v4903_v43, %s5682_s15  ;;  %4879 = vrot.lane.b32.xlu0 %v6611_v34, %s5683_s16  ;;  %v2562_v34 = vsel %vm2559_vm8, %v2529_v13, %v4516_v63  ;;  %v6740_v13 = vld [vmem:[#allocation2 + $0x150] sm:$0xff]  ;;  %v2467_v63 = vsel %vm1315_vm2, %v5643_v22, %v4537_v3  ;;  %v6782_v3 = vld [vmem:[#allocation2 + $0x138] sm:$0xff] }
 0x2a7   : > { %v2595_v25 = vsel %vm2592_vm9, %v2562_v34, %v4521_v14  ;;  %v2499_v5 = vsel %vm417_vm1, %v2467_v63, %v4542_v11  ;;  %v2498_v34 = vsel %vm417_vm1, %v2466_v10, %v4541_v6  ;;  %v6755_v14 = vpack.i.bf16 %v1743_v18, %v1741_v19 }
 0x2a8   : > { %v6685_v16 = vpop.permute.xlu1 %4624  ;;  %v6687_v20 = vpop.permute.xlu0 %4599  ;;  %v2628_v60 = vsel %vm2625_vm10, %v2595_v25, %v4576_v21  ;;  %v2532_v21 = vsel %vm2526_vm7, %v2499_v5, %v4582_v35  ;;  %v2531_v4 = vsel %vm2526_vm7, %v2498_v34, %v4581_v53  ;;  %v1580_v11 = vrot.slane %v1448_v31, 1 }
 0x2a9   : > { %v2661_v0 = vsel %vm2658_vm11, %v2628_v60, %v4616_v46  ;;  %v1577_v60 = vrot.slane %v6740_v13, 1  ;;  %v1754_v18 = vrot.slane %v6740_v13, 2  ;;  %v4627_v8 = vunpack.i.h.bf16 %v6685_v16 }
 0x2aa   : > { %4909 = vrot.lane.b32.xlu1 %v6689_v17, %s5683_s16  ;;  %4889 = vrot.lane.b32.xlu0 %v6615_v2, %s5678_s27  ;;  %v2596_v2 = vsel %vm2592_vm9, %v2563_v42, %v4522_v50  ;;  %v4626_v10 = vunpack.i.l.bf16 %v6685_v16  ;;  %v6819_v16 = vld [vmem:[#allocation2 + $0x148] sm:$0x3] }
 0x2ab   : > { %v2629_v51 = vsel %vm2625_vm10, %v2596_v2, %v4577_v29  ;;  %v6759_v29 = vpack.i.bf16 %v6742_v52, %v6740_v13  ;;  %v4572_v2 = vunpack.i.h.bf16 %v6635_v15 }
 0x2ac   : > { %v6703_v57 = vpop.permute.xlu1 %4629  ;;  %v6705_v28 = vpop.permute.xlu0 %4609 }
 0x2ad   : > { %v4632_v5 = vunpack.i.h.bf16 %v6703_v57  ;;  %v4631_v34 = vunpack.i.l.bf16 %v6703_v57 }
 0x2ae   : > { %4924 = vrot.lane.b32.xlu1 %v4903_v43, %s5680_s29  ;;  %4899 = vrot.lane.b32.xlu0 %v4893_v32, %s5681_s12  ;;  %v2662_v32 = vsel %vm2658_vm11, %v2629_v51, %v4617_v47  ;;  %v4571_v47 = vunpack.i.l.bf16 %v6635_v15  ;;  %v4597_v51 = vunpack.i.h.bf16 %v6672_v9  ;;  %v4596_v15 = vunpack.i.l.bf16 %v6672_v9 }
 0x2b0   : > { %v6715_v12 = vpop.permute.xlu1 %4644  ;;  %v4620_v38 = vpop.permute.xlu0 %4619 }
 0x2b1   : > { %v4622_v41 = vunpack.i.h.bf16 %v4620_v38  ;;  %v4621_v27 = vunpack.i.l.bf16 %v4620_v38 }
 0x2b2   : > { %4934 = vrot.lane.b32.xlu1 %v6717_v59, %s5684_s17  ;;  %4914 = vrot.lane.b32.xlu0 %v4903_v43, %s5684_s17 }
 0x2b3   : > { %v2694_v55 = vsel %vm2691_vm12, %v2661_v0, %v4621_v27  ;;  %v2695_v56 = vsel %vm2691_vm12, %v2662_v32, %v4622_v41 }
 0x2b4   : > { %v2725_v36 = vpack.c.bf16 %v2695_v56, %v2694_v55  ;;  %v6734_v24 = vpop.permute.xlu1 %4654  ;;  %v4635_v1 = vpop.permute.xlu0 %4634  ;;  %v4601_v55 = vunpack.i.l.bf16 %v6687_v20  ;;  %v1578_v56 = vrot.slane %v6742_v52, 1 }
 0x2b5   : > { %v4637_v43 = vunpack.i.h.bf16 %v4635_v1  ;;  %v4636_v40 = vunpack.i.l.bf16 %v4635_v1 }
 0x2b6   : > { %4944 = vrot.lane.b32.xlu1 %v6717_v59, %s5680_s29  ;;  %4327 = vmatmul.mubr.msk.bf16.vlgmr.msra.gmra.mrb[48].mxu0 %vm2759_vm13, %v2725_v36  ;;  %v1579_v22 = vsel %vm1506_vm5, %v1577_v60, %v1578_v56  ;;  %v1581_v63 = vsel %vm1506_vm5, %v1578_v56, %v1580_v11 }
 0x2b7   : > { %4919 = vrot.lane.b32.xlu0 %v6689_v17, %s5685_s18  ;;  %v2564_v46 = vsel %vm2559_vm8, %v2531_v4, %v4636_v40  ;;  %v2565_v38 = vsel %vm2559_vm8, %v2532_v21, %v4637_v43  ;;  %v1755_v43 = vrot.slane %v6742_v52, 2  ;;  %v1757_v40 = vrot.slane %v1448_v31, 2 }
 0x2b8   : > { %v6753_v42 = vpop.permute.xlu1 %4664  ;;  %v4640_v50 = vpop.permute.xlu0 %4639  ;;  %v4567_v31 = vunpack.i.h.bf16 %v6579_v33 }
 0x2b9   : > { %v4642_v37 = vunpack.i.h.bf16 %v4640_v50  ;;  %v4641_v25 = vunpack.i.l.bf16 %v4640_v50  ;;  %v4983_v50 = vpack.i.bf16 %v1581_v63, %v1579_v22  ;;  %v1756_v21 = vsel %vm1683_vm4, %v1754_v18, %v1755_v43 }
 0x2ba   : > { %4949 = vrot.lane.b32.xlu1 %v6755_v14, %s5679_s28  ;;  %v1758_v4 = vsel %vm1683_vm4, %v1755_v43, %v1757_v40  ;;  %v1749_v43 = vrot.slane %v6782_v3, 2  ;;  %v1750_v40 = vrot.slane %v6784_v61, 2 }
 0x2bb   : > { %v2597_v26 = vsel %vm2592_vm9, %v2564_v46, %v4641_v25  ;;  %v2598_v23 = vsel %vm2592_vm9, %v2565_v38, %v4642_v37  ;;  %4929 = vrot.lane.b32.xlu0 %v6689_v17, %s5679_s28  ;;  %v4602_v17 = vunpack.i.h.bf16 %v6687_v20  ;;  %v4973_v20 = vpack.i.bf16 %v6784_v61, %v6782_v3  ;;  %v5645_v37 = vld [vmem:[#allocation2 + $0x50] sm:$0xff] }
 0x2bc   : > { %v2630_v41 = vsel %vm2625_vm10, %v2597_v26, %v4571_v47  ;;  %v2631_v27 = vsel %vm2625_vm10, %v2598_v23, %v4572_v2  ;;  %v6778_v0 = vpop.permute.xlu1 %4669  ;;  %v6780_v32 = vpop.permute.xlu0 %4649  ;;  %v2469_v25 = vsel %vm1315_vm2, %v5645_v37, %v4627_v8  ;;  %v5646_v2 = vld [vmem:[#allocation2 + $0x48] sm:$0xff]  ;;  %v6828_v46 = vpack.i.bf16 %v1758_v4, %v1756_v21 }
 0x2bd   : > { %v2663_v9 = vsel %vm2658_vm11, %v2630_v41, %v4596_v15  ;;  %v2664_v6 = vsel %vm2658_vm11, %v2631_v27, %v4597_v51  ;;  %v2468_v47 = vsel %vm1315_vm2, %v5646_v2, %v4626_v10  ;;  %v1572_v38 = vrot.slane %v6782_v3, 1 }
 0x2be   : > { %4964 = vrot.lane.b32.xlu1 %v6759_v29, %s5681_s12  ;;  %v2696_v36 = vsel %vm2691_vm12, %v2663_v9, %v4601_v55  ;;  %v2697_v1 = vsel %vm2691_vm12, %v2664_v6, %v4602_v17  ;;  %v2500_v57 = vsel %vm417_vm1, %v2468_v47, %v4631_v34  ;;  %v4566_v26 = vunpack.i.l.bf16 %v6579_v33 }
 0x2bf   : > { %4939 = vrot.lane.b32.xlu0 %v6755_v14, %s5685_s18  ;;  %v2726_v19 = vpack.c.bf16 %v2697_v1, %v2696_v36  ;;  %v1573_v51 = vrot.slane %v6784_v61, 1  ;;  %v1575_v15 = vrot.slane %v6819_v16, 1  ;;  %v4587_v27 = vunpack.i.h.bf16 %v6609_v44 }
 0x2c0   : > { %v6799_v35 = vpop.permute.xlu1 %4684  ;;  %v6801_v53 = vpop.permute.xlu0 %4659  ;;  %v2533_v41 = vsel %vm2526_vm7, %v2500_v57, %v4566_v26  ;;  %v4586_v17 = vunpack.i.l.bf16 %v6609_v44  ;;  %v4657_v9 = vunpack.i.h.bf16 %v6734_v24  ;;  %v4656_v6 = vunpack.i.l.bf16 %v6734_v24 }
 0x2c1   : > { %4330 = vmatprep.mubr.msk.bf16.mxu0 %vm2759_vm13, %v2726_v19  ;;  %v1574_v56 = vsel %vm1506_vm5, %v1572_v38, %v1573_v51  ;;  %v1576_v11 = vsel %vm1506_vm5, %v1573_v51, %v1575_v15  ;;  %v4592_v44 = vunpack.i.h.bf16 %v6633_v49  ;;  %v4607_v21 = vunpack.i.h.bf16 %v6654_v30 }
 0x2c2   : > { %4974 = vrot.lane.b32.xlu1 %v4973_v20, %s5678_s27  ;;  %v2566_v36 = vsel %vm2559_vm8, %v2533_v41, %v4586_v17  ;;  %v6867_v10 = vpack.i.bf16 %v1576_v11, %v1574_v56  ;;  %v4606_v4 = vunpack.i.l.bf16 %v6654_v30  ;;  %v4611_v2 = vunpack.i.l.bf16 %v6705_v28  ;;  %v5648_v41 = vld [vmem:[#allocation2 + $0x60] sm:$0xff] }
 0x2c3   : > { %4954 = vrot.lane.b32.xlu0 %v6717_v59, %s5682_s15  ;;  %v2501_v59 = vsel %vm417_vm1, %v2469_v25, %v4632_v5  ;;  %v4612_v25 = vunpack.i.h.bf16 %v6705_v28  ;;  %v4662_v38 = vunpack.i.h.bf16 %v6801_v53  ;;  %v1751_v30 = vsel %vm1683_vm4, %v1749_v43, %v1750_v40  ;;  %v5647_v28 = vld [vmem:[#allocation2 + $0x68] sm:$0xff] }
 0x2c4   : > { %v4695_v13 = vpop.permute.xlu1 %4694  ;;  %v6815_v52 = vpop.permute.xlu0 %4674 }
 0x2c5   : > { %v4697_v19 = vunpack.i.h.bf16 %v4695_v13  ;;  %v4696_v18 = vunpack.i.l.bf16 %v4695_v13 }
 0x2c6   : > { %4984 = vrot.lane.b32.xlu1 %v4983_v50, %s5682_s15 }
 0x2c7   : > { %4959 = vrot.lane.b32.xlu0 %v6755_v14, %s5683_s16  ;;  %v2534_v14 = vsel %vm2526_vm7, %v2501_v59, %v4567_v31  ;;  %v4661_v31 = vunpack.i.l.bf16 %v6801_v53 }
 0x2c8   : > { %v6833_v23 = vpop.permute.xlu1 %4704  ;;  %v6835_v60 = vpop.permute.xlu0 %4679  ;;  %v2567_v1 = vsel %vm2559_vm8, %v2534_v14, %v4587_v27  ;;  %v2470_v14 = vsel %vm1315_vm2, %v5648_v41, %v4606_v4 }
 0x2c9   : > { %v2600_v22 = vsel %vm2592_vm9, %v2567_v1, %v4592_v44  ;;  %v2502_v27 = vsel %vm417_vm1, %v2470_v14, %v4611_v2  ;;  %v4681_v4 = vunpack.i.l.bf16 %v6835_v60  ;;  %v4707_v41 = vunpack.i.h.bf16 %v6833_v23 }
 0x2ca   : > { %4989 = vrot.lane.b32.xlu1 %v6828_v46, %s5683_s16  ;;  %v2633_v34 = vsel %vm2625_vm10, %v2600_v22, %v4657_v9  ;;  %v1452_v9 = vld [vmem:[#allocation2 + $0x180] sm:$0xff]  ;;  %v4706_v14 = vunpack.i.l.bf16 %v6833_v23 }
 0x2cb   : > { %4969 = vrot.lane.b32.xlu0 %v6759_v29, %s5678_s27  ;;  %v4591_v29 = vunpack.i.l.bf16 %v6633_v49  ;;  %v1752_v49 = vrot.slane %v6819_v16, 2  ;;  %v2666_v61 = vsel %vm2658_vm11, %v2633_v34, %v4697_v19  ;;  %v4652_v19 = vunpack.i.h.bf16 %v6780_v32 }
 0x2cc   : > { %v6847_v33 = vpop.permute.xlu1 %4709  ;;  %v6849_v55 = vpop.permute.xlu0 %4689  ;;  %v4676_v34 = vunpack.i.l.bf16 %v6815_v52 }
 0x2cd   : > { %v2599_v24 = vsel %vm2592_vm9, %v2566_v36, %v4591_v29  ;;  %v1753_v26 = vsel %vm1683_vm4, %v1750_v40, %v1752_v49  ;;  %v2535_v36 = vsel %vm2526_vm7, %v2502_v27, %v4661_v31  ;;  %v4712_v27 = vunpack.i.h.bf16 %v6847_v33 }
 0x2ce   : > { %5004 = vrot.lane.b32.xlu1 %v4983_v50, %s5680_s29  ;;  %v2632_v5 = vsel %vm2625_vm10, %v2599_v24, %v4656_v6  ;;  %v6900_v11 = vpack.i.bf16 %v1753_v26, %v1751_v30  ;;  %v1453_v6 = vld [vmem:[#allocation2 + $0x188] sm:$0xff]  ;;  %v1454_v24 = vld [vmem:[#allocation2 + $0x190] sm:$0x3]  ;;  %v2060_v26 = vrot.slane %v1452_v9, 2 }
 0x2cf   : > { %4979 = vrot.lane.b32.xlu0 %v4973_v20, %s5681_s12  ;;  %v2665_v3 = vsel %vm2658_vm11, %v2632_v5, %v4696_v18  ;;  %v4651_v18 = vunpack.i.l.bf16 %v6780_v32  ;;  %v6914_v49 = vpack.i.bf16 %v1453_v6, %v1452_v9  ;;  %v1959_v5 = vrot.slane %v1452_v9, 1 }
 0x2d0   : > { %v6865_v63 = vpop.permute.xlu1 %4724  ;;  %v4700_v8 = vpop.permute.xlu0 %4699  ;;  %v4677_v32 = vunpack.i.h.bf16 %v6815_v52 }
 0x2d1   : > { %v4702_v20 = vunpack.i.h.bf16 %v4700_v8  ;;  %v4701_v13 = vunpack.i.l.bf16 %v4700_v8 }
 0x2d2   : > { %5014 = vrot.lane.b32.xlu1 %v6867_v10, %s5684_s17 }
 0x2d3   : > { %v2699_v37 = vsel %vm2691_vm12, %v2666_v61, %v4702_v20  ;;  %v2698_v16 = vsel %vm2691_vm12, %v2665_v3, %v4701_v13  ;;  %4994 = vrot.lane.b32.xlu0 %v4983_v50, %s5684_s17  ;;  %v2471_v50 = vsel %vm1315_vm2, %v5647_v28, %v4607_v21  ;;  %v4682_v21 = vunpack.i.h.bf16 %v6835_v60 }
 0x2d4   : > { %v2727_v47 = vpack.c.bf16 %v2699_v37, %v2698_v16  ;;  %v6883_v57 = vpop.permute.xlu1 %4734  ;;  %v4715_v59 = vpop.permute.xlu0 %4714  ;;  %v2503_v53 = vsel %vm417_vm1, %v2471_v50, %v4612_v25  ;;  %v6928_v37 = vld [vmem:[#allocation2 + $0x170] sm:$0xff]  ;;  %v1960_v16 = vrot.slane %v1453_v6, 1  ;;  %v1962_v25 = vrot.slane %v1454_v24, 1 }
 0x2d5   : > { %v4717_v51 = vunpack.i.h.bf16 %v4715_v59  ;;  %v4716_v15 = vunpack.i.l.bf16 %v4715_v59  ;;  %v2536_v1 = vsel %vm2526_vm7, %v2503_v53, %v4662_v38  ;;  %v2061_v28 = vrot.slane %v1453_v6, 2  ;;  %v1451_v53 = vld [vmem:[#allocation2 + $0x178] sm:$0x3] }
 0x2d6   : > { %5024 = vrot.lane.b32.xlu1 %v6867_v10, %s5680_s29  ;;  %4331 = vmatmul.mubr.msk.bf16.gmra.mrb[52].mxu0 %vm2759_vm13, %v2727_v47  ;;  %v2063_v50 = vrot.slane %v1454_v24, 2 }
 0x2d7   : > { %4999 = vrot.lane.b32.xlu0 %v6828_v46, %s5685_s18  ;;  %v2568_v43 = vsel %vm2559_vm8, %v2535_v36, %v4716_v15  ;;  %v2569_v40 = vsel %vm2559_vm8, %v2536_v1, %v4717_v51  ;;  %v1961_v51 = vsel %vm1506_vm5, %v1959_v5, %v1960_v16  ;;  %v1963_v15 = vsel %vm1506_vm5, %v1960_v16, %v1962_v25 }
 0x2d8   : > { %v6898_v17 = vpop.permute.xlu1 %4744  ;;  %v4720_v56 = vpop.permute.xlu0 %4719  ;;  %v5063_v6 = vpack.i.bf16 %v1963_v15, %v1961_v51  ;;  %v2062_v23 = vsel %vm1683_vm4, %v2060_v26, %v2061_v28  ;;  %v4736_v26 = vunpack.i.l.bf16 %v6883_v57  ;;  %v4671_v15 = vunpack.i.l.bf16 %v6778_v0 }
 0x2d9   : > { %v4722_v44 = vunpack.i.h.bf16 %v4720_v56  ;;  %v4721_v29 = vunpack.i.l.bf16 %v4720_v56  ;;  %v4711_v56 = vunpack.i.l.bf16 %v6847_v33  ;;  %v5650_v33 = vld [vmem:[#allocation2 + $0x78] sm:$0xff] }
 0x2da   : > { %5029 = vrot.lane.b32.xlu1 %v6900_v11, %s5679_s28 }
 0x2db   : > { %v2601_v22 = vsel %vm2592_vm9, %v2568_v43, %v4721_v29  ;;  %v2602_v8 = vsel %vm2592_vm9, %v2569_v40, %v4722_v44  ;;  %5009 = vrot.lane.b32.xlu0 %v6828_v46, %s5679_s28  ;;  %v6926_v46 = vld [vmem:[#allocation2 + $0x168] sm:$0xff]  ;;  %v2064_v44 = vsel %vm1683_vm4, %v2061_v28, %v2063_v50  ;;  %v1583_v29 = vrot.slane %v6928_v37, 1 }
 0x2dc   : > { %v2634_v20 = vsel %vm2625_vm10, %v2601_v22, %v4651_v18  ;;  %v2635_v13 = vsel %vm2625_vm10, %v2602_v8, %v4652_v19  ;;  %v6920_v3 = vpop.permute.xlu1 %4749  ;;  %v6922_v61 = vpop.permute.xlu0 %4729  ;;  %v5053_v30 = vpack.i.bf16 %v6928_v37, %v6926_v46  ;;  %v1582_v1 = vrot.slane %v6926_v46, 1  ;;  %v5649_v18 = vld [vmem:[#allocation2 + $0x80] sm:$0xff] }
 0x2dd   : > { %v2667_v52 = vsel %vm2658_vm11, %v2634_v20, %v4676_v34  ;;  %v2668_v2 = vsel %vm2658_vm11, %v2635_v13, %v4677_v32  ;;  %v1585_v19 = vrot.slane %v1451_v53, 1  ;;  %v2473_v43 = vsel %vm1315_vm2, %v5649_v18, %v4707_v41 }
 0x2de   : > { %5044 = vrot.lane.b32.xlu1 %v6914_v49, %s5681_s12  ;;  %v2700_v47 = vsel %vm2691_vm12, %v2667_v52, %v4681_v4  ;;  %v2701_v60 = vsel %vm2691_vm12, %v2668_v2, %v4682_v21  ;;  %v2472_v40 = vsel %vm1315_vm2, %v5650_v33, %v4706_v14  ;;  %v2505_v24 = vsel %vm417_vm1, %v2473_v43, %v4712_v27 }
 0x2df   : > { %5019 = vrot.lane.b32.xlu0 %v6900_v11, %s5685_s18  ;;  %v2728_v31 = vpack.c.bf16 %v2701_v60, %v2700_v47  ;;  %v4647_v22 = vunpack.i.h.bf16 %v6715_v12  ;;  %v4646_v8 = vunpack.i.l.bf16 %v6715_v12  ;;  %v6973_v34 = vpack.i.bf16 %v2064_v44, %v2062_v23 }
 0x2e0   : > { %v6938_v59 = vpop.permute.xlu1 %4764  ;;  %v6940_v38 = vpop.permute.xlu0 %4739  ;;  %v1584_v20 = vsel %vm1506_vm5, %v1582_v1, %v1583_v29  ;;  %v1586_v13 = vsel %vm1506_vm5, %v1583_v29, %v1585_v19  ;;  %v4666_v12 = vunpack.i.l.bf16 %v6753_v42  ;;  %v1759_v16 = vrot.slane %v6926_v46, 2 }
 0x2e1   : > { %4334 = vmatprep.mubr.msk.bf16.mxu0 %vm2759_vm13, %v2728_v31  ;;  %v2538_v4 = vsel %vm2526_vm7, %v2505_v24, %v4647_v22  ;;  %v6990_v2 = vpack.i.bf16 %v1586_v13, %v1584_v20  ;;  %v1760_v47 = vrot.slane %v6928_v37, 2  ;;  %v1762_v60 = vrot.slane %v1451_v53, 2 }
 0x2e2   : > { %5054 = vrot.lane.b32.xlu1 %v5053_v30, %s5678_s27  ;;  %v4737_v31 = vunpack.i.h.bf16 %v6883_v57  ;;  %v4687_v29 = vunpack.i.h.bf16 %v6799_v35  ;;  %v4686_v19 = vunpack.i.l.bf16 %v6799_v35  ;;  %v4692_v33 = vunpack.i.h.bf16 %v6849_v55 }
 0x2e3   : > { %5034 = vrot.lane.b32.xlu0 %v6867_v10, %s5682_s15  ;;  %v2504_v10 = vsel %vm417_vm1, %v2472_v40, %v4711_v56  ;;  %v1761_v27 = vsel %vm1683_vm4, %v1759_v16, %v1760_v47  ;;  %v1763_v56 = vsel %vm1683_vm4, %v1760_v47, %v1762_v60  ;;  %v4691_v40 = vunpack.i.l.bf16 %v6849_v55 }
 0x2e4   : > { %v4775_v9 = vpop.permute.xlu1 %4774  ;;  %v6954_v36 = vpop.permute.xlu0 %4754  ;;  %v2537_v21 = vsel %vm2526_vm7, %v2504_v10, %v4646_v8  ;;  %v5093_v8 = vpack.i.bf16 %v1763_v56, %v1761_v27  ;;  %v4742_v20 = vunpack.i.h.bf16 %v6940_v38  ;;  %v4741_v13 = vunpack.i.l.bf16 %v6940_v38 }
 0x2e5   : > { %v4777_v28 = vunpack.i.h.bf16 %v4775_v9  ;;  %v4776_v50 = vunpack.i.l.bf16 %v4775_v9 }
 0x2e6   : > { %5064 = vrot.lane.b32.xlu1 %v5063_v6, %s5682_s15 }
 0x2e7   : > { %5039 = vrot.lane.b32.xlu0 %v6900_v11, %s5683_s16  ;;  %v4667_v11 = vunpack.i.h.bf16 %v6753_v42  ;;  %v2570_v42 = vsel %vm2559_vm8, %v2537_v21, %v4666_v12 }
 0x2e8   : > { %v6969_v5 = vpop.permute.xlu1 %4784  ;;  %v6971_v32 = vpop.permute.xlu0 %4759  ;;  %v2603_v41 = vsel %vm2592_vm9, %v2570_v42, %v4671_v15 }
 0x2e9   : > { %v2571_v51 = vsel %vm2559_vm8, %v2538_v4, %v4667_v11  ;;  %v5652_v11 = vld [vmem:[#allocation2 + $0x90] sm:$0xff]  ;;  %v4762_v39 = vunpack.i.h.bf16 %v6971_v32  ;;  %v4761_v62 = vunpack.i.l.bf16 %v6971_v32  ;;  %v4786_v48 = vunpack.i.l.bf16 %v6969_v5 }
 0x2ea   : > { %5069 = vrot.lane.b32.xlu1 %v6973_v34, %s5683_s16  ;;  %v2474_v55 = vsel %vm1315_vm2, %v5652_v11, %v4686_v19  ;;  %v5653_v19 = vld [vmem:[#allocation2 + $0xb0] sm:$0xff] }
 0x2eb   : > { %5049 = vrot.lane.b32.xlu0 %v6914_v49, %s5678_s27  ;;  %v4672_v49 = vunpack.i.h.bf16 %v6778_v0  ;;  %v2636_v0 = vsel %vm2625_vm10, %v2603_v41, %v4736_v26  ;;  %v2506_v16 = vsel %vm417_vm1, %v2474_v55, %v4691_v40 }
 0x2ec   : > { %v6986_v25 = vpop.permute.xlu1 %4789  ;;  %v6988_v52 = vpop.permute.xlu0 %4769  ;;  %v2669_v44 = vsel %vm2658_vm11, %v2636_v0, %v4776_v50  ;;  %v2539_v60 = vsel %vm2526_vm7, %v2506_v16, %v4741_v13  ;;  %v4747_v13 = vunpack.i.h.bf16 %v6898_v17  ;;  %v4751_v16 = vunpack.i.l.bf16 %v6920_v3 }
 0x2ed   : > { %v2604_v14 = vsel %vm2592_vm9, %v2571_v51, %v4672_v49  ;;  %v4732_v51 = vunpack.i.h.bf16 %v6922_v61  ;;  %v4731_v49 = vunpack.i.l.bf16 %v6922_v61  ;;  %v4756_v61 = vunpack.i.l.bf16 %v6954_v36 }
 0x2ee   : > { %5079 = vrot.lane.b32.xlu1 %v6990_v2, %s5684_s17  ;;  %v2637_v9 = vsel %vm2625_vm10, %v2604_v14, %v4737_v31  ;;  %v4757_v14 = vunpack.i.h.bf16 %v6954_v36  ;;  %v4792_v54 = vunpack.i.h.bf16 %v6986_v25 }
 0x2ef   : > { %5059 = vrot.lane.b32.xlu0 %v5053_v30, %s5681_s12  ;;  %v2670_v30 = vsel %vm2658_vm11, %v2637_v9, %v4777_v28  ;;  %s7475_s12 = scalar_lea.vmem %s7582_s10, %s4166_s19 }
 0x2f0   : > { %v7004_v57 = vpop.permute.xlu1 %4804  ;;  %v4780_v53 = vpop.permute.xlu0 %4779 }
 0x2f1   : > { %v4782_v1 = vunpack.i.h.bf16 %v4780_v53  ;;  %v4781_v23 = vunpack.i.l.bf16 %v4780_v53 }
 0x2f2   : > { %5089 = vrot.lane.b32.xlu1 %v6990_v2, %s5680_s29 }
 0x2f3   : > { %v2703_v18 = vsel %vm2691_vm12, %v2670_v30, %v4782_v1  ;;  %v2702_v43 = vsel %vm2691_vm12, %v2669_v44, %v4781_v23  ;;  %5074 = vrot.lane.b32.xlu0 %v5063_v6, %s5684_s17  ;;  %v5651_v6 = vld [vmem:[#allocation2 + $0x98] sm:$0xff]  ;;  %v4787_v44 = vunpack.i.h.bf16 %v6969_v5 }
 0x2f4   : > { %v2729_v10 = vpack.c.bf16 %v2703_v18, %v2702_v43  ;;  %v7021_v24 = vpop.permute.xlu1 %4814  ;;  %v4795_v22 = vpop.permute.xlu0 %4794  ;;  %v2475_v4 = vsel %vm1315_vm2, %v5651_v6, %v4687_v29  ;;  %v5654_v43 = vld [vmem:[#allocation2 + $0xa8] sm:$0xff] }
 0x2f5   : > { %v4797_v35 = vunpack.i.h.bf16 %v4795_v22  ;;  %v4796_v21 = vunpack.i.l.bf16 %v4795_v22  ;;  %v2507_v12 = vsel %vm417_vm1, %v2475_v4, %v4692_v33  ;;  %v2477_v18 = vsel %vm1315_vm2, %v5653_v19, %v4787_v44  ;;  %v5655_v44 = vld [vmem:[#allocation2 + $0xc8] sm:$0xff] }
 0x2f6   : > { %5094 = vrot.lane.b32.xlu1 %v5093_v8, %s5679_s28  ;;  %4335 = vmatmul.mubr.msk.bf16.gmra.mrb[56].mxu0 %vm2759_vm13, %v2729_v10  ;;  %v2540_v31 = vsel %vm2526_vm7, %v2507_v12, %v4742_v20  ;;  %v2476_v33 = vsel %vm1315_vm2, %v5654_v43, %v4786_v48  ;;  %v2509_v40 = vsel %vm417_vm1, %v2477_v18, %v4792_v54  ;;  %v4727_v10 = vunpack.i.h.bf16 %v6865_v63 }
 0x2f7   : > { %5084 = vrot.lane.b32.xlu0 %v5093_v8, %s5685_s18  ;;  %v2572_v15 = vsel %vm2559_vm8, %v2539_v60, %v4796_v21  ;;  %v2573_v28 = vsel %vm2559_vm8, %v2540_v31, %v4797_v35  ;;  %v4746_v35 = vunpack.i.l.bf16 %v6898_v17  ;;  %v4817_v4 = vunpack.i.h.bf16 %v7021_v24 }
 0x2f8   : > { %v7032_v47 = vpop.permute.xlu1 %4824  ;;  %v4800_v38 = vpop.permute.xlu0 %4799  ;;  %v2542_v20 = vsel %vm2526_vm7, %v2509_v40, %v4727_v10  ;;  %v4752_v12 = vunpack.i.h.bf16 %v6920_v3 }
 0x2f9   : > { %v4802_v26 = vunpack.i.h.bf16 %v4800_v38  ;;  %v4801_v42 = vunpack.i.l.bf16 %v4800_v38  ;;  %v2575_v55 = vsel %vm2559_vm8, %v2542_v20, %v4747_v13 }
 0x2fa   : > { %5099 = vrot.lane.b32.xlu1 %v5098_v7, %s5684_s17  ;;  %v2608_v31 = vsel %vm2592_vm9, %v2575_v55, %v4752_v12 }
 0x2fb   : > { %v2605_v50 = vsel %vm2592_vm9, %v2572_v15, %v4801_v42  ;;  %v2606_v41 = vsel %vm2592_vm9, %v2573_v28, %v4802_v26  ;;  %5104 = vrot.lane.b32.xlu0 %v6990_v2, %s5682_s15 }
 0x2fc   : > { %v2638_v53 = vsel %vm2625_vm10, %v2605_v50, %v4731_v49  ;;  %v2639_v27 = vsel %vm2625_vm10, %v2606_v41, %v4732_v51  ;;  %v7052_v56 = vpop.permute.xlu1 %4829  ;;  %v7054_v0 = vpop.permute.xlu0 %4809 }
 0x2fd   : > { %v2671_v7 = vsel %vm2658_vm11, %v2638_v53, %v4756_v61  ;;  %v2672_v36 = vsel %vm2658_vm11, %v2639_v27, %v4757_v14  ;;  %v4767_v14 = vunpack.i.h.bf16 %v6938_v59  ;;  %v4766_v61 = vunpack.i.l.bf16 %v6938_v59  ;;  %v5656_v59 = vld [vmem:[#allocation2 + $0xc0] sm:$0xff] }
 0x2fe   : > { %5119 = vrot.lane.b32.xlu1 %v5118_v45, %s5685_s18  ;;  %v2704_v2 = vsel %vm2691_vm12, %v2671_v7, %v4761_v62  ;;  %v2705_v9 = vsel %vm2691_vm12, %v2672_v36, %v4762_v39  ;;  %v4791_v45 = vunpack.i.l.bf16 %v6986_v25  ;;  %v4726_v25 = vunpack.i.l.bf16 %v6865_v63 }
 0x2ff   : > { %5109 = vrot.lane.b32.xlu0 %v5093_v8, %s5683_s16  ;;  %v2730_v32 = vpack.c.bf16 %v2705_v9, %v2704_v2  ;;  %v4816_v63 = vunpack.i.l.bf16 %v7021_v24  ;;  %v2641_v24 = vsel %vm2625_vm10, %v2608_v31, %v4817_v4  ;;  %v4772_v39 = vunpack.i.h.bf16 %v6988_v52 }
 0x300   : > { %v7067_v1 = vpop.permute.xlu1 %4844  ;;  %v7069_v23 = vpop.permute.xlu0 %4819  ;;  %v2508_v5 = vsel %vm417_vm1, %v2476_v33, %v4791_v45  ;;  %v4771_v62 = vunpack.i.l.bf16 %v6988_v52  ;;  %v2479_v48 = vsel %vm1315_vm2, %v5655_v44, %v4767_v14  ;;  %v2478_v54 = vsel %vm1315_vm2, %v5656_v59, %v4766_v61 }
 0x301   : > { %4338 = vmatprep.mubr.msk.bf16.mxu0 %vm2759_vm13, %v2730_v32  ;;  %v2541_v8 = vsel %vm2526_vm7, %v2508_v5, %v4726_v25  ;;  %v4822_v36 = vunpack.i.h.bf16 %v7069_v23  ;;  %v4821_v2 = vunpack.i.l.bf16 %v7069_v23  ;;  %v4812_v5 = vunpack.i.h.bf16 %v7054_v0 }
 0x302   : > { %v2574_v11 = vsel %vm2559_vm8, %v2541_v8, %v4746_v35  ;;  %v2510_v52 = vsel %vm417_vm1, %v2478_v54, %v4771_v62  ;;  %v4811_v40 = vunpack.i.l.bf16 %v7054_v0  ;;  %v4806_v62 = vunpack.i.l.bf16 %v7004_v57 }
 0x303   : > { %5114 = vrot.lane.b32.xlu0 %v6973_v34, %s5685_s18  ;;  %v2607_v17 = vsel %vm2592_vm9, %v2574_v11, %v4751_v16  ;;  %v2543_v18 = vsel %vm2526_vm7, %v2510_v52, %v4821_v2  ;;  %v4827_v2 = vunpack.i.h.bf16 %v7032_v47  ;;  %v4831_v52 = vunpack.i.l.bf16 %v7052_v56 }
 0x304   : > { %v4855_v30 = vpop.permute.xlu1 %4854  ;;  %v7078_v29 = vpop.permute.xlu0 %4834  ;;  %v2640_v51 = vsel %vm2625_vm10, %v2607_v17, %v4816_v63 }
 0x305   : > { %v4857_v38 = vunpack.i.h.bf16 %v4855_v30  ;;  %v4856_v60 = vunpack.i.l.bf16 %v4855_v30  ;;  %v2511_v30 = vsel %vm417_vm1, %v2479_v48, %v4772_v39  ;;  %v4837_v8 = vunpack.i.h.bf16 %v7078_v29 }
 0x306   : > { %v2544_v23 = vsel %vm2526_vm7, %v2511_v30, %v4822_v36  ;;  %v4836_v20 = vunpack.i.l.bf16 %v7078_v29  ;;  %v4832_v30 = vunpack.i.h.bf16 %v7052_v56  ;;  %v4847_v56 = vunpack.i.h.bf16 %v7067_v1 }
 0x307   : > { %v2673_v28 = vsel %vm2658_vm11, %v2640_v51, %v4856_v60  ;;  %v2674_v50 = vsel %vm2658_vm11, %v2641_v24, %v4857_v38 }
 0x308   : > { %v7086_v22 = vpop.permute.xlu1 %4864  ;;  %v7088_v34 = vpop.permute.xlu0 %4839 }
 0x309   : > { %v4842_v63 = vunpack.i.h.bf16 %v7088_v34  ;;  %v4841_v11 = vunpack.i.l.bf16 %v7088_v34  ;;  %v4867_v34 = vunpack.i.h.bf16 %v7086_v22  ;;  %v4866_v51 = vunpack.i.l.bf16 %v7086_v22 }
 0x30a   : > { %v4807_v22 = vunpack.i.h.bf16 %v7004_v57 }
 0x30c   : > { %v7094_v21 = vpop.permute.xlu1 %4869  ;;  %v7096_v6 = vpop.permute.xlu0 %4849 }
 0x30d   : > { %v4872_v24 = vunpack.i.h.bf16 %v7094_v21 }
 0x310   : > { %v7106_v26 = vpop.permute.xlu1 %4884  ;;  %v4860_v42 = vpop.permute.xlu0 %4859 }
 0x311   : > { %v4862_v49 = vunpack.i.h.bf16 %v4860_v42  ;;  %v4861_v15 = vunpack.i.l.bf16 %v4860_v42 }
 0x313   : > { %v2707_v3 = vsel %vm2691_vm12, %v2674_v50, %v4862_v49  ;;  %v2706_v41 = vsel %vm2691_vm12, %v2673_v28, %v4861_v15  ;;  %v4871_v49 = vunpack.i.l.bf16 %v7094_v21  ;;  %v5657_v50 = vld [vmem:[#allocation2 + $0xe0] sm:$0xff] }
 0x314   : > { %v2731_v53 = vpack.c.bf16 %v2707_v3, %v2706_v41  ;;  %v7116_v27 = vpop.permute.xlu1 %4894  ;;  %v4875_v7 = vpop.permute.xlu0 %4874  ;;  %v2481_v3 = vsel %vm1315_vm2, %v5657_v50, %v4867_v34  ;;  %v5658_v41 = vld [vmem:[#allocation2 + $0xd8] sm:$0xff] }
 0x315   : > { %v4877_v9 = vunpack.i.h.bf16 %v4875_v7  ;;  %v4876_v32 = vunpack.i.l.bf16 %v4875_v7  ;;  %v2480_v14 = vsel %vm1315_vm2, %v5658_v41, %v4866_v51  ;;  %v4897_v48 = vunpack.i.h.bf16 %v7116_v27  ;;  %v5660_v51 = vld [vmem:[#allocation2 + $0xf0] sm:$0xff] }
 0x316   : > { %4339 = vmatmul.mubr.msk.bf16.gmra.mrb[60].mxu0 %vm2759_vm13, %v2731_v53  ;;  %v2512_v61 = vsel %vm417_vm1, %v2480_v14, %v4871_v49  ;;  %v2513_v53 = vsel %vm417_vm1, %v2481_v3, %v4872_v24  ;;  %v4896_v59 = vunpack.i.l.bf16 %v7116_v27 }
 0x317   : > { %v2576_v10 = vsel %vm2559_vm8, %v2543_v18, %v4876_v32  ;;  %v2577_v25 = vsel %vm2559_vm8, %v2544_v23, %v4877_v9  ;;  %v2545_v7 = vsel %vm2526_vm7, %v2512_v61, %v4806_v62  ;;  %v2546_v36 = vsel %vm2526_vm7, %v2513_v53, %v4807_v22 }
 0x318   : > { %v7125_v45 = vpop.permute.xlu1 %4904  ;;  %v4880_v19 = vpop.permute.xlu0 %4879  ;;  %v4826_v9 = vunpack.i.l.bf16 %v7032_v47  ;;  %v2579_v54 = vsel %vm2559_vm8, %v2546_v36, %v4827_v2 }
 0x319   : > { %v4882_v43 = vunpack.i.h.bf16 %v4880_v19  ;;  %v4881_v33 = vunpack.i.l.bf16 %v4880_v19 }
 0x31a   : > { %v2578_v57 = vsel %vm2559_vm8, %v2545_v7, %v4826_v9 }
 0x31b   : > { %v2609_v13 = vsel %vm2592_vm9, %v2576_v10, %v4881_v33  ;;  %v2610_v35 = vsel %vm2592_vm9, %v2577_v25, %v4882_v43  ;;  %v2611_v47 = vsel %vm2592_vm9, %v2578_v57, %v4831_v52  ;;  %v2612_v43 = vsel %vm2592_vm9, %v2579_v54, %v4832_v30 }
 0x31c   : > { %v7139_v4 = vpop.permute.xlu1 %4909  ;;  %v2642_v0 = vsel %vm2625_vm10, %v2609_v13, %v4811_v40  ;;  %v2643_v55 = vsel %vm2625_vm10, %v2610_v35, %v4812_v5  ;;  %v7145_v12 = vpop.permute.xlu0 %4889  ;;  %v2644_v5 = vsel %vm2625_vm10, %v2611_v47, %v4896_v59  ;;  %v2645_v27 = vsel %vm2625_vm10, %v2612_v43, %v4897_v48  ;;  %v3213_v47 = vld [vmem:[%s7579_s7] sm:$0x1] }
 0x31d   : > { %v2675_v16 = vsel %vm2658_vm11, %v2642_v0, %v4836_v20  ;;  %v2676_v29 = vsel %vm2658_vm11, %v2643_v55, %v4837_v8  ;;  %v4846_v20 = vunpack.i.l.bf16 %v7067_v1  ;;  %v4851_v0 = vunpack.i.l.bf16 %v7096_v6  ;;  %v5659_v1 = vld [vmem:[#allocation2 + $0xf8] sm:$0xff]  ;;  %4465 = vmatprep.subr.msk.bf16.mxu1 %vm2808_vm6, %v3213_v47 }
 0x31e   : > { %v2708_v38 = vsel %vm2691_vm12, %v2675_v16, %v4841_v11  ;;  %v2709_v60 = vsel %vm2691_vm12, %v2676_v29, %v4842_v63  ;;  %v4852_v11 = vunpack.i.h.bf16 %v7096_v6  ;;  %v2483_v34 = vsel %vm1315_vm2, %v5659_v1, %v4847_v56 }
 0x31f   : > { %v2732_v31 = vpack.c.bf16 %v2709_v60, %v2708_v38  ;;  %v2482_v24 = vsel %vm1315_vm2, %v5660_v51, %v4846_v20  ;;  %v4892_v61 = vunpack.i.h.bf16 %v7145_v12  ;;  %v4891_v53 = vunpack.i.l.bf16 %v7145_v12  ;;  %v5661_v20 = vld [vmem:[#allocation2 + $0x110] sm:$0xff] }
 0x320   : > { %v7151_v17 = vpop.permute.xlu1 %4924  ;;  %v7153_v42 = vpop.permute.xlu0 %4899  ;;  %v2515_v6 = vsel %vm417_vm1, %v2483_v34, %v4852_v11  ;;  %v4906_v1 = vunpack.i.l.bf16 %v7125_v45 }
 0x321   : > { %4342 = vmatprep.mubr.msk.bf16.mxu0 %vm2759_vm13, %v2732_v31  ;;  %v4902_v29 = vunpack.i.h.bf16 %v7153_v42  ;;  %v4901_v38 = vunpack.i.l.bf16 %v7153_v42 }
 0x323   : > { %v2548_v42 = vsel %vm2526_vm7, %v2515_v6, %v4902_v29  ;;  %v4886_v29 = vunpack.i.l.bf16 %v7106_v26 }
 0x324   : > { %v4935_v15 = vpop.permute.xlu1 %4934  ;;  %v7160_v28 = vpop.permute.xlu0 %4914 }
 0x325   : > { %v4937_v19 = vunpack.i.h.bf16 %v4935_v15  ;;  %v4936_v18 = vunpack.i.l.bf16 %v4935_v15  ;;  %v2514_v15 = vsel %vm417_vm1, %v2482_v24, %v4851_v0  ;;  %v4917_v7 = vunpack.i.h.bf16 %v7160_v28 }
 0x326   : > { %v2547_v3 = vsel %vm2526_vm7, %v2514_v15, %v4901_v38  ;;  %v4916_v36 = vunpack.i.l.bf16 %v7160_v28 }
 0x327   : > { %v2677_v25 = vsel %vm2658_vm11, %v2644_v5, %v4936_v18  ;;  %v2678_v8 = vsel %vm2658_vm11, %v2645_v27, %v4937_v19 }
 0x328   : > { %v7166_v39 = vpop.permute.xlu1 %4944 }
 0x329   : > { %v7170_v21 = vpop.permute.xlu0 %4919  ;;  %v4947_v27 = vunpack.i.h.bf16 %v7166_v39 }
 0x32a   : > { %v4922_v59 = vunpack.i.h.bf16 %v7170_v21  ;;  %v4921_v57 = vunpack.i.l.bf16 %v7170_v21 }
 0x32c   : > { %v7176_v32 = vpop.permute.xlu1 %4949 }
 0x32d   : > { %v7178_v44 = vpop.permute.xlu0 %4929 }
 0x330   : > { %v7186_v23 = vpop.permute.xlu1 %4964 }
 0x331   : > { %v4940_v33 = vpop.permute.xlu0 %4939 }
 0x332   : > { %v4942_v40 = vunpack.i.h.bf16 %v4940_v33  ;;  %v4941_v10 = vunpack.i.l.bf16 %v4940_v33  ;;  %v3428_v33 = vsel %vm2808_vm6, %v3213_v47, 0  ;;  %v5663_v47 = vld [vmem:[#allocation2 + $0x128] sm:$0xff] }
 0x333   : > { %4393 = vmatpush3.bf16.msra.mxu1 %v3428_v33  ;;  %v5664_v33 = vld [vmem:[#allocation2 + $0x120] sm:$0xff] }
 0x334   : > { %v2711_v13 = vsel %vm2691_vm12, %v2678_v8, %v4942_v40  ;;  %v2710_v35 = vsel %vm2691_vm12, %v2677_v25, %v4941_v10  ;;  %v7198_v63 = vpop.permute.xlu1 %4974  ;;  %v4946_v40 = vunpack.i.l.bf16 %v7166_v39  ;;  %v4952_v10 = vunpack.i.h.bf16 %v7176_v32 }
 0x335   : > { %v2733_v55 = vpack.c.bf16 %v2711_v13, %v2710_v35  ;;  %v4955_v16 = vpop.permute.xlu0 %4954  ;;  %v4951_v25 = vunpack.i.l.bf16 %v7176_v32  ;;  %v2485_v13 = vsel %vm1315_vm2, %v5661_v20, %v4947_v27  ;;  %v5662_v35 = vld [vmem:[#allocation2 + $0x108] sm:$0xff]  ;;  %v4887_v39 = vunpack.i.h.bf16 %v7106_v26 }
 0x336   : > { %v4957_v60 = vunpack.i.h.bf16 %v4955_v16  ;;  %v4956_v31 = vunpack.i.l.bf16 %v4955_v16  ;;  %v2484_v11 = vsel %vm1315_vm2, %v5662_v35, %v4946_v40  ;;  %v4977_v24 = vunpack.i.h.bf16 %v7198_v63 }
 0x337   : > { %4343 = vmatmul.mubr.msk.bf16.gmra.mrb[64].mxu0 %vm2759_vm13, %v2733_v55  ;;  %v2516_v0 = vsel %vm417_vm1, %v2484_v11, %v4951_v25  ;;  %v2517_v55 = vsel %vm417_vm1, %v2485_v13, %v4952_v10  ;;  %v4976_v6 = vunpack.i.l.bf16 %v7198_v63 }
 0x338   : > { %v7207_v49 = vpop.permute.xlu1 %4984  ;;  %v2580_v22 = vsel %vm2559_vm8, %v2547_v3, %v4956_v31  ;;  %v2581_v62 = vsel %vm2559_vm8, %v2548_v42, %v4957_v60  ;;  %v2549_v38 = vsel %vm2526_vm7, %v2516_v0, %v4886_v29  ;;  %v2550_v60 = vsel %vm2526_vm7, %v2517_v55, %v4887_v39 }
 0x339   : > { %v4960_v50 = vpop.permute.xlu0 %4959  ;;  %v4907_v31 = vunpack.i.h.bf16 %v7125_v45  ;;  %v2582_v26 = vsel %vm2559_vm8, %v2549_v38, %v4906_v1  ;;  %v4911_v3 = vunpack.i.l.bf16 %v7139_v4  ;;  %v4927_v45 = vunpack.i.h.bf16 %v7151_v17 }
 0x33a   : > { %v4962_v41 = vunpack.i.h.bf16 %v4960_v50  ;;  %v4961_v14 = vunpack.i.l.bf16 %v4960_v50  ;;  %v4912_v50 = vunpack.i.h.bf16 %v7139_v4  ;;  %v4932_v4 = vunpack.i.h.bf16 %v7178_v44 }
 0x33b   : > { %v2583_v15 = vsel %vm2559_vm8, %v2550_v60, %v4907_v31 }
 0x33c   : > { %v2613_v2 = vsel %vm2592_vm9, %v2580_v22, %v4961_v14  ;;  %v2614_v9 = vsel %vm2592_vm9, %v2581_v62, %v4962_v41  ;;  %v7221_v48 = vpop.permute.xlu1 %4989 }
 0x33d   : > { %v2646_v12 = vsel %vm2625_vm10, %v2613_v2, %v4891_v53  ;;  %v2647_v54 = vsel %vm2625_vm10, %v2614_v9, %v4892_v61  ;;  %v7227_v30 = vpop.permute.xlu0 %4969  ;;  %v2615_v61 = vsel %vm2592_vm9, %v2582_v26, %v4911_v3  ;;  %v2616_v53 = vsel %vm2592_vm9, %v2583_v15, %v4912_v50  ;;  %v5665_v26 = vld [vmem:[#allocation2 + $0x138] sm:$0xff] }
 0x33e   : > { %v2679_v52 = vsel %vm2658_vm11, %v2646_v12, %v4916_v36  ;;  %v2680_v28 = vsel %vm2658_vm11, %v2647_v54, %v4917_v7  ;;  %v2648_v63 = vsel %vm2625_vm10, %v2615_v61, %v4976_v6  ;;  %v2649_v62 = vsel %vm2625_vm10, %v2616_v53, %v4977_v24 }
 0x33f   : > { %v2712_v19 = vsel %vm2691_vm12, %v2679_v52, %v4921_v57  ;;  %v2713_v18 = vsel %vm2691_vm12, %v2680_v28, %v4922_v59  ;;  %v4926_v2 = vunpack.i.l.bf16 %v7151_v17  ;;  %v4931_v57 = vunpack.i.l.bf16 %v7178_v44 }
 0x340   : > { %v7236_v43 = vpop.permute.xlu1 %5004  ;;  %v2734_v21 = vpack.c.bf16 %v2713_v18, %v2712_v19 }
 0x341   : > { %v7240_v5 = vpop.permute.xlu0 %4979  ;;  %v2486_v27 = vsel %vm1315_vm2, %v5664_v33, %v4926_v2 }
 0x342   : > { %4346 = vmatprep.mubr.msk.bf16.mxu0 %vm2759_vm13, %v2734_v21  ;;  %v4982_v28 = vunpack.i.h.bf16 %v7240_v5  ;;  %v4981_v19 = vunpack.i.l.bf16 %v7240_v5  ;;  %v2487_v21 = vsel %vm1315_vm2, %v5663_v47, %v4927_v45  ;;  %v2518_v25 = vsel %vm417_vm1, %v2486_v27, %v4931_v57 }
 0x343   : > { %v2519_v44 = vsel %vm417_vm1, %v2487_v21, %v4932_v4  ;;  %v4971_v5 = vunpack.i.l.bf16 %v7227_v30  ;;  %v4986_v57 = vunpack.i.l.bf16 %v7207_v49  ;;  %v5007_v47 = vunpack.i.h.bf16 %v7236_v43 }
 0x344   : > { %v5015_v8 = vpop.permute.xlu1 %5014  ;;  %v2551_v35 = vsel %vm2526_vm7, %v2518_v25, %v4981_v19  ;;  %v2552_v11 = vsel %vm2526_vm7, %v2519_v44, %v4982_v28  ;;  %v4987_v28 = vunpack.i.h.bf16 %v7207_v49  ;;  %v5006_v44 = vunpack.i.l.bf16 %v7236_v43 }
 0x345   : > { %v7247_v56 = vpop.permute.xlu0 %4994  ;;  %v5017_v42 = vunpack.i.h.bf16 %v5015_v8  ;;  %v5016_v41 = vunpack.i.l.bf16 %v5015_v8  ;;  %v4972_v8 = vunpack.i.h.bf16 %v7227_v30 }
 0x346   : > { %v4997_v29 = vunpack.i.h.bf16 %v7247_v56  ;;  %v4996_v30 = vunpack.i.l.bf16 %v7247_v56 }
 0x347   : > { %v2681_v9 = vsel %vm2658_vm11, %v2648_v63, %v5016_v41  ;;  %v2682_v59 = vsel %vm2658_vm11, %v2649_v62, %v5017_v42  ;;  %v5666_v42 = vld [vmem:[#allocation2 + $0x140] sm:$0xff] }
 0x348   : > { %v7253_v16 = vpop.permute.xlu1 %5024 }
 0x349   : > { %v7257_v32 = vpop.permute.xlu0 %4999  ;;  %v5026_v20 = vunpack.i.l.bf16 %v7253_v16  ;;  %v5027_v0 = vunpack.i.h.bf16 %v7253_v16 }
 0x34a   : > { %v5002_v1 = vunpack.i.h.bf16 %v7257_v32  ;;  %v5001_v15 = vunpack.i.l.bf16 %v7257_v32 }
 0x34b   : > { %v2488_v16 = vsel %vm1315_vm2, %v5665_v26, %v5026_v20  ;;  %v2489_v56 = vsel %vm1315_vm2, %v5666_v42, %v5027_v0 }
 0x34c   : > { %v7263_v34 = vpop.permute.xlu1 %5029 }
 0x34d   : > { %v7265_v51 = vpop.permute.xlu0 %5009  ;;  %v5031_v55 = vunpack.i.l.bf16 %v7263_v34  ;;  %v5032_v38 = vunpack.i.h.bf16 %v7263_v34 }
 0x34e   : > { %v5012_v49 = vunpack.i.h.bf16 %v7265_v51 }
 0x34f   : > { %v2520_v41 = vsel %vm417_vm1, %v2488_v16, %v5031_v55  ;;  %v2521_v32 = vsel %vm417_vm1, %v2489_v56, %v5032_v38 }
 0x350   : > { %v7273_v14 = vpop.permute.xlu1 %5044 }
 0x351   : > { %v5020_v22 = vpop.permute.xlu0 %5019 }
 0x352   : > { %v5022_v7 = vunpack.i.h.bf16 %v5020_v22  ;;  %v5021_v36 = vunpack.i.l.bf16 %v5020_v22  ;;  %v4966_v22 = vunpack.i.l.bf16 %v7186_v23 }
 0x354   : > { %v2715_v12 = vsel %vm2691_vm12, %v2682_v59, %v5022_v7  ;;  %v2714_v54 = vsel %vm2691_vm12, %v2681_v9, %v5021_v36  ;;  %v7287_v52 = vpop.permute.xlu1 %5054  ;;  %v4967_v7 = vunpack.i.h.bf16 %v7186_v23  ;;  %v2553_v4 = vsel %vm2526_vm7, %v2520_v41, %v4966_v22 }
 0x355   : > { %v2735_v18 = vpack.c.bf16 %v2715_v12, %v2714_v54  ;;  %v5035_v17 = vpop.permute.xlu0 %5034  ;;  %v4992_v23 = vunpack.i.h.bf16 %v7221_v48  ;;  %v5056_v19 = vunpack.i.l.bf16 %v7287_v52  ;;  %v5057_v21 = vunpack.i.h.bf16 %v7287_v52 }
 0x356   : > { %v5037_v40 = vunpack.i.h.bf16 %v5035_v17  ;;  %v5036_v10 = vunpack.i.l.bf16 %v5035_v17  ;;  %v2554_v12 = vsel %vm2526_vm7, %v2521_v32, %v4967_v7  ;;  %v4991_v17 = vunpack.i.l.bf16 %v7221_v48 }
 0x357   : > { %4347 = vmatmul.mubr.msk.bf16.gmra.mrb[68].mxu0 %vm2759_vm13, %v2735_v18  ;;  %v2586_v18 = vsel %vm2559_vm8, %v2553_v4, %v4986_v57  ;;  %v2587_v33 = vsel %vm2559_vm8, %v2554_v12, %v4987_v28  ;;  %v4487_v32 = vunpack.i.h.bf16 %v6503_v58 }
 0x358   : > { %v7299_v13 = vpop.permute.xlu1 %5064  ;;  %v2584_v24 = vsel %vm2559_vm8, %v2551_v35, %v5036_v10  ;;  %v2585_v6 = vsel %vm2559_vm8, %v2552_v11, %v5037_v40  ;;  %v5011_v40 = vunpack.i.l.bf16 %v7265_v51  ;;  %v5047_v10 = vunpack.i.h.bf16 %v7273_v14 }
 0x359   : > { %v5040_v39 = vpop.permute.xlu0 %5039  ;;  %v2619_v48 = vsel %vm2592_vm9, %v2586_v18, %v4991_v17  ;;  %v2620_v52 = vsel %vm2592_vm9, %v2587_v33, %v4992_v23  ;;  %v5067_v51 = vunpack.i.h.bf16 %v7299_v13  ;;  %v5066_v55 = vunpack.i.l.bf16 %v7299_v13 }
 0x35a   : > { %v5042_v60 = vunpack.i.h.bf16 %v5040_v39  ;;  %v5041_v31 = vunpack.i.l.bf16 %v5040_v39  ;;  %v2652_v35 = vsel %vm2625_vm10, %v2619_v48, %v5056_v19  ;;  %v2653_v0 = vsel %vm2625_vm10, %v2620_v52, %v5057_v21 }
 0x35c   : > { %v2617_v50 = vsel %vm2592_vm9, %v2584_v24, %v5041_v31  ;;  %v2618_v3 = vsel %vm2592_vm9, %v2585_v6, %v5042_v60  ;;  %v7315_v34 = vpop.permute.xlu1 %5069 }
 0x35d   : > { %v2650_v45 = vsel %vm2625_vm10, %v2617_v50, %v4971_v5  ;;  %v2651_v61 = vsel %vm2625_vm10, %v2618_v3, %v4972_v8  ;;  %v7321_v53 = vpop.permute.xlu0 %5049  ;;  %v5046_v8 = vunpack.i.l.bf16 %v7273_v14  ;;  %v5072_v39 = vunpack.i.h.bf16 %v7315_v34 }
 0x35e   : > { %v2683_v63 = vsel %vm2658_vm11, %v2650_v45, %v4996_v30  ;;  %v2684_v62 = vsel %vm2658_vm11, %v2651_v61, %v4997_v29  ;;  %v5071_v14 = vunpack.i.l.bf16 %v7315_v34  ;;  %v5051_v28 = vunpack.i.l.bf16 %v7321_v53 }
 0x35f   : > { %v2716_v36 = vsel %vm2691_vm12, %v2683_v63, %v5001_v15  ;;  %v2717_v2 = vsel %vm2691_vm12, %v2684_v62, %v5002_v1  ;;  %v4486_v63 = vunpack.i.l.bf16 %v6503_v58  ;;  %v5667_v62 = vld [vmem:[#allocation2 + $0x158] sm:$0xff]  ;;  %v5052_v58 = vunpack.i.h.bf16 %v7321_v53 }
 0x360   : > { %v5080_v9 = vpop.permute.xlu1 %5079  ;;  %v2736_v59 = vpack.c.bf16 %v2717_v2, %v2716_v36  ;;  %v2491_v7 = vsel %vm1315_vm2, %v5667_v62, %v5007_v47  ;;  %v5668_v36 = vld [vmem:[#allocation2 + $0x150] sm:$0xff] }
 0x361   : > { %v7333_v54 = vpop.permute.xlu0 %5059  ;;  %v5082_v11 = vunpack.i.h.bf16 %v5080_v9  ;;  %v5081_v43 = vunpack.i.l.bf16 %v5080_v9  ;;  %v2490_v2 = vsel %vm1315_vm2, %v5668_v36, %v5006_v44  ;;  %v2523_v12 = vsel %vm417_vm1, %v2491_v7, %v5012_v49 }
 0x362   : > { %4350 = vmatprep.mubr.msk.bf16.mxu0 %vm2759_vm13, %v2736_v59  ;;  %v5062_v38 = vunpack.i.h.bf16 %v7333_v54 }
 0x363   : > { %v2685_v13 = vsel %vm2658_vm11, %v2652_v35, %v5081_v43  ;;  %v2686_v16 = vsel %vm2658_vm11, %v2653_v0, %v5082_v11 }
 0x364   : > { %v5090_v27 = vpop.permute.xlu1 %5089  ;;  %v2556_v18 = vsel %vm2526_vm7, %v2523_v12, %v5062_v38 }
 0x365   : > { %v7348_v25 = vpop.permute.xlu0 %5074  ;;  %v5092_v5 = vunpack.i.h.bf16 %v5090_v27  ;;  %v5091_v20 = vunpack.i.l.bf16 %v5090_v27 }
 0x366   : > { %v5077_v48 = vunpack.i.h.bf16 %v7348_v25 }
 0x367   : > { %v2493_v1 = vsel %vm1315_vm2, %v6928_v37, %v5092_v5  ;;  %v2492_v24 = vsel %vm1315_vm2, %v6926_v46, %v5091_v20  ;;  %v5061_v46 = vunpack.i.l.bf16 %v7333_v54  ;;  %v2522_v54 = vsel %vm417_vm1, %v2490_v2, %v5011_v40 }
 0x368   : > { %v5095_v29 = vpop.permute.xlu1 %5094  ;;  %v5076_v5 = vunpack.i.l.bf16 %v7348_v25 }
 0x369   : > { %v5097_v60 = vunpack.i.h.bf16 %v5095_v29  ;;  %v5096_v31 = vunpack.i.l.bf16 %v5095_v29  ;;  %v5085_v30 = vpop.permute.xlu0 %5084  ;;  %v2555_v19 = vsel %vm2526_vm7, %v2522_v54, %v5061_v46 }
 0x36a   : > { %v5087_v6 = vunpack.i.h.bf16 %v5085_v30  ;;  %v5086_v26 = vunpack.i.l.bf16 %v5085_v30 }
 0x36b   : > { %v2524_v15 = vsel %vm417_vm1, %v2492_v24, %v5096_v31  ;;  %v2525_v50 = vsel %vm417_vm1, %v2493_v1, %v5097_v60  ;;  %v7411_v24 = vld [vmem:[%s7578_s6] ss:$0 sm:$0xff] }
 0x36c   : > { %v2557_v3 = vsel %vm2526_vm7, %v2524_v15, %v5046_v8  ;;  %v2558_v34 = vsel %vm2526_vm7, %v2525_v50, %v5047_v10  ;;  %v2719_v42 = vsel %vm2691_vm12, %v2686_v16, %v5087_v6  ;;  %v2718_v37 = vsel %vm2691_vm12, %v2685_v13, %v5086_v26  ;;  %v5100_v56 = vpop.permute.xlu1 %5099 }
 0x36d   : > { %v2590_v41 = vsel %vm2559_vm8, %v2557_v3, %v5066_v55  ;;  %v2591_v45 = vsel %vm2559_vm8, %v2558_v34, %v5067_v51  ;;  %v2737_v61 = vpack.c.bf16 %v2719_v42, %v2718_v37  ;;  %v5105_v22 = vpop.permute.xlu0 %5104  ;;  %v5102_v17 = vunpack.i.h.bf16 %v5100_v56 }
 0x36e   : > { %v2623_v4 = vsel %vm2592_vm9, %v2590_v41, %v5071_v14  ;;  %v2624_v9 = vsel %vm2592_vm9, %v2591_v45, %v5072_v39  ;;  %v5107_v59 = vunpack.i.h.bf16 %v5105_v22  ;;  %v5106_v57 = vunpack.i.l.bf16 %v5105_v22 }
 0x36f   : > { %4351 = vmatmul.mubr.msk.bf16.gmra.mrb[72].mxu0 %vm2759_vm13, %v2737_v61  ;;  %v5101_v47 = vunpack.i.l.bf16 %v5100_v56  ;;  %v2656_v33 = vsel %vm2625_vm10, %v2623_v4, %v4486_v63  ;;  %v2657_v27 = vsel %vm2625_vm10, %v2624_v9, %v4487_v32 }
 0x370   : > { %v5120_v23 = vpop.permute.xlu1 %5119  ;;  %v2588_v40 = vsel %vm2559_vm8, %v2555_v19, %v5106_v57  ;;  %v2589_v10 = vsel %vm2559_vm8, %v2556_v18, %v5107_v59  ;;  %v2690_v11 = vsel %vm2658_vm11, %v2657_v27, %v5102_v17 }
 0x371   : > { %v5110_v21 = vpop.permute.xlu0 %5109  ;;  %v5122_v8 = vunpack.i.h.bf16 %v5120_v23  ;;  %v5121_v53 = vunpack.i.l.bf16 %v5120_v23  ;;  %v2689_v35 = vsel %vm2658_vm11, %v2656_v33, %v5101_v47 }
 0x372   : > { %v5112_v44 = vunpack.i.h.bf16 %v5110_v21  ;;  %v5111_v49 = vunpack.i.l.bf16 %v5110_v21 }
 0x373   : > { %v2722_v25 = vsel %vm2691_vm12, %v2689_v35, %v5121_v53  ;;  %v2723_v38 = vsel %vm2691_vm12, %v2690_v11, %v5122_v8 }
 0x374   : > { %v2621_v20 = vsel %vm2592_vm9, %v2588_v40, %v5111_v49  ;;  %v2622_v52 = vsel %vm2592_vm9, %v2589_v10, %v5112_v44  ;;  %v2739_v1 = vpack.c.bf16 %v2723_v38, %v2722_v25 }
 0x375   : > { %v2654_v43 = vsel %vm2625_vm10, %v2621_v20, %v5051_v28  ;;  %v2655_v0 = vsel %vm2625_vm10, %v2622_v52, %v5052_v58  ;;  %v5115_v51 = vpop.permute.xlu0 %5114 }
 0x376   : > { %v5117_v55 = vunpack.i.h.bf16 %v5115_v51  ;;  %v5116_v39 = vunpack.i.l.bf16 %v5115_v51  ;;  %v2687_v29 = vsel %vm2658_vm11, %v2654_v43, %v5076_v5  ;;  %v2688_v14 = vsel %vm2658_vm11, %v2655_v0, %v5077_v48 }
 0x378   : > { %v2720_v60 = vsel %vm2691_vm12, %v2687_v29, %v5116_v39  ;;  %v2721_v31 = vsel %vm2691_vm12, %v2688_v14, %v5117_v55 }
 0x379   : > { %v2738_v30 = vpack.c.bf16 %v2721_v31, %v2720_v60 }
 0x37b   : > { %4354 = vmatprep.mubr.msk.bf16.mxu0 %vm2759_vm13, %v2738_v30 }
 0x37c   : > { %4355 = vmatmul.mubr.msk.bf16.gmra.mrb[76].mxu0 %vm2759_vm13, %v2739_v1 }
 0x389   : > { %v4328_v6 = vpop.f32.mrb[48].mxu0 }
 0x38a   : > { %v2855_v26 = vadd.f32 %v4328_v6, %v7411_v24  ;;  %v2846_v13 = vpop.f32.mrb[49].mxu0 }
 0x38b   : > { %v2847_v16 = vadd.f32 %v7411_v24, %v2846_v13  ;;  %v4329_v15 = vpop.f32.mrb[50].mxu0 }
 0x38c   : > { %v4069_v50 = vmul.f32 -1.442695, %v2855_v26  ;;  %v2858_v3 = vadd.f32 %v4329_v15, %v7411_v24  ;;  %v2849_v34 = vpop.f32.mrb[51].mxu0 }
 0x38d   : > { %v4067_v42 = vmul.f32 -1.442695, %v2847_v16  ;;  %v2850_v37 = vadd.f32 %v7411_v24, %v2849_v34 }
 0x38e   : > { %5381 = vpow2.f32 %v4069_v50  ;;  %v4070_v56 = vmul.f32 -1.442695, %v2858_v3 }
 0x38f   : > { %5383 = vpow2.f32 %v4067_v42  ;;  %v4068_v46 = vmul.f32 -1.442695, %v2850_v37 }
 0x390   : > { %5385 = vpow2.f32 %v4070_v56 }
 0x391   : > { %5387 = vpow2.f32 %v4068_v46 }
 0x398   : > { %v5382_v41 = vpop.eup %5381 }
 0x399   : > { %v5384_v45 = vpop.eup %5383  ;;  %v3071_v61 = vadd.f32 1.0, %v5382_v41 }
 0x39a   : > { %v5386_v22 = vpop.eup %5385  ;;  %v3069_v32 = vadd.f32 1.0, %v5384_v45 }
 0x39b   : > { %v5388_v63 = vpop.eup %5387  ;;  %5389 = vrcp.f32 %v3071_v61  ;;  %v3072_v62 = vadd.f32 1.0, %v5386_v22 }
 0x39c   : > { %5391 = vrcp.f32 %v3069_v32  ;;  %v3070_v7 = vadd.f32 1.0, %v5388_v63 }
 0x39d   : > { %5393 = vrcp.f32 %v3072_v62 }
 0x39e   : > { %5395 = vrcp.f32 %v3070_v7 }
 0x3a5   : > { %v5390_v36 = vpop.eup %5389 }
 0x3a6   : > { %v5392_v2 = vpop.eup %5391  ;;  %v3167_v59 = vmul.f32 %v5390_v36, %v2855_v26 }
 0x3a7   : > { %v5394_v4 = vpop.eup %5393  ;;  %v3165_v12 = vmul.f32 %v5392_v2, %v2847_v16 }
 0x3a8   : > { %v5396_v9 = vpop.eup %5395  ;;  %v3168_v57 = vmul.f32 %v5394_v4, %v2858_v3 }
 0x3a9   : > { %v3166_v54 = vmul.f32 %v5396_v9, %v2850_v37  ;;  %v4332_v58 = vpop.f32.mrb[52].mxu0 }
 0x3aa   : > { %v3198_v28 = vpack.c.bf16 %v3168_v57, %v3167_v59  ;;  %v2871_v23 = vadd.f32 %v4332_v58, %v7411_v24  ;;  %v2862_v19 = vpop.f32.mrb[53].mxu0 }
 0x3ab   : > { %v3197_v18 = vpack.c.bf16 %v3166_v54, %v3165_v12  ;;  %v2863_v17 = vadd.f32 %v7411_v24, %v2862_v19  ;;  %v4333_v47 = vpop.f32.mrb[54].mxu0 }
 0x3ac   : > { %v4073_v21 = vmul.f32 -1.442695, %v2871_v23  ;;  %v2874_v33 = vadd.f32 %v4333_v47, %v7411_v24  ;;  %v2865_v27 = vpop.f32.mrb[55].mxu0 }
 0x3ad   : > { %v4071_v44 = vmul.f32 -1.442695, %v2863_v17  ;;  %v2866_v49 = vadd.f32 %v7411_v24, %v2865_v27  ;;  %4394 = vmatprep.mubr.msk.bf16.mxu1 %vm1315_vm2, %v3197_v18 }
 0x3ae   : > { %5397 = vpow2.f32 %v4073_v21  ;;  %v4074_v40 = vmul.f32 -1.442695, %v2874_v33  ;;  %4395 = vmatmul.mubr.msk.bf16.vlgmr.msra.gmra.mrb[16].mxu1 %vm1315_vm2, %v3198_v28 }
 0x3af   : > { %5399 = vpow2.f32 %v4071_v44  ;;  %v4072_v10 = vmul.f32 -1.442695, %v2866_v49 }
 0x3b0   : > { %5401 = vpow2.f32 %v4074_v40 }
 0x3b1   : > { %5403 = vpow2.f32 %v4072_v10 }
 0x3b8   : > { %v5398_v8 = vpop.eup %5397 }
 0x3b9   : > { %v5400_v53 = vpop.eup %5399  ;;  %v3075_v48 = vadd.f32 1.0, %v5398_v8 }
 0x3ba   : > { %v5402_v5 = vpop.eup %5401  ;;  %v3073_v20 = vadd.f32 1.0, %v5400_v53 }
 0x3bb   : > { %v5404_v52 = vpop.eup %5403  ;;  %5405 = vrcp.f32 %v3075_v48  ;;  %v3076_v35 = vadd.f32 1.0, %v5402_v5 }
 0x3bc   : > { %5407 = vrcp.f32 %v3073_v20  ;;  %v3074_v11 = vadd.f32 1.0, %v5404_v52 }
 0x3bd   : > { %5409 = vrcp.f32 %v3076_v35 }
 0x3be   : > { %5411 = vrcp.f32 %v3074_v11 }
 0x3c5   : > { %v5406_v43 = vpop.eup %5405 }
 0x3c6   : > { %v5408_v0 = vpop.eup %5407  ;;  %v3171_v39 = vmul.f32 %v5406_v43, %v2871_v23 }
 0x3c7   : > { %v5410_v51 = vpop.eup %5409  ;;  %v3169_v14 = vmul.f32 %v5408_v0, %v2863_v17 }
 0x3c8   : > { %v5412_v55 = vpop.eup %5411  ;;  %v3172_v29 = vmul.f32 %v5410_v51, %v2874_v33 }
 0x3c9   : > { %v3170_v25 = vmul.f32 %v5412_v55, %v2866_v49  ;;  %v4336_v38 = vpop.f32.mrb[56].mxu0 }
 0x3ca   : > { %v3200_v60 = vpack.c.bf16 %v3172_v29, %v3171_v39  ;;  %v2887_v31 = vadd.f32 %v4336_v38, %v7411_v24  ;;  %v2878_v30 = vpop.f32.mrb[57].mxu0 }
 0x3cb   : > { %v3199_v1 = vpack.c.bf16 %v3170_v25, %v3169_v14  ;;  %v2879_v6 = vadd.f32 %v7411_v24, %v2878_v30  ;;  %v4337_v26 = vpop.f32.mrb[58].mxu0 }
 0x3cc   : > { %v4077_v13 = vmul.f32 -1.442695, %v2887_v31  ;;  %v2890_v16 = vadd.f32 %v4337_v26, %v7411_v24  ;;  %v2881_v15 = vpop.f32.mrb[59].mxu0 }
 0x3cd   : > { %v4075_v50 = vmul.f32 -1.442695, %v2879_v6  ;;  %v2882_v3 = vadd.f32 %v7411_v24, %v2881_v15  ;;  %4398 = vmatprep.mubr.msk.bf16.mxu1 %vm1315_vm2, %v3199_v1 }
 0x3ce   : > { %5413 = vpow2.f32 %v4077_v13  ;;  %v4078_v34 = vmul.f32 -1.442695, %v2890_v16  ;;  %4399 = vmatmul.mubr.msk.bf16.gmra.mrb[20].mxu1 %vm1315_vm2, %v3200_v60 }
 0x3cf   : > { %5415 = vpow2.f32 %v4075_v50  ;;  %v4076_v42 = vmul.f32 -1.442695, %v2882_v3 }
 0x3d0   : > { %5417 = vpow2.f32 %v4078_v34 }
 0x3d1   : > { %5419 = vpow2.f32 %v4076_v42 }
 0x3d8   : > { %v5414_v37 = vpop.eup %5413 }
 0x3d9   : > { %v5416_v56 = vpop.eup %5415  ;;  %v3079_v46 = vadd.f32 1.0, %v5414_v37 }
 0x3da   : > { %v5418_v41 = vpop.eup %5417  ;;  %v3077_v45 = vadd.f32 1.0, %v5416_v56 }
 0x3db   : > { %v5420_v61 = vpop.eup %5419  ;;  %5421 = vrcp.f32 %v3079_v46  ;;  %v3080_v22 = vadd.f32 1.0, %v5418_v41 }
 0x3dc   : > { %5423 = vrcp.f32 %v3077_v45  ;;  %v3078_v32 = vadd.f32 1.0, %v5420_v61 }
 0x3dd   : > { %5425 = vrcp.f32 %v3080_v22 }
 0x3de   : > { %5427 = vrcp.f32 %v3078_v32 }
 0x3e5   : > { %v5422_v63 = vpop.eup %5421 }
 0x3e6   : > { %v5424_v62 = vpop.eup %5423  ;;  %v3175_v2 = vmul.f32 %v5422_v63, %v2887_v31 }
 0x3e7   : > { %v5426_v7 = vpop.eup %5425  ;;  %v3173_v9 = vmul.f32 %v5424_v62, %v2879_v6 }
 0x3e8   : > { %v5428_v36 = vpop.eup %5427  ;;  %v3176_v4 = vmul.f32 %v5426_v7, %v2890_v16 }
 0x3e9   : > { %v3174_v59 = vmul.f32 %v5428_v36, %v2882_v3  ;;  %v4340_v57 = vpop.f32.mrb[60].mxu0 }
 0x3ea   : > { %v3202_v12 = vpack.c.bf16 %v3176_v4, %v3175_v2  ;;  %v2903_v54 = vadd.f32 %v4340_v57, %v7411_v24  ;;  %v2894_v58 = vpop.f32.mrb[61].mxu0 }
 0x3eb   : > { %v3201_v28 = vpack.c.bf16 %v3174_v59, %v3173_v9  ;;  %v2895_v23 = vadd.f32 %v7411_v24, %v2894_v58  ;;  %v4341_v19 = vpop.f32.mrb[62].mxu0 }
 0x3ec   : > { %v4081_v18 = vmul.f32 -1.442695, %v2903_v54  ;;  %v2906_v17 = vadd.f32 %v4341_v19, %v7411_v24  ;;  %v2897_v47 = vpop.f32.mrb[63].mxu0 }
 0x3ed   : > { %v4079_v21 = vmul.f32 -1.442695, %v2895_v23  ;;  %v2898_v33 = vadd.f32 %v7411_v24, %v2897_v47  ;;  %4402 = vmatprep.mubr.msk.bf16.mxu1 %vm1315_vm2, %v3201_v28 }
 0x3ee   : > { %5429 = vpow2.f32 %v4081_v18  ;;  %v4082_v27 = vmul.f32 -1.442695, %v2906_v17  ;;  %4403 = vmatmul.mubr.msk.bf16.gmra.mrb[24].mxu1 %vm1315_vm2, %v3202_v12 }
 0x3ef   : > { %5431 = vpow2.f32 %v4079_v21  ;;  %v4080_v44 = vmul.f32 -1.442695, %v2898_v33 }
 0x3f0   : > { %5433 = vpow2.f32 %v4082_v27 }
 0x3f1   : > { %5435 = vpow2.f32 %v4080_v44 }
 0x3f8   : > { %v5430_v49 = vpop.eup %5429 }
 0x3f9   : > { %v5432_v40 = vpop.eup %5431  ;;  %v3083_v10 = vadd.f32 1.0, %v5430_v49 }
 0x3fa   : > { %v5434_v8 = vpop.eup %5433  ;;  %v3081_v53 = vadd.f32 1.0, %v5432_v40 }
 0x3fb   : > { %v5436_v48 = vpop.eup %5435  ;;  %5437 = vrcp.f32 %v3083_v10  ;;  %v3084_v5 = vadd.f32 1.0, %v5434_v8 }
 0x3fc   : > { %5439 = vrcp.f32 %v3081_v53  ;;  %v3082_v20 = vadd.f32 1.0, %v5436_v48 }
 0x3fd   : > { %5441 = vrcp.f32 %v3084_v5 }
 0x3fe   : > { %5443 = vrcp.f32 %v3082_v20 }
 0x405   : > { %v5438_v52 = vpop.eup %5437 }
 0x406   : > { %v5440_v35 = vpop.eup %5439  ;;  %v3179_v0 = vmul.f32 %v5438_v52, %v2903_v54 }
 0x407   : > { %v5442_v11 = vpop.eup %5441  ;;  %v3177_v55 = vmul.f32 %v5440_v35, %v2895_v23 }
 0x408   : > { %v5444_v43 = vpop.eup %5443  ;;  %v3180_v51 = vmul.f32 %v5442_v11, %v2906_v17 }
 0x409   : > { %v3178_v39 = vmul.f32 %v5444_v43, %v2898_v33 }
 0x40a   : > { %v3204_v29 = vpack.c.bf16 %v3180_v51, %v3179_v0  ;;  %v4344_v14 = vpop.f32.mrb[64].mxu0 }
 0x40b   : > { %v3203_v25 = vpack.c.bf16 %v3178_v39, %v3177_v55  ;;  %v2919_v38 = vadd.f32 %v4344_v14, %v7411_v24  ;;  %v2910_v60 = vpop.f32.mrb[65].mxu0 }
 0x40c   : > { %v2911_v31 = vadd.f32 %v7411_v24, %v2910_v60  ;;  %v4345_v30 = vpop.f32.mrb[66].mxu0 }
 0x40d   : > { %v4085_v1 = vmul.f32 -1.442695, %v2919_v38  ;;  %v2922_v6 = vadd.f32 %v4345_v30, %v7411_v24  ;;  %v2913_v26 = vpop.f32.mrb[67].mxu0  ;;  %4406 = vmatprep.mubr.msk.bf16.mxu1 %vm1315_vm2, %v3203_v25 }
 0x40e   : > { %v4083_v13 = vmul.f32 -1.442695, %v2911_v31  ;;  %v2914_v16 = vadd.f32 %v7411_v24, %v2913_v26  ;;  %4407 = vmatmul.mubr.msk.bf16.gmra.mrb[28].mxu1 %vm1315_vm2, %v3204_v29 }
 0x40f   : > { %5445 = vpow2.f32 %v4085_v1  ;;  %v4086_v15 = vmul.f32 -1.442695, %v2922_v6 }
 0x410   : > { %5447 = vpow2.f32 %v4083_v13  ;;  %v4084_v50 = vmul.f32 -1.442695, %v2914_v16 }
 0x411   : > { %5449 = vpow2.f32 %v4086_v15 }
 0x412   : > { %5451 = vpow2.f32 %v4084_v50 }
 0x419   : > { %v5446_v3 = vpop.eup %5445 }
 0x41a   : > { %v5448_v34 = vpop.eup %5447  ;;  %v3087_v42 = vadd.f32 1.0, %v5446_v3 }
 0x41b   : > { %v5450_v37 = vpop.eup %5449  ;;  %v3085_v56 = vadd.f32 1.0, %v5448_v34 }
 0x41c   : > { %v5452_v46 = vpop.eup %5451  ;;  %5453 = vrcp.f32 %v3087_v42  ;;  %v3088_v41 = vadd.f32 1.0, %v5450_v37 }
 0x41d   : > { %5455 = vrcp.f32 %v3085_v56  ;;  %v3086_v45 = vadd.f32 1.0, %v5452_v46 }
 0x41e   : > { %5457 = vrcp.f32 %v3088_v41 }
 0x41f   : > { %5459 = vrcp.f32 %v3086_v45 }
 0x426   : > { %v5454_v61 = vpop.eup %5453 }
 0x427   : > { %v5456_v22 = vpop.eup %5455  ;;  %v3183_v62 = vmul.f32 %v5454_v61, %v2919_v38 }
 0x428   : > { %v5458_v32 = vpop.eup %5457  ;;  %v3181_v36 = vmul.f32 %v5456_v22, %v2911_v31 }
 0x429   : > { %v5460_v63 = vpop.eup %5459  ;;  %v3184_v7 = vmul.f32 %v5458_v32, %v2922_v6 }
 0x42a   : > { %v3182_v2 = vmul.f32 %v5460_v63, %v2914_v16  ;;  %v4348_v4 = vpop.f32.mrb[68].mxu0 }
 0x42b   : > { %v3206_v9 = vpack.c.bf16 %v3184_v7, %v3183_v62  ;;  %v2935_v59 = vadd.f32 %v4348_v4, %v7411_v24  ;;  %v2926_v57 = vpop.f32.mrb[69].mxu0 }
 0x42c   : > { %v3205_v12 = vpack.c.bf16 %v3182_v2, %v3181_v36  ;;  %v2927_v54 = vadd.f32 %v7411_v24, %v2926_v57  ;;  %v4349_v58 = vpop.f32.mrb[70].mxu0 }
 0x42d   : > { %v4089_v28 = vmul.f32 -1.442695, %v2935_v59  ;;  %v2938_v23 = vadd.f32 %v4349_v58, %v7411_v24  ;;  %v2929_v19 = vpop.f32.mrb[71].mxu0 }
 0x42e   : > { %v4087_v18 = vmul.f32 -1.442695, %v2927_v54  ;;  %v2930_v17 = vadd.f32 %v7411_v24, %v2929_v19  ;;  %4410 = vmatprep.mubr.msk.bf16.mxu1 %vm1315_vm2, %v3205_v12 }
 0x42f   : > { %5461 = vpow2.f32 %v4089_v28  ;;  %v4090_v47 = vmul.f32 -1.442695, %v2938_v23  ;;  %4411 = vmatmul.mubr.msk.bf16.gmra.mrb[32].mxu1 %vm1315_vm2, %v3206_v9 }
 0x430   : > { %5463 = vpow2.f32 %v4087_v18  ;;  %v4088_v21 = vmul.f32 -1.442695, %v2930_v17 }
 0x431   : > { %5465 = vpow2.f32 %v4090_v47 }
 0x432   : > { %5467 = vpow2.f32 %v4088_v21 }
 0x439   : > { %v5462_v33 = vpop.eup %5461 }
 0x43a   : > { %v5464_v27 = vpop.eup %5463  ;;  %v3091_v44 = vadd.f32 1.0, %v5462_v33 }
 0x43b   : > { %v5466_v49 = vpop.eup %5465  ;;  %v3089_v40 = vadd.f32 1.0, %v5464_v27 }
 0x43c   : > { %v5468_v10 = vpop.eup %5467  ;;  %5469 = vrcp.f32 %v3091_v44  ;;  %v3092_v8 = vadd.f32 1.0, %v5466_v49 }
 0x43d   : > { %5471 = vrcp.f32 %v3089_v40  ;;  %v3090_v53 = vadd.f32 1.0, %v5468_v10 }
 0x43e   : > { %5473 = vrcp.f32 %v3092_v8 }
 0x43f   : > { %5475 = vrcp.f32 %v3090_v53 }
 0x442   : > { %v4352_v48 = vpop.f32.mrb[72].mxu0 }
 0x443   : > { %v2951_v5 = vadd.f32 %v4352_v48, %v7411_v24  ;;  %v2942_v20 = vpop.f32.mrb[73].mxu0 }
 0x444   : > { %v2943_v52 = vadd.f32 %v7411_v24, %v2942_v20  ;;  %v4353_v35 = vpop.f32.mrb[74].mxu0 }
 0x445   : > { %v4093_v11 = vmul.f32 -1.442695, %v2951_v5  ;;  %v2954_v43 = vadd.f32 %v4353_v35, %v7411_v24  ;;  %v2945_v0 = vpop.f32.mrb[75].mxu0 }
 0x446   : > { %v5470_v51 = vpop.eup %5469  ;;  %v4091_v55 = vmul.f32 -1.442695, %v2943_v52  ;;  %v2946_v39 = vadd.f32 %v7411_v24, %v2945_v0 }
 0x447   : > { %v5472_v29 = vpop.eup %5471  ;;  %5477 = vpow2.f32 %v4093_v11  ;;  %v4094_v14 = vmul.f32 -1.442695, %v2954_v43  ;;  %v3187_v31 = vmul.f32 %v5470_v51, %v2935_v59 }
 0x448   : > { %v5474_v25 = vpop.eup %5473  ;;  %5479 = vpow2.f32 %v4091_v55  ;;  %v4092_v38 = vmul.f32 -1.442695, %v2946_v39  ;;  %v3185_v1 = vmul.f32 %v5472_v29, %v2927_v54 }
 0x449   : > { %v5476_v60 = vpop.eup %5475  ;;  %v3188_v30 = vmul.f32 %v5474_v25, %v2938_v23  ;;  %5481 = vpow2.f32 %v4094_v14 }
 0x44a   : > { %v3186_v6 = vmul.f32 %v5476_v60, %v2930_v17  ;;  %5483 = vpow2.f32 %v4092_v38 }
 0x44b   : > { %v3208_v26 = vpack.c.bf16 %v3188_v30, %v3187_v31 }
 0x44c   : > { %v3207_v13 = vpack.c.bf16 %v3186_v6, %v3185_v1 }
 0x44e   : > { %4414 = vmatprep.mubr.msk.bf16.mxu1 %vm1315_vm2, %v3207_v13 }
 0x44f   : > { %v4356_v16 = vpop.f32.mrb[76].mxu0  ;;  %4415 = vmatmul.mubr.msk.bf16.gmra.mrb[36].mxu1 %vm1315_vm2, %v3208_v26 }
 0x450   : > { %v2967_v15 = vadd.f32 %v4356_v16, %v7411_v24  ;;  %v2958_v50 = vpop.f32.mrb[77].mxu0 }
 0x451   : > { %v5478_v3 = vpop.eup %5477  ;;  %v2959_v34 = vadd.f32 %v7411_v24, %v2958_v50  ;;  %v4357_v42 = vpop.f32.mrb[78].mxu0 }
 0x452   : > { %v5480_v37 = vpop.eup %5479  ;;  %v3095_v56 = vadd.f32 1.0, %v5478_v3  ;;  %v2970_v46 = vadd.f32 %v4357_v42, %v7411_v24  ;;  %v2961_v41 = vpop.f32.mrb[79].mxu0  ;;  %v4097_v62 = vmul.f32 -1.442695, %v2967_v15 }
 0x453   : > { %v5482_v45 = vpop.eup %5481  ;;  %v3093_v61 = vadd.f32 1.0, %v5480_v37  ;;  %v2962_v22 = vadd.f32 %v7411_v24, %v2961_v41  ;;  %v4095_v36 = vmul.f32 -1.442695, %v2959_v34 }
 0x454   : > { %v5484_v32 = vpop.eup %5483  ;;  %5485 = vrcp.f32 %v3095_v56  ;;  %v3096_v63 = vadd.f32 1.0, %v5482_v45  ;;  %v4098_v2 = vmul.f32 -1.442695, %v2970_v46 }
 0x455   : > { %5487 = vrcp.f32 %v3093_v61  ;;  %v3094_v7 = vadd.f32 1.0, %v5484_v32  ;;  %v4096_v4 = vmul.f32 -1.442695, %v2962_v22 }
 0x456   : > { %5489 = vrcp.f32 %v3096_v63 }
 0x457   : > { %5491 = vrcp.f32 %v3094_v7 }
 0x458   : > { %5493 = vpow2.f32 %v4097_v62 }
 0x459   : > { %5495 = vpow2.f32 %v4095_v36 }
 0x45a   : > { %5497 = vpow2.f32 %v4098_v2 }
 0x45b   : > { %5499 = vpow2.f32 %v4096_v4 }
 0x45e   : > { %v5486_v9 = vpop.eup %5485 }
 0x45f   : > { %v5488_v59 = vpop.eup %5487  ;;  %v3191_v24 = vmul.f32 %v5486_v9, %v2951_v5 }
 0x460   : > { %v5490_v57 = vpop.eup %5489  ;;  %v3189_v28 = vmul.f32 %v5488_v59, %v2943_v52 }
 0x461   : > { %v5492_v12 = vpop.eup %5491  ;;  %v3192_v54 = vmul.f32 %v5490_v57, %v2954_v43  ;;  %v7464_v43 = vld [vmem:[%s7581_s9] ss:$0 sm:$0xff] }
 0x462   : > { %v5494_v58 = vpop.eup %5493  ;;  %v3190_v23 = vmul.f32 %v5492_v12, %v2946_v39 }
 0x463   : > { %v5496_v19 = vpop.eup %5495  ;;  %v3210_v18 = vpack.c.bf16 %v3192_v54, %v3191_v24  ;;  %v3099_v17 = vadd.f32 1.0, %v5494_v58 }
 0x464   : > { %v5498_v47 = vpop.eup %5497  ;;  %v3209_v21 = vpack.c.bf16 %v3190_v23, %v3189_v28  ;;  %v3097_v33 = vadd.f32 1.0, %v5496_v19 }
 0x465   : > { %v5500_v27 = vpop.eup %5499  ;;  %5501 = vrcp.f32 %v3099_v17  ;;  %v3100_v44 = vadd.f32 1.0, %v5498_v47 }
 0x466   : > { %5503 = vrcp.f32 %v3097_v33  ;;  %v3098_v49 = vadd.f32 1.0, %v5500_v27  ;;  %4418 = vmatprep.mubr.msk.bf16.mxu1 %vm1315_vm2, %v3209_v21 }
 0x467   : > { %5505 = vrcp.f32 %v3100_v44  ;;  %4419 = vmatmul.mubr.msk.bf16.gmra.mrb[40].mxu1 %vm1315_vm2, %v3210_v18 }
 0x468   : > { %5507 = vrcp.f32 %v3098_v49 }
 0x46f   : > { %v5502_v40 = vpop.eup %5501 }
 0x470   : > { %v5504_v10 = vpop.eup %5503  ;;  %v3195_v48 = vmul.f32 %v5502_v40, %v2967_v15 }
 0x471   : > { %v5506_v8 = vpop.eup %5505  ;;  %v3193_v20 = vmul.f32 %v5504_v10, %v2959_v34 }
 0x472   : > { %v5508_v53 = vpop.eup %5507  ;;  %v3196_v5 = vmul.f32 %v5506_v8, %v2970_v46 }
 0x473   : > { %v3194_v52 = vmul.f32 %v5508_v53, %v2962_v22 }
 0x474   : > { %v3212_v35 = vpack.c.bf16 %v3196_v5, %v3195_v48 }
 0x475   : > { %v3211_v11 = vpack.c.bf16 %v3194_v52, %v3193_v20 }
 0x477   : > { %4422 = vmatprep.mubr.msk.bf16.mxu1 %vm1315_vm2, %v3211_v11 }
 0x478   : > { %4423 = vmatmul.mubr.msk.bf16.gmra.mrb[44].mxu1 %vm1315_vm2, %v3212_v35 }
 0x481   : > { %v4396_v0 = vpop.f32.mrb[16].mxu1 }
 0x482   : > { %v3600_v51 = vadd.f32 %v4396_v0, %v7464_v43  ;;  %v3464_v55 = vpop.f32.mrb[17].mxu1 }
 0x483   : > { %v3598_v39 = vadd.f32 %v7464_v43, %v3464_v55  ;;  %v4397_v29 = vpop.f32.mrb[18].mxu1 }
 0x484   : > { %v4134_v14 = vmul.f32 -1.442695, %v3600_v51  ;;  %v3601_v25 = vadd.f32 %v4397_v29, %v7464_v43  ;;  %v3467_v38 = vpop.f32.mrb[19].mxu1 }
 0x485   : > { %v4132_v60 = vmul.f32 -1.442695, %v3598_v39  ;;  %v3599_v31 = vadd.f32 %v7464_v43, %v3467_v38 }
 0x486   : > { %5509 = vpow2.f32 %v4134_v14  ;;  %v4135_v30 = vmul.f32 -1.442695, %v3601_v25 }
 0x487   : > { %5511 = vpow2.f32 %v4132_v60  ;;  %v4133_v1 = vmul.f32 -1.442695, %v3599_v31 }
 0x488   : > { %5513 = vpow2.f32 %v4135_v30 }
 0x489   : > { %5515 = vpow2.f32 %v4133_v1 }
 0x490   : > { %v5510_v6 = vpop.eup %5509 }
 0x491   : > { %v5512_v26 = vpop.eup %5511  ;;  %v3728_v13 = vadd.f32 1.0, %v5510_v6 }
 0x492   : > { %v5514_v16 = vpop.eup %5513  ;;  %v3726_v15 = vadd.f32 1.0, %v5512_v26 }
 0x493   : > { %v5516_v50 = vpop.eup %5515  ;;  %5517 = vrcp.f32 %v3728_v13  ;;  %v3729_v3 = vadd.f32 1.0, %v5514_v16 }
 0x494   : > { %5519 = vrcp.f32 %v3726_v15  ;;  %v3727_v34 = vadd.f32 1.0, %v5516_v50 }
 0x495   : > { %5521 = vrcp.f32 %v3729_v3 }
 0x496   : > { %5523 = vrcp.f32 %v3727_v34 }
 0x49d   : > { %v5518_v42 = vpop.eup %5517 }
 0x49e   : > { %v5520_v37 = vpop.eup %5519  ;;  %v3824_v56 = vmul.f32 %v5518_v42, %v3600_v51 }
 0x49f   : > { %v5522_v46 = vpop.eup %5521  ;;  %v3822_v41 = vmul.f32 %v5520_v37, %v3598_v39 }
 0x4a0   : > { %v5524_v45 = vpop.eup %5523  ;;  %3856 = vst.msk [vmem:[%s7475_s12 + $0x10] sm:$0xff] %vm417_vm1, %v3824_v56  ;;  %v3825_v61 = vmul.f32 %v5522_v46, %v3601_v25 }
 0x4a1   : > { %3854 = vst.msk [vmem:[%s7475_s12] sm:$0xff] %vm417_vm1, %v3822_v41  ;;  %v3823_v22 = vmul.f32 %v5524_v45, %v3599_v31  ;;  %v4400_v32 = vpop.f32.mrb[20].mxu1 }
 0x4a2   : > { %3857 = vst.msk [vmem:[%s7475_s12 + $0x18] sm:$0xff] %vm417_vm1, %v3825_v61  ;;  %v3604_v63 = vadd.f32 %v4400_v32, %v7464_v43  ;;  %v3480_v62 = vpop.f32.mrb[21].mxu1 }
 0x4a3   : > { %3855 = vst.msk [vmem:[%s7475_s12 + $0x8] sm:$0xff] %vm417_vm1, %v3823_v22  ;;  %v3602_v7 = vadd.f32 %v7464_v43, %v3480_v62  ;;  %v4401_v36 = vpop.f32.mrb[22].mxu1 }
 0x4a4   : > { %v4138_v2 = vmul.f32 -1.442695, %v3604_v63  ;;  %v3605_v4 = vadd.f32 %v4401_v36, %v7464_v43  ;;  %v3483_v9 = vpop.f32.mrb[23].mxu1 }
 0x4a5   : > { %v4136_v59 = vmul.f32 -1.442695, %v3602_v7  ;;  %v3603_v57 = vadd.f32 %v7464_v43, %v3483_v9 }
 0x4a6   : > { %5525 = vpow2.f32 %v4138_v2  ;;  %v4139_v12 = vmul.f32 -1.442695, %v3605_v4 }
 0x4a7   : > { %5527 = vpow2.f32 %v4136_v59  ;;  %v4137_v24 = vmul.f32 -1.442695, %v3603_v57 }
 0x4a8   : > { %5529 = vpow2.f32 %v4139_v12 }
 0x4a9   : > { %5531 = vpow2.f32 %v4137_v24 }
 0x4b0   : > { %v5526_v54 = vpop.eup %5525 }
 0x4b1   : > { %v5528_v58 = vpop.eup %5527  ;;  %v3732_v28 = vadd.f32 1.0, %v5526_v54 }
 0x4b2   : > { %v5530_v23 = vpop.eup %5529  ;;  %v3730_v19 = vadd.f32 1.0, %v5528_v58 }
 0x4b3   : > { %v5532_v18 = vpop.eup %5531  ;;  %5533 = vrcp.f32 %v3732_v28  ;;  %v3733_v17 = vadd.f32 1.0, %v5530_v23 }
 0x4b4   : > { %5535 = vrcp.f32 %v3730_v19  ;;  %v3731_v47 = vadd.f32 1.0, %v5532_v18 }
 0x4b5   : > { %5537 = vrcp.f32 %v3733_v17 }
 0x4b6   : > { %5539 = vrcp.f32 %v3731_v47 }
 0x4bd   : > { %v5534_v21 = vpop.eup %5533 }
 0x4be   : > { %v5536_v33 = vpop.eup %5535  ;;  %v3828_v27 = vmul.f32 %v5534_v21, %v3604_v63 }
 0x4bf   : > { %v5538_v44 = vpop.eup %5537  ;;  %v3826_v49 = vmul.f32 %v5536_v33, %v3602_v7 }
 0x4c0   : > { %v5540_v40 = vpop.eup %5539  ;;  %3860 = vst.msk [vmem:[%s7475_s12 + $0x30] sm:$0xff] %vm417_vm1, %v3828_v27  ;;  %v3829_v10 = vmul.f32 %v5538_v44, %v3605_v4 }
 0x4c1   : > { %3858 = vst.msk [vmem:[%s7475_s12 + $0x20] sm:$0xff] %vm417_vm1, %v3826_v49  ;;  %v3827_v8 = vmul.f32 %v5540_v40, %v3603_v57  ;;  %v4404_v53 = vpop.f32.mrb[24].mxu1 }
 0x4c2   : > { %3861 = vst.msk [vmem:[%s7475_s12 + $0x38] sm:$0xff] %vm417_vm1, %v3829_v10  ;;  %v3608_v48 = vadd.f32 %v4404_v53, %v7464_v43  ;;  %v3496_v5 = vpop.f32.mrb[25].mxu1 }
 0x4c3   : > { %3859 = vst.msk [vmem:[%s7475_s12 + $0x28] sm:$0xff] %vm417_vm1, %v3827_v8  ;;  %v3606_v20 = vadd.f32 %v7464_v43, %v3496_v5  ;;  %v4405_v52 = vpop.f32.mrb[26].mxu1 }
 0x4c4   : > { %v4142_v35 = vmul.f32 -1.442695, %v3608_v48  ;;  %v3609_v11 = vadd.f32 %v4405_v52, %v7464_v43  ;;  %v3499_v0 = vpop.f32.mrb[27].mxu1 }
 0x4c5   : > { %v4140_v51 = vmul.f32 -1.442695, %v3606_v20  ;;  %v3607_v55 = vadd.f32 %v7464_v43, %v3499_v0 }
 0x4c6   : > { %5541 = vpow2.f32 %v4142_v35  ;;  %v4143_v39 = vmul.f32 -1.442695, %v3609_v11 }
 0x4c7   : > { %5543 = vpow2.f32 %v4140_v51  ;;  %v4141_v29 = vmul.f32 -1.442695, %v3607_v55 }
 0x4c8   : > { %5545 = vpow2.f32 %v4143_v39 }
 0x4c9   : > { %5547 = vpow2.f32 %v4141_v29 }
 0x4d0   : > { %v5542_v14 = vpop.eup %5541 }
 0x4d1   : > { %v5544_v25 = vpop.eup %5543  ;;  %v3736_v38 = vadd.f32 1.0, %v5542_v14 }
 0x4d2   : > { %v5546_v60 = vpop.eup %5545  ;;  %v3734_v31 = vadd.f32 1.0, %v5544_v25 }
 0x4d3   : > { %v5548_v30 = vpop.eup %5547  ;;  %5549 = vrcp.f32 %v3736_v38  ;;  %v3737_v1 = vadd.f32 1.0, %v5546_v60 }
 0x4d4   : > { %5551 = vrcp.f32 %v3734_v31  ;;  %v3735_v6 = vadd.f32 1.0, %v5548_v30 }
 0x4d5   : > { %5553 = vrcp.f32 %v3737_v1 }
 0x4d6   : > { %5555 = vrcp.f32 %v3735_v6 }
 0x4dd   : > { %v5550_v26 = vpop.eup %5549 }
 0x4de   : > { %v5552_v13 = vpop.eup %5551  ;;  %v3832_v16 = vmul.f32 %v5550_v26, %v3608_v48 }
 0x4df   : > { %v5554_v15 = vpop.eup %5553  ;;  %v3830_v50 = vmul.f32 %v5552_v13, %v3606_v20 }
 0x4e0   : > { %v5556_v3 = vpop.eup %5555  ;;  %3864 = vst.msk [vmem:[%s7475_s12 + $0x50] sm:$0xff] %vm417_vm1, %v3832_v16  ;;  %v3833_v34 = vmul.f32 %v5554_v15, %v3609_v11 }
 0x4e1   : > { %3862 = vst.msk [vmem:[%s7475_s12 + $0x40] sm:$0xff] %vm417_vm1, %v3830_v50  ;;  %v3831_v42 = vmul.f32 %v5556_v3, %v3607_v55  ;;  %v4408_v37 = vpop.f32.mrb[28].mxu1 }
 0x4e2   : > { %3865 = vst.msk [vmem:[%s7475_s12 + $0x58] sm:$0xff] %vm417_vm1, %v3833_v34  ;;  %v3612_v56 = vadd.f32 %v4408_v37, %v7464_v43  ;;  %v3512_v46 = vpop.f32.mrb[29].mxu1 }
 0x4e3   : > { %3863 = vst.msk [vmem:[%s7475_s12 + $0x48] sm:$0xff] %vm417_vm1, %v3831_v42  ;;  %v3610_v41 = vadd.f32 %v7464_v43, %v3512_v46  ;;  %v4409_v45 = vpop.f32.mrb[30].mxu1 }
 0x4e4   : > { %v4146_v61 = vmul.f32 -1.442695, %v3612_v56  ;;  %v3613_v22 = vadd.f32 %v4409_v45, %v7464_v43  ;;  %v3515_v32 = vpop.f32.mrb[31].mxu1 }
 0x4e5   : > { %v4144_v63 = vmul.f32 -1.442695, %v3610_v41  ;;  %v3611_v62 = vadd.f32 %v7464_v43, %v3515_v32 }
 0x4e6   : > { %5557 = vpow2.f32 %v4146_v61  ;;  %v4147_v7 = vmul.f32 -1.442695, %v3613_v22 }
 0x4e7   : > { %5559 = vpow2.f32 %v4144_v63  ;;  %v4145_v36 = vmul.f32 -1.442695, %v3611_v62 }
 0x4e8   : > { %5561 = vpow2.f32 %v4147_v7 }
 0x4e9   : > { %5563 = vpow2.f32 %v4145_v36 }
 0x4f0   : > { %v5558_v2 = vpop.eup %5557 }
 0x4f1   : > { %v5560_v4 = vpop.eup %5559  ;;  %v3740_v9 = vadd.f32 1.0, %v5558_v2 }
 0x4f2   : > { %v5562_v59 = vpop.eup %5561  ;;  %v3738_v57 = vadd.f32 1.0, %v5560_v4 }
 0x4f3   : > { %v5564_v12 = vpop.eup %5563  ;;  %5565 = vrcp.f32 %v3740_v9  ;;  %v3741_v24 = vadd.f32 1.0, %v5562_v59 }
 0x4f4   : > { %5567 = vrcp.f32 %v3738_v57  ;;  %v3739_v54 = vadd.f32 1.0, %v5564_v12 }
 0x4f5   : > { %5569 = vrcp.f32 %v3741_v24 }
 0x4f6   : > { %5571 = vrcp.f32 %v3739_v54 }
 0x4fd   : > { %v5566_v58 = vpop.eup %5565 }
 0x4fe   : > { %v5568_v28 = vpop.eup %5567  ;;  %v3836_v23 = vmul.f32 %v5566_v58, %v3612_v56 }
 0x4ff   : > { %v5570_v19 = vpop.eup %5569  ;;  %v3834_v18 = vmul.f32 %v5568_v28, %v3610_v41 }
 0x500   : > { %v5572_v17 = vpop.eup %5571  ;;  %3868 = vst.msk [vmem:[%s7475_s12 + $0x70] sm:$0xff] %vm417_vm1, %v3836_v23  ;;  %v3837_v47 = vmul.f32 %v5570_v19, %v3613_v22 }
 0x501   : > { %3866 = vst.msk [vmem:[%s7475_s12 + $0x60] sm:$0xff] %vm417_vm1, %v3834_v18  ;;  %v3835_v21 = vmul.f32 %v5572_v17, %v3611_v62 }
 0x502   : > { %3869 = vst.msk [vmem:[%s7475_s12 + $0x78] sm:$0xff] %vm417_vm1, %v3837_v47  ;;  %v4412_v33 = vpop.f32.mrb[32].mxu1 }
 0x503   : > { %3867 = vst.msk [vmem:[%s7475_s12 + $0x68] sm:$0xff] %vm417_vm1, %v3835_v21  ;;  %v3616_v27 = vadd.f32 %v4412_v33, %v7464_v43  ;;  %v3528_v44 = vpop.f32.mrb[33].mxu1 }
 0x504   : > { %v3614_v49 = vadd.f32 %v7464_v43, %v3528_v44  ;;  %v4413_v40 = vpop.f32.mrb[34].mxu1 }
 0x505   : > { %v4150_v10 = vmul.f32 -1.442695, %v3616_v27  ;;  %v3617_v8 = vadd.f32 %v4413_v40, %v7464_v43  ;;  %v3531_v53 = vpop.f32.mrb[35].mxu1 }
 0x506   : > { %v4148_v48 = vmul.f32 -1.442695, %v3614_v49  ;;  %v3615_v5 = vadd.f32 %v7464_v43, %v3531_v53 }
 0x507   : > { %5573 = vpow2.f32 %v4150_v10  ;;  %v4151_v20 = vmul.f32 -1.442695, %v3617_v8 }
 0x508   : > { %5575 = vpow2.f32 %v4148_v48  ;;  %v4149_v52 = vmul.f32 -1.442695, %v3615_v5 }
 0x509   : > { %5577 = vpow2.f32 %v4151_v20 }
 0x50a   : > { %5579 = vpow2.f32 %v4149_v52 }
 0x511   : > { %v5574_v35 = vpop.eup %5573 }
 0x512   : > { %v5576_v11 = vpop.eup %5575  ;;  %v3744_v0 = vadd.f32 1.0, %v5574_v35 }
 0x513   : > { %v5578_v51 = vpop.eup %5577  ;;  %v3742_v55 = vadd.f32 1.0, %v5576_v11 }
 0x514   : > { %v5580_v39 = vpop.eup %5579  ;;  %5581 = vrcp.f32 %v3744_v0  ;;  %v3745_v29 = vadd.f32 1.0, %v5578_v51 }
 0x515   : > { %5583 = vrcp.f32 %v3742_v55  ;;  %v3743_v14 = vadd.f32 1.0, %v5580_v39 }
 0x516   : > { %5585 = vrcp.f32 %v3745_v29 }
 0x517   : > { %5587 = vrcp.f32 %v3743_v14 }
 0x51e   : > { %v5582_v25 = vpop.eup %5581 }
 0x51f   : > { %v5584_v38 = vpop.eup %5583  ;;  %v3840_v60 = vmul.f32 %v5582_v25, %v3616_v27 }
 0x520   : > { %v5586_v31 = vpop.eup %5585  ;;  %v3838_v30 = vmul.f32 %v5584_v38, %v3614_v49 }
 0x521   : > { %v5588_v1 = vpop.eup %5587  ;;  %3872 = vst.msk [vmem:[%s7475_s12 + $0x90] sm:$0xff] %vm417_vm1, %v3840_v60  ;;  %v3841_v6 = vmul.f32 %v5586_v31, %v3617_v8 }
 0x522   : > { %3870 = vst.msk [vmem:[%s7475_s12 + $0x80] sm:$0xff] %vm417_vm1, %v3838_v30  ;;  %v3839_v26 = vmul.f32 %v5588_v1, %v3615_v5  ;;  %v4416_v13 = vpop.f32.mrb[36].mxu1 }
 0x523   : > { %3873 = vst.msk [vmem:[%s7475_s12 + $0x98] sm:$0xff] %vm417_vm1, %v3841_v6  ;;  %v3620_v16 = vadd.f32 %v4416_v13, %v7464_v43  ;;  %v3544_v15 = vpop.f32.mrb[37].mxu1 }
 0x524   : > { %3871 = vst.msk [vmem:[%s7475_s12 + $0x88] sm:$0xff] %vm417_vm1, %v3839_v26  ;;  %v3618_v50 = vadd.f32 %v7464_v43, %v3544_v15  ;;  %v4417_v3 = vpop.f32.mrb[38].mxu1 }
 0x525   : > { %v4154_v34 = vmul.f32 -1.442695, %v3620_v16  ;;  %v3621_v42 = vadd.f32 %v4417_v3, %v7464_v43  ;;  %v3547_v37 = vpop.f32.mrb[39].mxu1 }
 0x526   : > { %v4152_v56 = vmul.f32 -1.442695, %v3618_v50  ;;  %v3619_v46 = vadd.f32 %v7464_v43, %v3547_v37 }
 0x527   : > { %5589 = vpow2.f32 %v4154_v34  ;;  %v4155_v41 = vmul.f32 -1.442695, %v3621_v42 }
 0x528   : > { %5591 = vpow2.f32 %v4152_v56  ;;  %v4153_v45 = vmul.f32 -1.442695, %v3619_v46 }
 0x529   : > { %5593 = vpow2.f32 %v4155_v41 }
 0x52a   : > { %5595 = vpow2.f32 %v4153_v45 }
 0x531   : > { %v5590_v61 = vpop.eup %5589 }
 0x532   : > { %v5592_v22 = vpop.eup %5591  ;;  %v3748_v32 = vadd.f32 1.0, %v5590_v61 }
 0x533   : > { %v5594_v63 = vpop.eup %5593  ;;  %v3746_v62 = vadd.f32 1.0, %v5592_v22 }
 0x534   : > { %v5596_v7 = vpop.eup %5595  ;;  %5597 = vrcp.f32 %v3748_v32  ;;  %v3749_v36 = vadd.f32 1.0, %v5594_v63 }
 0x535   : > { %5599 = vrcp.f32 %v3746_v62  ;;  %v3747_v2 = vadd.f32 1.0, %v5596_v7 }
 0x536   : > { %5601 = vrcp.f32 %v3749_v36 }
 0x537   : > { %5603 = vrcp.f32 %v3747_v2 }
 0x53a   : > { %v4420_v4 = vpop.f32.mrb[40].mxu1 }
 0x53b   : > { %v3624_v9 = vadd.f32 %v4420_v4, %v7464_v43  ;;  %v3560_v59 = vpop.f32.mrb[41].mxu1 }
 0x53c   : > { %v3622_v57 = vadd.f32 %v7464_v43, %v3560_v59  ;;  %v4421_v12 = vpop.f32.mrb[42].mxu1 }
 0x53d   : > { %v4158_v24 = vmul.f32 -1.442695, %v3624_v9  ;;  %v3625_v54 = vadd.f32 %v4421_v12, %v7464_v43  ;;  %v3563_v58 = vpop.f32.mrb[43].mxu1 }
 0x53e   : > { %v5598_v28 = vpop.eup %5597  ;;  %v4156_v23 = vmul.f32 -1.442695, %v3622_v57  ;;  %v3623_v19 = vadd.f32 %v7464_v43, %v3563_v58 }
 0x53f   : > { %v5600_v18 = vpop.eup %5599  ;;  %v3844_v17 = vmul.f32 %v5598_v28, %v3620_v16  ;;  %5605 = vpow2.f32 %v4158_v24  ;;  %v4159_v47 = vmul.f32 -1.442695, %v3625_v54 }
 0x540   : > { %v5602_v21 = vpop.eup %5601  ;;  %v3842_v33 = vmul.f32 %v5600_v18, %v3618_v50  ;;  %5607 = vpow2.f32 %v4156_v23  ;;  %v4157_v27 = vmul.f32 -1.442695, %v3623_v19 }
 0x541   : > { %v5604_v44 = vpop.eup %5603  ;;  %3876 = vst.msk [vmem:[%s7475_s12 + $0xb0] sm:$0xff] %vm417_vm1, %v3844_v17  ;;  %v3845_v49 = vmul.f32 %v5602_v21, %v3621_v42  ;;  %5609 = vpow2.f32 %v4159_v47 }
 0x542   : > { %3874 = vst.msk [vmem:[%s7475_s12 + $0xa0] sm:$0xff] %vm417_vm1, %v3842_v33  ;;  %v3843_v40 = vmul.f32 %v5604_v44, %v3619_v46  ;;  %5611 = vpow2.f32 %v4157_v27 }
 0x543   : > { %3877 = vst.msk [vmem:[%s7475_s12 + $0xb8] sm:$0xff] %vm417_vm1, %v3845_v49 }
 0x544   : > { %3875 = vst.msk [vmem:[%s7475_s12 + $0xa8] sm:$0xff] %vm417_vm1, %v3843_v40 }
 0x549   : > { %v5606_v10 = vpop.eup %5605 }
 0x54a   : > { %v5608_v8 = vpop.eup %5607  ;;  %v3752_v53 = vadd.f32 1.0, %v5606_v10 }
 0x54b   : > { %v5610_v48 = vpop.eup %5609  ;;  %v3750_v5 = vadd.f32 1.0, %v5608_v8  ;;  %v4424_v20 = vpop.f32.mrb[44].mxu1 }
 0x54c   : > { %v5612_v52 = vpop.eup %5611  ;;  %5613 = vrcp.f32 %v3752_v53  ;;  %v3753_v35 = vadd.f32 1.0, %v5610_v48  ;;  %v3628_v11 = vadd.f32 %v4424_v20, %v7464_v43  ;;  %v3576_v0 = vpop.f32.mrb[45].mxu1 }
 0x54d   : > { %5615 = vrcp.f32 %v3750_v5  ;;  %v3751_v51 = vadd.f32 1.0, %v5612_v52  ;;  %v3626_v55 = vadd.f32 %v7464_v43, %v3576_v0  ;;  %v4425_v39 = vpop.f32.mrb[46].mxu1 }
 0x54e   : > { %5617 = vrcp.f32 %v3753_v35  ;;  %v4162_v29 = vmul.f32 -1.442695, %v3628_v11  ;;  %v3629_v14 = vadd.f32 %v4425_v39, %v7464_v43  ;;  %v3579_v25 = vpop.f32.mrb[47].mxu1 }
 0x54f   : > { %5619 = vrcp.f32 %v3751_v51  ;;  %v4160_v38 = vmul.f32 -1.442695, %v3626_v55  ;;  %v3627_v60 = vadd.f32 %v7464_v43, %v3579_v25 }
 0x550   : > { %5621 = vpow2.f32 %v4162_v29  ;;  %v4163_v31 = vmul.f32 -1.442695, %v3629_v14 }
 0x551   : > { %5623 = vpow2.f32 %v4160_v38  ;;  %v4161_v30 = vmul.f32 -1.442695, %v3627_v60 }
 0x552   : > { %5625 = vpow2.f32 %v4163_v31 }
 0x553   : > { %5627 = vpow2.f32 %v4161_v30 }
 0x556   : > { %v5614_v1 = vpop.eup %5613 }
 0x557   : > { %v5616_v6 = vpop.eup %5615  ;;  %v3848_v26 = vmul.f32 %v5614_v1, %v3624_v9 }
 0x558   : > { %v5618_v13 = vpop.eup %5617  ;;  %v3846_v16 = vmul.f32 %v5616_v6, %v3622_v57 }
 0x559   : > { %v5620_v15 = vpop.eup %5619  ;;  %3880 = vst.msk [vmem:[%s7475_s12 + $0xd0] sm:$0xff] %vm417_vm1, %v3848_v26  ;;  %v3849_v50 = vmul.f32 %v5618_v13, %v3625_v54 }
 0x55a   : > { %v5622_v3 = vpop.eup %5621  ;;  %3878 = vst.msk [vmem:[%s7475_s12 + $0xc0] sm:$0xff] %vm417_vm1, %v3846_v16  ;;  %v3847_v43 = vmul.f32 %v5620_v15, %v3623_v19 }
 0x55b   : > { %v5624_v34 = vpop.eup %5623  ;;  %3881 = vst.msk [vmem:[%s7475_s12 + $0xd8] sm:$0xff] %vm417_vm1, %v3849_v50  ;;  %v3756_v42 = vadd.f32 1.0, %v5622_v3 }
 0x55c   : > { %v5626_v37 = vpop.eup %5625  ;;  %3879 = vst.msk [vmem:[%s7475_s12 + $0xc8] sm:$0xff] %vm417_vm1, %v3847_v43  ;;  %v3754_v56 = vadd.f32 1.0, %v5624_v34 }
 0x55d   : > { %v5628_v46 = vpop.eup %5627  ;;  %5629 = vrcp.f32 %v3756_v42  ;;  %v3757_v41 = vadd.f32 1.0, %v5626_v37 }
 0x55e   : > { %5631 = vrcp.f32 %v3754_v56  ;;  %v3755_v45 = vadd.f32 1.0, %v5628_v46 }
 0x55f   : > { %5633 = vrcp.f32 %v3757_v41 }
 0x560   : > { %5635 = vrcp.f32 %v3755_v45 }
 0x567   : > { %v5630_v61 = vpop.eup %5629 }
 0x568   : > { %v5632_v22 = vpop.eup %5631  ;;  %v3852_v32 = vmul.f32 %v5630_v61, %v3628_v11 }
 0x569   : > { %v5634_v63 = vpop.eup %5633  ;;  %v3850_v62 = vmul.f32 %v5632_v22, %v3626_v55 }
 0x56a   : > { %v5636_v7 = vpop.eup %5635  ;;  %3884 = vst.msk [vmem:[%s7475_s12 + $0xf0] sm:$0xff] %vm417_vm1, %v3852_v32  ;;  %v3853_v36 = vmul.f32 %v5634_v63, %v3629_v14 }
 0x56b   : > { %3882 = vst.msk [vmem:[%s7475_s12 + $0xe0] sm:$0xff] %vm417_vm1, %v3850_v62  ;;  %v3851_v2 = vmul.f32 %v5636_v7, %v3627_v60 }
 0x56c   : > { %3885 = vst.msk [vmem:[%s7475_s12 + $0xf8] sm:$0xff] %vm417_vm1, %v3853_v36 }
 0x56d   : > { %3883 = vst.msk [vmem:[%s7475_s12 + $0xe8] sm:$0xff] %vm417_vm1, %v3851_v2 }
 0x56e PF: > { %s20_s13 = sadd.s32 1, %s5675_s13  }
 0x56f   : > { %p17_p4 = scmp.ge.s32.totalorder %s20_s13, 4  }
 0x571   :  { %19 = sbr.rel (!%p17_p4) target bundleno = 1 (0x1), region = 91 }

</bundles_post_ra>
